<compile_context>
chip_gen: v7x
topology: tpu7x:2x2x1
jax: 0.10.0
libtpu: 0.0.40
codegen_flags: <defaults>
</compile_context>

<pallas_src>
import math

import jax
import jax.numpy as jnp
from jax import lax
from jax.experimental import pallas as pl
from jax.experimental.pallas import tpu as pltpu


# ---------------------------------------------------------------------------
# Small helpers
# ---------------------------------------------------------------------------

_ONE_HOT_MAX_VOCAB = 8192          # above this, one-hot matmul wastes too much
_VMEM_TABLE_FRACTION = 0.4         # keep headroom for tiles / double buffers


def _round_up(a: int, m: int) -> int:
    return (a + m - 1) // m * m


def _sublane_multiple(dtype) -> int:
    """Minimum row multiple for lane-dense, unmasked stores (f32:8 bf16:16 i8:32)."""
    return 8 * (4 // jnp.dtype(dtype).itemsize)


def _vmem_capacity_bytes() -> int:
    """Generation-aware VMEM capacity (v5e/v6e: 128 MiB, v7x: 64 MiB)."""
    try:
        info = pltpu.get_tpu_info()
        cap = getattr(info, "vmem_capacity_bytes", None)
        if cap:
            return int(cap)
    except Exception:
        pass
    return 64 * 1024 * 1024        # conservative default (v7x per-TC VMEM)


# ---------------------------------------------------------------------------
# Fast path: VMEM-resident table, one-hot x table MXU matmul
# ---------------------------------------------------------------------------

def _onehot_matmul_kernel(ids_ref, table_ref, out_ref):
    """ids_ref: VMEM (BLOCK,1) i32; table_ref: VMEM (V,H) resident; out: (BLOCK,H)."""
    block = out_ref.shape[0]
    vocab = table_ref.shape[0]
    ids = ids_ref[...]                                            # (BLOCK, 1)
    cols = lax.broadcasted_iota(jnp.int32, (block, vocab), 1)     # (BLOCK, V)
    one_hot = (cols == ids).astype(table_ref.dtype)               # (BLOCK, V)
    out_ref[...] = jnp.dot(
        one_hot,
        table_ref[...],
        preferred_element_type=jnp.float32,
        precision=lax.Precision.HIGHEST,                          # exact lookup
    ).astype(out_ref.dtype)


def _lookup_onehot(table, flat_ids, block_rows):
    vocab, hidden = table.shape
    isz = jnp.dtype(table.dtype).itemsize
    n = flat_ids.shape[0]

    sub = _sublane_multiple(table.dtype)
    block = _round_up(max(1, min(block_rows, n)), sub)
    n_pad = _round_up(n, block)
    ids = jnp.pad(flat_ids, (0, n_pad - n)).reshape(n_pad, 1)

    capacity = _vmem_capacity_bytes()
    vmem_needed = (
        vocab * hidden * isz            # resident table
        + 2 * block * hidden * isz      # double-buffered output tiles
        + 2 * block * 4                 # ids tiles
        + 2 * block * vocab * 4         # one-hot intermediate + headroom
        + (2 << 20)
    )
    vmem_limit = min(max(vmem_needed, 16 << 20), capacity - (4 << 20))

    out = pl.pallas_call(
        _onehot_matmul_kernel,
        out_shape=jax.ShapeDtypeStruct((n_pad, hidden), table.dtype),
        grid_spec=pltpu.PrefetchScalarGridSpec(
            num_scalar_prefetch=0,
            grid=(n_pad // block,),
            in_specs=[
                pl.BlockSpec((block, 1), lambda i: (i, 0)),       # token ids
                pl.BlockSpec((vocab, hidden), lambda i: (0, 0)),  # resident table
            ],
            out_specs=pl.BlockSpec((block, hidden), lambda i: (i, 0)),
        ),
        compiler_params=pltpu.CompilerParams(
            dimension_semantics=("parallel",),   # v7x: split token blocks over TCs
            vmem_limit_bytes=int(vmem_limit),
        ),
        cost_estimate=pl.CostEstimate(
            flops=2 * n_pad * vocab * hidden,
            transcendentals=0,
            bytes_accessed=(vocab * hidden + n_pad * hidden) * isz + n_pad * 4,
        ),
    )(ids, table)
    return out[:n]


# ---------------------------------------------------------------------------
# Fallback path: table in HBM, double-buffered per-row DMA gather
# ---------------------------------------------------------------------------

def _hbm_gather_kernel(idx_ref, table_hbm, out_ref, scratch, sems):
    """Double-buffered row gather: HBM table rows -> VMEM scratch -> out tile.

    idx_ref   : SMEM (n_pad,) int32    scalar-prefetched flat token ids
    table_hbm : HBM  (V, H)            full table, never copied wholesale
    out_ref   : VMEM (BLOCK, H)        output tile for this grid step
    scratch   : VMEM (2, BLOCK, H)     gather double buffer
    sems      : DMA semaphores (2,)    one per slot
    """
    step = pl.program_id(0)
    nsteps = pl.num_programs(0)
    block = out_ref.shape[0]
    unroll = min(block, 8)

    def issue(tgt_step, slot):
        base = tgt_step * block

        def body(r, carry):
            idx = idx_ref[base + r]                  # SMEM scalar read (before waits)
            pltpu.make_async_copy(
                table_hbm.at[pl.ds(idx, 1), :],
                scratch.at[slot, pl.ds(r, 1), :],
                sems.at[slot],
            ).start()
            return carry

        lax.fori_loop(0, block, body, 0, unroll=unroll)

    # Prime the pipeline: the first step fetches its own rows.
    @pl.when(step == 0)
    def _():
        issue(0, 0)

    # Prefetch next step's rows into the other slot (ids already in SMEM).
    @pl.when(step + 1 < nsteps)
    def _():
        issue(step + 1, (step + 1) % 2)

    # Wait for this step's rows (one wait per issued copy, same sizes).
    slot = step % 2

    def wait_body(r, carry):
        pltpu.make_async_copy(
            table_hbm.at[pl.ds(0, 1), :],            # size-only descriptor for wait
            scratch.at[slot, pl.ds(r, 1), :],
            sems.at[slot],
        ).wait()
        return carry

    lax.fori_loop(0, block, wait_body, 0, unroll=unroll)

    # Hand a large, lane-dense tile to the pipelined output writeback.
    out_ref[...] = scratch[slot]


def _lookup_hbm_gather(table, flat_ids, block_rows):
    vocab, hidden = table.shape
    isz = jnp.dtype(table.dtype).itemsize
    n = flat_ids.shape[0]

    sub = _sublane_multiple(table.dtype)
    block = _round_up(max(1, min(block_rows, n)), sub)
    n_pad = _round_up(n, block)
    ids = jnp.pad(flat_ids, (0, n_pad - n))          # pad with row 0 (always valid)

    capacity = _vmem_capacity_bytes()
    vmem_needed = 4 * block * hidden * isz + (2 << 20)   # out dbl-buf + 2 scratch slots
    vmem_limit = min(max(vmem_needed, 16 << 20), capacity - (4 << 20))

    out = pl.pallas_call(
        _hbm_gather_kernel,
        out_shape=jax.ShapeDtypeStruct((n_pad, hidden), table.dtype),
        grid_spec=pltpu.PrefetchScalarGridSpec(
            num_scalar_prefetch=1,
            grid=(n_pad // block,),
            in_specs=[pl.BlockSpec(memory_space=pl.ANY)],        # table stays in HBM
            out_specs=pl.BlockSpec((block, hidden), lambda i, ids: (i, 0)),
            scratch_shapes=[
                pltpu.VMEM((2, block, hidden), table.dtype),
                pltpu.SemaphoreType.DMA((2,)),
            ],
        ),
        compiler_params=pltpu.CompilerParams(
            # Double-buffer state crosses grid steps -> must stay sequential.
            dimension_semantics=("arbitrary",),
            vmem_limit_bytes=int(vmem_limit),
        ),
        cost_estimate=pl.CostEstimate(
            flops=0,
            transcendentals=0,
            bytes_accessed=2 * n_pad * hidden * isz,
        ),
    )(ids, table)
    return out[:n]


# ---------------------------------------------------------------------------
# Public wrapper + module
# ---------------------------------------------------------------------------

def embedding_lookup(table, x, *, block_rows=256, force_hbm_gather=False):
    """out = table[x]  (x of arbitrary shape; output x.shape + (H,))."""
    vocab, hidden = table.shape
    isz = jnp.dtype(table.dtype).itemsize
    flat = x.reshape(-1).astype(jnp.int32)

    table_bytes = vocab * hidden * isz
    resident_budget = int(_vmem_capacity_bytes() * _VMEM_TABLE_FRACTION)
    use_onehot = (
        not force_hbm_gather
        and table_bytes <= resident_budget
        and vocab <= _ONE_HOT_MAX_VOCAB
    )

    if use_onehot:
        flat_out = _lookup_onehot(table, flat, block_rows)
    else:
        flat_out = _lookup_hbm_gather(table, flat, block_rows)
    return flat_out.reshape(x.shape + (hidden,))


class EmbeddingLayer:
    """JAX/Pallas port of models/dit.py::EmbeddingLayer."""

    def __init__(self, dim, vocab_dim, key):
        # torch.nn.init.kaiming_uniform_(w, a=sqrt(5)) on (vocab_dim, dim)
        # -> Uniform(-1/sqrt(dim), 1/sqrt(dim)).
        bound = 1.0 / math.sqrt(dim)
        self.embedding = jax.random.uniform(
            key, (vocab_dim, dim), minval=-bound, maxval=bound, dtype=jnp.float32
        )

    def __call__(self, x):
        return embedding_lookup(self.embedding, x)


if __name__ == "__main__":
    dim = 128          # lane-dense hidden dim (multiple of 128)
    vocab_dim = 1000
    batch, seq = 2, 9  # 18 tokens

    root = jax.random.PRNGKey(0)
    k_table, k_x = jax.random.split(root)

    module = EmbeddingLayer(dim, vocab_dim, key=k_table)
    x = jax.random.randint(k_x, (batch, seq), 0, vocab_dim, dtype=jnp.int32)

    ref = module.embedding[x]                      # pure-JAX reference gather

    # Fast path: VMEM-resident table + one-hot x table MXU matmul.
    out = jax.block_until_ready(module(x))
    assert out.shape == (batch, seq, dim)
    assert jnp.allclose(out, ref, rtol=1e-5, atol=1e-6)

    # Fallback path: HBM table + double-buffered row-DMA gather.
    # Tiny block_rows here just to exercise multiple grid steps / both slots.
    out_gather = jax.block_until_ready(
        embedding_lookup(module.embedding, x, block_rows=8, force_hbm_gather=True)
    )
    assert out_gather.shape == (batch, seq, dim)
    assert jnp.allclose(out_gather, ref)

    print("KERNEL_OK")
</pallas_src>

<mosaic_0001>
module attributes {stable_mosaic.version = 11 : i64} {
  func.func @_onehot_matmul_kernel(%arg0: i32, %arg1: memref<24x1xi32, #tpu.memory_space<vmem>>, %arg2: memref<1000x128xf32, #tpu.memory_space<vmem>>, %arg3: memref<24x128xf32, #tpu.memory_space<vmem>>) attributes {dimension_semantics = [#tpu.dimension_semantics<parallel>], iteration_bounds = array<i64: 1>, scalar_prefetch = 0 : i64, scratch_operands = 0 : i64, tpu.core_type = #tpu.core_type<tc>, window_params = [{transform_indices = @transform_0, window_bounds = array<i64: 24, 1>}, {pipeline_mode = #tpu.pipeline_mode<synchronous>, transform_indices = @transform_1, window_bounds = array<i64: 1000, 128>}, {transform_indices = @transform_2, window_bounds = array<i64: 24, 128>}]} {
    %c0 = arith.constant 0 : index
    %c0_0 = arith.constant 0 : index
    %0 = vector.load %arg1[%c0, %c0_0] : memref<24x1xi32, #tpu.memory_space<vmem>>, vector<24x1xi32>
    %1 = tpu.iota {dimensions = array<i32: 1>} : vector<24x1000xi32>
    %2 = vector.broadcast %0 : vector<24x1xi32> to vector<24x1000xi32>
    %3 = arith.cmpi eq, %1, %2 : vector<24x1000xi32>
    %4 = arith.extui %3 : vector<24x1000xi1> to vector<24x1000xi32>
    %5 = arith.sitofp %4 : vector<24x1000xi32> to vector<24x1000xf32>
    %c0_1 = arith.constant 0 : index
    %c0_2 = arith.constant 0 : index
    %6 = vector.load %arg2[%c0_1, %c0_2] : memref<1000x128xf32, #tpu.memory_space<vmem>>, vector<1000x128xf32>
    %cst = arith.constant dense<0.000000e+00> : vector<24x128xf32>
    %7 = tpu.matmul %5, %6, %cst {dimension_numbers = #tpu.dot_dimension_numbers<[1], [0], [0], [1], [0, 0, 1, 1], [], []>, precision = #tpu.contract_precision<fp32>} : vector<24x1000xf32>, vector<1000x128xf32>, vector<24x128xf32> -> vector<24x128xf32>
    %c0_3 = arith.constant 0 : index
    %c0_4 = arith.constant 0 : index
    %8 = vector.load %arg3[%c0_3, %c0_4] : memref<24x128xf32, #tpu.memory_space<vmem>>, vector<24x128xf32>
    tpu.vector_store %arg3[%c0_3, %c0_4], %7 {strides = array<i32>} : memref<24x128xf32, #tpu.memory_space<vmem>>, vector<24x128xf32>,
    return
  }
  func.func @transform_0(%arg0: i32) -> (i32, i32) {
    %c0_i32 = arith.constant 0 : i32
    %c0_i32_0 = arith.constant 0 : i32
    return %arg0, %c0_i32 : i32, i32
  }
  func.func @transform_1(%arg0: i32) -> (i32, i32) {
    %c0_i32 = arith.constant 0 : i32
    %c0_i32_0 = arith.constant 0 : i32
    %c0_i32_1 = arith.constant 0 : i32
    return %c0_i32, %c0_i32_0 : i32, i32
  }
  func.func @transform_2(%arg0: i32) -> (i32, i32) {
    %c0_i32 = arith.constant 0 : i32
    %c0_i32_0 = arith.constant 0 : i32
    return %arg0, %c0_i32 : i32, i32
  }
}

</mosaic_0001>

<bundles_post_ra>
// kernel: tpu_custom_call.1
= control target key start
LH: loop header
LB: loop body
LE: loop exit
PB: predicated region body
PF: predicated region fallthrough
CT: control target
= control target key end

     0   :  { %7 = vsyncpa [#allocation3], 0  ;;  %s9078_s0 = inlined_call_operand.vmem [shape: s32[24,1], index: 0, kind: input, shape index: {}]   ;;  %s9079_s1 = inlined_call_operand.hbm [shape: f32[1000,128], index: 1, kind: input, shape index: {}]   ;;  %s9080_s2 = inlined_call_operand.hbm [shape: f32[24,128], index: 2, kind: output, shape index: {}]  }
   0x1   :  { %8 = vsyncpa [#allocation4], 0  ;;  %s5881_s9 = smov [#allocation2]   ;;  %s5833_s13 = scalar_lea.hbm %s9079_s1, 16000 }
   0x2   :  { %s16_s10 = sshll.u32 %s5881_s9, 4  ;;  %p5834_p0 = scmp.ne.s32.totalorder %s9079_s1, %s5833_s13  ;;  %s17_s10 = int_to_ptr.vmem [resolvable:$true] %s16_s10 }
   0x3   :  { %p5837_p1 = scmp.lt.u32.totalorder %s5833_s13, %s9079_s1 }
   0x5   :  { %p5839_p2 = pnand %p5837_p1, %p5834_p0 }
   0x7   :  { %5842 = shalt.err (!%p5839_p2)
}
   0x8   :  { %s5843_s18 = scalar_lea.vmem %s17_s10, 16000  ;;  %p5848_p4 = scmp.lt.s32.totalorder %s17_s10, %s17_s10 }
   0x9   :  { %p5844_p3 = scmp.ne.s32.totalorder %s17_s10, %s5843_s18  ;;  %p5849_p5 = scmp.lt.s32.totalorder %s5843_s18, %s5843_s18 }
   0xb   :  { %p5850_p6 = por %p5849_p5, %p5848_p4 }
   0xd   :  { %p5851_p7 = pnand %p5850_p6, %p5844_p3 }
   0xf   :  { %5854 = shalt.err (!%p5851_p7)
}
  0x10   :  { %s5882_s19 = smov 128   ;;  %s5883_s20 = smov 8  }
  0x11   :  { %22 = dma.hbm_to_vmem [thread:$0]  %s9079_s1, 16000, %s17_s10, [#allocation3], %s5882_s19, %s5882_s19, %s5883_s20  }
  0x12   :  { %5877 = dma.done.wait [#allocation3], 16000  }
  0x13   :  { %5878 = vsyncadd [#allocation3], 4294951296  ;;  %v5884_v0 = vmov 0   ;;  %v26_v1 = vld [vmem:[%s9078_s0] sm:$0xff]  ;;  %v27_v2 = vld [vmem:[%s9078_s0 + $0x8] sm:$0xff] }
  0x14   :  { %5831 = vset.pattern.permute.xlu0 %v5884_v0  ;;  %5832 = vset.pattern.permute.xlu1 %v5884_v0  ;;  %v28_v3 = vld [vmem:[%s9078_s0 + $0x10] sm:$0xff]  ;;  %v135_v4 = vld [vmem:[#allocation2 + $0x80] sm:$0xff]  ;;  %v136_v5 = vld [vmem:[#allocation2 + $0x88] sm:$0xff]  ;;  %s5888_s0 = smov [#allocation5]  }
  0x15   :  { %39 = vperm.xlu0 %5831, %v26_v1   ;;  %45 = vperm.xlu1 %5832, %v28_v3   ;;  %v5928_v6 = vld [vmem:[#allocation2] sm:$0xff]  ;;  %v303_v7 = vand.u32 4294901760, %v135_v4  ;;  %v306_v8 = vand.u32 4294901760, %v136_v5  ;;  %v5930_v9 = vld [vmem:[#allocation2 + $0x8] sm:$0xff]  ;;  %v5933_v11 = vld [vmem:[#allocation2 + $0x90] sm:$0xff]  ;;  %s4119_s1 = sshll.u32 %s5888_s0, 4  ;;  %s4120_s1 = int_to_ptr.vmem [resolvable:$true] %s4119_s1 }
  0x16   :  { %v255_v10 = vand.u32 4294901760, %v5928_v6  ;;  %v5935_v12 = vld [vmem:[#allocation2 + $0x98] sm:$0xff]  ;;  %v258_v13 = vand.u32 4294901760, %v5930_v9  ;;  %v309_v14 = vand.u32 4294901760, %v5933_v11  ;;  %v5940_v16 = vld [vmem:[#allocation2 + $0x10] sm:$0xff]  ;;  %v6004_v42 = vld [vmem:[#allocation2 + $0xa0] sm:$0xff]  ;;  %p5860_p9 = scmp.lt.s32.totalorder %s4120_s1, %s4120_s1 }
  0x17   :  { %v312_v15 = vand.u32 4294901760, %v5935_v12  ;;  %v5942_v17 = vld [vmem:[#allocation2 + $0x18] sm:$0xff]  ;;  %v5944_v18 = vsub.f32 %v135_v4, %v303_v7  ;;  %v5946_v19 = vsub.f32 %v136_v5, %v306_v8  ;;  %v261_v21 = vand.u32 4294901760, %v5940_v16  ;;  %v6006_v43 = vld [vmem:[#allocation2 + $0xa8] sm:$0xff]  ;;  %v6014_v52 = vld [vmem:[#allocation2 + $0x20] sm:$0xff]  ;;  %s5855_s29 = scalar_lea.vmem %s4120_s1, 384 }
  0x18   :  { %v5951_v20 = vsub.f32 %v5928_v6, %v255_v10  ;;  %v5955_v22 = vsub.f32 %v5930_v9, %v258_v13  ;;  %v5960_v23 = vsub.f32 %v5933_v11, %v309_v14  ;;  %v264_v25 = vand.u32 4294901760, %v5942_v17  ;;  %v6016_v53 = vld [vmem:[#allocation2 + $0x28] sm:$0xff]  ;;  %v6020_v58 = vld [vmem:[#allocation2 + $0xb0] sm:$0xff]  ;;  %v6022_v59 = vld [vmem:[#allocation2 + $0xb8] sm:$0xff]  ;;  %p5856_p8 = scmp.ne.s32.totalorder %s4120_s1, %s5855_s29  ;;  %p5861_p10 = scmp.lt.s32.totalorder %s5855_s29, %s5855_s29 }
  0x19   :  { %42 = vperm.xlu0 %5831, %v27_v2   ;;  %v5965_v24 = vsub.f32 %v5935_v12, %v312_v15  ;;  %v9100_v26 = vand.u32 4294901760, %v5944_v18  ;;  %v9099_v27 = vand.u32 4294901760, %v5946_v19  ;;  %v5974_v29 = vsub.f32 %v5940_v16, %v261_v21  ;;  %v6038_v4 = vld [vmem:[#allocation2 + $0x30] sm:$0xff] }
  0x1a   :  { %v9097_v28 = vand.u32 4294901760, %v5951_v20  ;;  %v9095_v30 = vand.u32 4294901760, %v5955_v22  ;;  %v9093_v31 = vand.u32 4294901760, %v5960_v23  ;;  %v5982_v33 = vsub.f32 %v5942_v17, %v264_v25  ;;  %p5862_p11 = por %p5861_p10, %p5860_p9 }
  0x1b   :  { %v9092_v32 = vand.u32 4294901760, %v5965_v24  ;;  %v512_v34 = vsub.f32 %v5944_v18, %v9100_v26  ;;  %v519_v35 = vsub.f32 %v5946_v19, %v9099_v27  ;;  %v9088_v37 = vand.u32 4294901760, %v5974_v29 }
  0x1c   :  { %v400_v36 = vsub.f32 %v5951_v20, %v9097_v28  ;;  %v407_v38 = vsub.f32 %v5955_v22, %v9095_v30  ;;  %v526_v39 = vsub.f32 %v5960_v23, %v9093_v31  ;;  %v9087_v41 = vand.u32 4294901760, %v5982_v33  ;;  %v6226_v30 = vld [vmem:[#allocation2 + $0xe0] sm:$0xff]  ;;  %p5863_p12 = pnand %p5862_p11, %p5856_p8 }
  0x1d   :  { %v533_v40 = vsub.f32 %v5965_v24, %v9092_v32  ;;  %v513_v44 = vand.u32 4294901760, %v512_v34  ;;  %v520_v45 = vand.u32 4294901760, %v519_v35  ;;  %v414_v47 = vsub.f32 %v5974_v29, %v9088_v37  ;;  %v6130_v37 = vld [vmem:[#allocation2 + $0x48] sm:$0xff] }
  0x1e   :  { %v401_v46 = vand.u32 4294901760, %v400_v36  ;;  %v408_v48 = vand.u32 4294901760, %v407_v38  ;;  %v527_v49 = vand.u32 4294901760, %v526_v39  ;;  %v421_v51 = vsub.f32 %v5982_v33, %v9087_v41 }
  0x1f   :  { %v534_v50 = vand.u32 4294901760, %v533_v40  ;;  %v4997_v54 = vpack.c.bf16 %v520_v45, %v513_v44  ;;  %v415_v55 = vand.u32 4294901760, %v414_v47  ;;  %v315_v56 = vand.u32 4294901760, %v6004_v42 }
  0x20   :  { %v318_v57 = vand.u32 4294901760, %v6006_v43  ;;  %v4999_v60 = vpack.c.bf16 %v408_v48, %v401_v46  ;;  %v422_v62 = vand.u32 4294901760, %v421_v51  ;;  %v6024_v63 = vpack.c.bf16 %v306_v8, %v303_v7 }
  0x21   :  { %v5001_v61 = vpack.c.bf16 %v534_v50, %v527_v49  ;;  %4998 = vmatprep.subr.bf16.mxu1 %v4997_v54  ;;  %v6029_v0 = vsub.f32 %v6004_v42, %v315_v56  ;;  %v267_v2 = vand.u32 4294901760, %v6014_v52  ;;  %v270_v3 = vand.u32 4294901760, %v6016_v53 }
  0x22   :  { %v6034_v1 = vsub.f32 %v6006_v43, %v318_v57  ;;  %5000 = vmatpush3.bf16.msra.mxu1 %v4999_v60  ;;  %v5003_v5 = vpack.c.bf16 %v422_v62, %v415_v55  ;;  %4966 = vmatprep.subr.bf16.mxu0 %v6024_v63  ;;  %v6043_v7 = vpack.c.bf16 %v258_v13, %v255_v10  ;;  %v321_v8 = vand.u32 4294901760, %v6020_v58  ;;  %v6059_v10 = vld [vmem:[#allocation2 + $0x38] sm:$0xff]  ;;  %v6114_v62 = vld [vmem:[#allocation2 + $0xc0] sm:$0xff] }
  0x23   :  { %v324_v9 = vand.u32 4294901760, %v6022_v59  ;;  %5002 = vmatprep.subr.bf16.mxu1 %v5001_v61  ;;  %v9086_v34 = vand.u32 4294901760, %v6029_v0  ;;  %v6052_v36 = vsub.f32 %v6014_v52, %v267_v2  ;;  %v6057_v6 = vsub.f32 %v6016_v53, %v270_v3 }
  0x24   :  { %v9085_v35 = vand.u32 4294901760, %v6034_v1  ;;  %4968 = vmatpush3.bf16.msra.mxu0 %v6043_v7  ;;  %v6065_v13 = vsub.f32 %v6020_v58, %v321_v8  ;;  %v6076_v39 = vpack.c.bf16 %v312_v15, %v309_v14  ;;  %v273_v40 = vand.u32 4294901760, %v6038_v4 }
  0x25   :  { %v6070_v38 = vsub.f32 %v6022_v59, %v324_v9  ;;  %v540_v44 = vsub.f32 %v6029_v0, %v9086_v34  ;;  %v9084_v46 = vand.u32 4294901760, %v6052_v36  ;;  %v9081_v47 = vand.u32 4294901760, %v6057_v6 }
  0x26   :  { %v547_v45 = vsub.f32 %v6034_v1, %v9085_v35  ;;  %5004 = vmatpush3.bf16.msra.mxu1 %v5003_v5  ;;  %v9082_v11 = vand.u32 4294901760, %v6065_v13  ;;  %4970 = vmatprep.subr.bf16.mxu0 %v6076_v39  ;;  %v276_v14 = vand.u32 4294901760, %v6059_v10  ;;  %v6094_v15 = vsub.f32 %v6038_v4, %v273_v40  ;;  %v6116_v5 = vld [vmem:[#allocation2 + $0xc8] sm:$0xff] }
  0x27   :  { %v9083_v12 = vand.u32 4294901760, %v6070_v38  ;;  %v541_v48 = vand.u32 4294901760, %v540_v44  ;;  %v428_v50 = vsub.f32 %v6052_v36, %v9084_v46  ;;  %v435_v51 = vsub.f32 %v6057_v6, %v9081_v47 }
  0x28   :  { %v548_v49 = vand.u32 4294901760, %v547_v45  ;;  %v554_v54 = vsub.f32 %v6065_v13, %v9082_v11  ;;  %v9090_v60 = vand.u32 4294901760, %v6094_v15  ;;  %v6112_v61 = vsub.f32 %v6059_v10, %v276_v14  ;;  %v149_v10 = vld [vmem:[#allocation2 + $0xf0] sm:$0xff] }
  0x29   :  { %v561_v55 = vsub.f32 %v6070_v38, %v9083_v12  ;;  %v429_v45 = vand.u32 4294901760, %v428_v50  ;;  %v436_v47 = vand.u32 4294901760, %v435_v51  ;;  %v6122_v11 = vpack.c.bf16 %v264_v25, %v261_v21  ;;  %v6124_v12 = vld [vmem:[#allocation2 + $0x40] sm:$0xff]  ;;  %v6141_v25 = vld [vmem:[#allocation2 + $0xd0] sm:$0xff] }
  0x2a   :  { %v5005_v44 = vpack.c.bf16 %v548_v49, %v541_v48  ;;  %v555_v46 = vand.u32 4294901760, %v554_v54  ;;  %v442_v34 = vsub.f32 %v6094_v15, %v9090_v60  ;;  %v9089_v41 = vand.u32 4294901760, %v6112_v61  ;;  %v6143_v49 = vld [vmem:[#allocation2 + $0xd8] sm:$0xff] }
  0x2b   :  { %v562_v35 = vand.u32 4294901760, %v561_v55  ;;  %v5007_v48 = vpack.c.bf16 %v436_v47, %v429_v45  ;;  %4972 = vmatpush3.bf16.msra.mxu0 %v6122_v11  ;;  %v327_v16 = vand.u32 4294901760, %v6114_v62  ;;  %v330_v17 = vand.u32 4294901760, %v6116_v5 }
  0x2c   :  { %5006 = vmatprep.subr.bf16.mxu1 %v5005_v44  ;;  %v6139_v21 = vpack.c.bf16 %v318_v57, %v315_v56  ;;  %v443_v51 = vand.u32 4294901760, %v442_v34  ;;  %v449_v47 = vsub.f32 %v6112_v61, %v9089_v41  ;;  %v279_v54 = vand.u32 4294901760, %v6124_v12  ;;  %v6174_v44 = vld [vmem:[#allocation2 + $0x50] sm:$0xff] }
  0x2d   :  { %v5009_v50 = vpack.c.bf16 %v562_v35, %v555_v46  ;;  %5008 = vmatpush3.bf16.msra.mxu1 %v5007_v48  ;;  %v6152_v42 = vsub.f32 %v6114_v62, %v327_v16  ;;  %v6157_v43 = vsub.f32 %v6116_v5, %v330_v17  ;;  %v9107_v56 = vand.u32 4294901760, %v6130_v37 }
  0x2e   :  { %4974 = vmatprep.subr.bf16.mxu0 %v6139_v21  ;;  %v6165_v57 = vpack.c.bf16 %v270_v3, %v267_v2  ;;  %v450_v34 = vand.u32 4294901760, %v449_v47  ;;  %v6170_v35 = vsub.f32 %v6124_v12, %v279_v54  ;;  %v9105_v46 = vand.u32 4294901760, %v6141_v25  ;;  %v6190_v3 = vld [vmem:[#allocation2 + $0x58] sm:$0xff] }
  0x2f   :  { %5010 = vmatprep.subr.bf16.mxu1 %v5009_v50  ;;  %v9104_v55 = vand.u32 4294901760, %v6143_v49  ;;  %v9091_v45 = vand.u32 4294901760, %v6152_v42  ;;  %v9094_v52 = vand.u32 4294901760, %v6157_v43  ;;  %v6181_v53 = vsub.f32 %v6130_v37, %v9107_v56  ;;  %v132_v56 = vld [vmem:[#allocation2 + $0x68] sm:$0xff] }
  0x30   :  { %9355 = vst [vmem:[#allocation8_spill] sm:$0xff] %v6165_v57  ;;  %4976 = vmatpush3.bf16.msra.mxu0 %v6165_v57  ;;  %v6188_v2 = vpack.c.bf16 %v324_v9, %v321_v8  ;;  %v5011_v48 = vpack.c.bf16 %v450_v34, %v443_v51  ;;  %v9096_v50 = vand.u32 4294901760, %v6170_v35  ;;  %v6196_v47 = vsub.f32 %v6141_v25, %v9105_v46 }
  0x31   :  { %v6201_v41 = vsub.f32 %v6143_v49, %v9104_v55  ;;  %v568_v58 = vsub.f32 %v6152_v42, %v9091_v45  ;;  %v575_v59 = vsub.f32 %v6157_v43, %v9094_v52  ;;  %v9098_v8 = vand.u32 4294901760, %v6181_v53 }
  0x32   :  { %9356 = vst [vmem:[#allocation9_spill] sm:$0xff] %v6188_v2  ;;  %4978 = vmatprep.subr.bf16.mxu0 %v6188_v2  ;;  %v9101_v9 = vand.u32 4294901760, %v6174_v44  ;;  %5012 = vmatpush3.bf16.msra.mxu1 %v5011_v48  ;;  %v456_v51 = vsub.f32 %v6170_v35, %v9096_v50  ;;  %v9102_v34 = vand.u32 4294901760, %v6196_v47  ;;  %v9106_v45 = vand.u32 4294901760, %v6190_v3 }
  0x33   :  { %v9103_v60 = vand.u32 4294901760, %v6201_v41  ;;  %v569_v32 = vand.u32 4294901760, %v568_v58  ;;  %v576_v31 = vand.u32 4294901760, %v575_v59  ;;  %v463_v52 = vsub.f32 %v6181_v53, %v9098_v8  ;;  %v6239_v8 = vld [vmem:[#allocation2 + $0xe8] sm:$0xff] }
  0x34   :  { %v6224_v48 = vsub.f32 %v6174_v44, %v9101_v9  ;;  %v457_v50 = vand.u32 4294901760, %v456_v51  ;;  %v582_v28 = vsub.f32 %v6196_v47, %v9102_v34  ;;  %v6237_v59 = vsub.f32 %v6190_v3, %v9106_v45  ;;  %v6248_v34 = vld [vmem:[#allocation2 + $0x60] sm:$0xff] }
  0x35   :  { %v589_v58 = vsub.f32 %v6201_v41, %v9103_v60  ;;  %v5013_v27 = vpack.c.bf16 %v576_v31, %v569_v32  ;;  %v464_v26 = vand.u32 4294901760, %v463_v52  ;;  %v6246_v51 = vpack.c.bf16 %v276_v14, %v273_v40  ;;  %v150_v52 = vld [vmem:[#allocation2 + $0xf8] sm:$0xff] }
  0x36   :  { %v9109_v9 = vand.u32 4294901760, %v6224_v48  ;;  %v583_v60 = vand.u32 4294901760, %v582_v28  ;;  %v9108_v46 = vand.u32 4294901760, %v6237_v59  ;;  %v339_v45 = vand.u32 4294901760, %v6226_v30 }
  0x37   :  { %9357 = vst [vmem:[#allocation10_spill] sm:$0xff] %v6246_v51  ;;  %v590_v55 = vand.u32 4294901760, %v589_v58  ;;  %5014 = vmatprep.subr.bf16.mxu1 %v5013_v27  ;;  %v5015_v31 = vpack.c.bf16 %v464_v26, %v457_v50  ;;  %4980 = vmatpush3.bf16.msra.mxu0 %v6246_v51  ;;  %v342_v4 = vand.u32 4294901760, %v6239_v8  ;;  %v6261_v28 = vpack.c.bf16 %v330_v17, %v327_v16 }
  0x38   :  { %v470_v32 = vsub.f32 %v6224_v48, %v9109_v9  ;;  %v477_v26 = vsub.f32 %v6237_v59, %v9108_v46  ;;  %v6267_v27 = vsub.f32 %v6226_v30, %v339_v45  ;;  %v291_v14 = vand.u32 4294901760, %v6248_v34 }
  0x39   :  { %9358 = vst [vmem:[#allocation11_spill] sm:$0xff] %v6261_v28  ;;  %v5017_v40 = vpack.c.bf16 %v590_v55, %v583_v60  ;;  %5016 = vmatpush3.bf16.msra.mxu1 %v5015_v31  ;;  %v6271_v62 = vsub.f32 %v6239_v8, %v342_v4  ;;  %4982 = vmatprep.subr.bf16.mxu0 %v6261_v28  ;;  %v294_v5 = vand.u32 4294901760, %v132_v56  ;;  %v9359_v60 = vand.u32 4294901760, %v6130_v37  ;;  %v133_v31 = vld [vmem:[#allocation2 + $0x70] sm:$0xff] }
  0x3a   :  { %v471_v50 = vand.u32 4294901760, %v470_v32  ;;  %v478_v30 = vand.u32 4294901760, %v477_v26  ;;  %v9113_v17 = vand.u32 4294901760, %v6267_v27  ;;  %v6282_v55 = vsub.f32 %v6248_v34, %v291_v14  ;;  %v134_v26 = vld [vmem:[#allocation2 + $0x78] sm:$0xff] }
  0x3b   :  { %v6278_v16 = vpack.c.bf16 %v9359_v60, %v279_v54  ;;  %5018 = vmatprep.subr.bf16.mxu1 %v5017_v40  ;;  %v345_v58 = vand.u32 4294901760, %v149_v10  ;;  %v9112_v8 = vand.u32 4294901760, %v6271_v62  ;;  %v6285_v32 = vsub.f32 %v132_v56, %v294_v5 }
  0x3c   :  { %v348_v12 = vand.u32 4294901760, %v150_v52  ;;  %v9361_v37 = vand.u32 4294901760, %v6141_v25  ;;  %v9362_v54 = vand.u32 4294901760, %v6143_v49  ;;  %v5019_v60 = vpack.c.bf16 %v478_v30, %v471_v50 }
  0x3d   :  { %9360 = vst [vmem:[#allocation12_spill] sm:$0xff] %v6278_v16  ;;  %4984 = vmatpush3.bf16.msra.mxu0 %v6278_v16  ;;  %v596_v34 = vsub.f32 %v6267_v27, %v9113_v17  ;;  %v9116_v46 = vand.u32 4294901760, %v6282_v55  ;;  %v6298_v9 = vsub.f32 %v149_v10, %v345_v58  ;;  %v603_v56 = vsub.f32 %v6271_v62, %v9112_v8 }
  0x3e   :  { %v6292_v40 = vpack.c.bf16 %v9362_v54, %v9361_v37  ;;  %v9123_v25 = vand.u32 4294901760, %v6285_v32  ;;  %v6304_v16 = vsub.f32 %v150_v52, %v348_v12  ;;  %v297_v49 = vand.u32 4294901760, %v133_v31  ;;  %5020 = vmatpush3.bf16.msra.mxu1 %v5019_v60 }
  0x3f   :  { %v597_v50 = vand.u32 4294901760, %v596_v34  ;;  %v484_v30 = vsub.f32 %v6282_v55, %v9116_v46  ;;  %v9127_v10 = vand.u32 4294901760, %v6298_v9  ;;  %v300_v37 = vand.u32 4294901760, %v134_v26 }
  0x40   :  { %9363 = vst [vmem:[#allocation13_spill] sm:$0xff] %v6292_v40  ;;  %4986 = vmatprep.subr.bf16.mxu0 %v6292_v40  ;;  %v604_v54 = vand.u32 4294901760, %v603_v56  ;;  %v491_v8 = vsub.f32 %v6285_v32, %v9123_v25  ;;  %v9126_v52 = vand.u32 4294901760, %v6304_v16  ;;  %v6315_v17 = vsub.f32 %v133_v31, %v297_v49 }
  0x41   :  { %v485_v40 = vand.u32 4294901760, %v484_v30  ;;  %v610_v60 = vsub.f32 %v6298_v9, %v9127_v10  ;;  %v6320_v34 = vsub.f32 %v134_v26, %v300_v37  ;;  %v9364_v46 = vand.u32 4294901760, %v6174_v44 }
  0x42   :  { %v9365_v28 = vand.u32 4294901760, %v6190_v3  ;;  %v5021_v51 = vpack.c.bf16 %v604_v54, %v597_v50  ;;  %v492_v2 = vand.u32 4294901760, %v491_v8  ;;  %v617_v31 = vsub.f32 %v6304_v16, %v9126_v52 }
  0x43   :  { %v497_v30 = vand.u32 4294901760, %v6315_v17  ;;  %v611_v25 = vand.u32 4294901760, %v610_v60  ;;  %v504_v57 = vand.u32 4294901760, %v6320_v34  ;;  %v6334_v26 = vpack.c.bf16 %v342_v4, %v339_v45 }
  0x44   :  { %v6326_v56 = vpack.c.bf16 %v9365_v28, %v9364_v46  ;;  %v6336_v44 = vpack.c.bf16 %v294_v5, %v291_v14  ;;  %5022 = vmatprep.subr.bf16.mxu1 %v5021_v51  ;;  %v5023_v46 = vpack.c.bf16 %v492_v2, %v485_v40  ;;  %v618_v3 = vand.u32 4294901760, %v617_v31 }
  0x45   :  { %v498_v28 = vsub.f32 %v6315_v17, %v497_v30  ;;  %v6339_v8 = vpack.c.bf16 %v348_v12, %v345_v58  ;;  %v505_v50 = vsub.f32 %v6320_v34, %v504_v57  ;;  %v6343_v54 = vpack.c.bf16 %v300_v37, %v297_v49 }
  0x46   :  { %4988 = vmatpush3.bf16.msra.mxu0 %v6326_v56  ;;  %v5029_v60 = vpack.c.bf16 %v5946_v19, %v5944_v18  ;;  %5024 = vmatpush3.bf16.msra.mxu1 %v5023_v46  ;;  %v5025_v51 = vpack.c.bf16 %v618_v3, %v611_v25  ;;  %v9369_v3 = vand.u32 4294901760, %v5955_v22  ;;  %v9372_v37 = vand.u32 4294901760, %v5965_v24 }
  0x47   :  { %4990 = vmatprep.subr.bf16.mxu0 %v6334_v26  ;;  %v499_v2 = vand.u32 4294901760, %v498_v28  ;;  %v506_v5 = vand.u32 4294901760, %v505_v50  ;;  %v9368_v28 = vand.u32 4294901760, %v5951_v20  ;;  %v9383_v25 = vand.u32 4294901760, %v6065_v13 }
  0x48   :  { %5026 = vmatprep.subr.bf16.mxu1 %v5025_v51  ;;  %v9371_v51 = vand.u32 4294901760, %v5960_v23  ;;  %v9387_v40 = vand.u32 4294901760, %v6112_v61 }
  0x49   :  { %v5027_v31 = vpack.c.bf16 %v506_v5, %v499_v2  ;;  %v9366_v2 = vand.u32 4294901760, %v5944_v18  ;;  %v9367_v5 = vand.u32 4294901760, %v5946_v19  ;;  %v6390_v50 = vpack.c.bf16 %v9369_v3, %v9368_v28 }
  0x4a   :  { %4992 = vmatpush3.bf16.msra.mxu0 %v6336_v44  ;;  %v6396_v49 = vpack.c.bf16 %v9372_v37, %v9371_v51  ;;  %v9374_v18 = vand.u32 4294901760, %v5974_v29  ;;  %v9375_v19 = vand.u32 4294901760, %v5982_v33  ;;  %v9378_v3 = vand.u32 4294901760, %v6034_v1 }
  0x4b   :  { %4994 = vmatprep.subr.bf16.mxu0 %v6339_v8  ;;  %v6383_v46 = vpack.c.bf16 %v9367_v5, %v9366_v2  ;;  %5028 = vmatpush3.bf16.msra.mxu1 %v5027_v31  ;;  %9370 = vst [vmem:[#allocation14_spill] sm:$0xff] %v6390_v50  ;;  %v9377_v31 = vand.u32 4294901760, %v6029_v0  ;;  %v9380_v5 = vand.u32 4294901760, %v6052_v36  ;;  %v9381_v37 = vand.u32 4294901760, %v6057_v6 }
  0x4c   :  { %9373 = vst [vmem:[#allocation15_spill] sm:$0xff] %v6396_v49  ;;  %v6402_v2 = vpack.c.bf16 %v9375_v19, %v9374_v18  ;;  %5062 = vmatprep.subr.bf16.mxu1 %v6024_v63  ;;  %v9384_v18 = vand.u32 4294901760, %v6070_v38 }
  0x4d   :  { %v6409_v28 = vpack.c.bf16 %v9378_v3, %v9377_v31  ;;  %v6415_v51 = vpack.c.bf16 %v9381_v37, %v9380_v5  ;;  %v9389_v31 = vand.u32 4294901760, %v6152_v42  ;;  %v9390_v3 = vand.u32 4294901760, %v6157_v43 }
  0x4e   :  { %4996 = vmatpush3.bf16.msra.mxu0 %v6343_v54  ;;  %9376 = vst [vmem:[#allocation16_spill] sm:$0xff] %v6402_v2  ;;  %v6421_v19 = vpack.c.bf16 %v9384_v18, %v9383_v25  ;;  %v9392_v5 = vand.u32 4294901760, %v6170_v35  ;;  %v9393_v37 = vand.u32 4294901760, %v6181_v53  ;;  %v9395_v25 = vand.u32 4294901760, %v6196_v47 }
  0x4f   :  { %5030 = vmatprep.subr.bf16.mxu0 %v5029_v60  ;;  %9379 = vst [vmem:[#allocation17_spill] sm:$0xff] %v6409_v28  ;;  %9382 = vst [vmem:[#allocation18_spill] sm:$0xff] %v6415_v51  ;;  %v9386_v60 = vand.u32 4294901760, %v6094_v15  ;;  %v6433_v58 = vpack.c.bf16 %v9390_v3, %v9389_v31  ;;  %v9396_v18 = vand.u32 4294901760, %v6201_v41  ;;  %v9401_v31 = vand.u32 4294901760, %v6267_v27 }
  0x50   :  { %9385 = vst [vmem:[#allocation19_spill] sm:$0xff] %v6421_v19  ;;  %v6439_v14 = vpack.c.bf16 %v9393_v37, %v9392_v5  ;;  %v9402_v3 = vand.u32 4294901760, %v6271_v62  ;;  %v9404_v5 = vand.u32 4294901760, %v6282_v55  ;;  %v9405_v37 = vand.u32 4294901760, %v6285_v32 }
  0x51   :  { %v6427_v12 = vpack.c.bf16 %v9387_v40, %v9386_v60  ;;  %9391 = vst [vmem:[#allocation21_spill] sm:$0xff] %v6433_v58  ;;  %v6445_v4 = vpack.c.bf16 %v9396_v18, %v9395_v25  ;;  %v9398_v40 = vand.u32 4294901760, %v6224_v48  ;;  %v9399_v60 = vand.u32 4294901760, %v6237_v59 }
  0x52   :  { %9394 = vst [vmem:[#allocation22_spill] sm:$0xff] %v6439_v14  ;;  %v6457_v52 = vpack.c.bf16 %v9402_v3, %v9401_v31  ;;  %v6463_v10 = vpack.c.bf16 %v9405_v37, %v9404_v5  ;;  %v9407_v25 = vand.u32 4294901760, %v6298_v9  ;;  %v9408_v18 = vand.u32 4294901760, %v6304_v16 }
  0x53   :  { %9388 = vst [vmem:[#allocation20_spill] sm:$0xff] %v6427_v12  ;;  %9397 = vst [vmem:[#allocation23_spill] sm:$0xff] %v6445_v4  ;;  %v6451_v45 = vpack.c.bf16 %v9399_v60, %v9398_v40  ;;  %v6471_v40 = vpack.c.bf16 %v504_v57, %v497_v30  ;;  %v29_v60 = vlaneseq  ;;  %v9132_v57 = vmov 1.0  }
  0x54   :  { %9403 = vst [vmem:[#allocation25_spill] sm:$0xff] %v6457_v52  ;;  %9406 = vst [vmem:[#allocation26_spill] sm:$0xff] %v6463_v10  ;;  %v6469_v4 = vpack.c.bf16 %v9408_v18, %v9407_v25  ;;  %v9128_v30 = vmov 0.0  }
  0x55   :  { %9400 = vst [vmem:[#allocation24_spill] sm:$0xff] %v6451_v45  ;;  %9410 = vst [vmem:[#allocation28_spill] sm:$0xff] %v6471_v40  ;;  %v6473_v45 = vand.u32 127, %v29_v60 }
  0x56   :  { %9409 = vst [vmem:[#allocation27_spill] sm:$0xff] %v6469_v4 }
  0x57   :  { %9411 = vst [vmem:[#allocation29_spill] sm:$0xff] %v6473_v45  ;;  %v6476_v31 = vadd.s32 128, %v6473_v45 }
  0x94   :  { %v6478_v3 = vpop.permute.xlu0 %39  ;;  %v6480_v52 = vpop.permute.xlu1 %45 }
  0x95   :  { %9412 = vst [vmem:[#allocation30_spill] sm:$0xff] %v6478_v3  ;;  %9413 = vst [vmem:[#allocation31_spill] sm:$0xff] %v6480_v52  ;;  %vm48_vm0 = vcmp.eq.s32.totalorder %v6476_v31, %v6478_v3  ;;  %vm47_vm1 = vcmp.eq.s32.totalorder %v6473_v45, %v6478_v3  ;;  %vm64_vm2 = vcmp.eq.s32.totalorder %v6476_v31, %v6480_v52 }
  0x96   :  { %4155 = vmatprep.mubr.msk.f32.mxu1 %vm48_vm0, %v9132_v57  ;;  %v4131_v5 = vsel %vm47_vm1, 1.0, %v9128_v30  ;;  %v4148_v37 = vsel %vm64_vm2, 1.0, %v9128_v30  ;;  %v4132_v25 = vsel %vm48_vm0, 1.0, %v9128_v30  ;;  %vm63_vm3 = vcmp.eq.s32.totalorder %v6473_v45, %v6480_v52 }
  0x97   :  { %v6506_v18 = vsub.f32 %v4131_v5, %v4131_v5  ;;  %4156 = vmatmul.mubr.msk.f32.vlgmr.msra.gmra.mrb[0].mxu1 %vm47_vm1, %v9132_v57  ;;  %v6512_v60 = vsub.f32 %v4148_v37, %v4148_v37  ;;  %v351_v40 = vsub.f32 %v4132_v25, %v4132_v25  ;;  %v4147_v4 = vsel %vm63_vm3, 1.0, %v9128_v30 }
  0x98   :  { %5064 = vmatpush3.bf16.msra.mxu1 %v6043_v7  ;;  %v6519_v10 = vpop.permute.xlu0 %42  ;;  %v6521_v14 = vsub.f32 %v4147_v4, %v4147_v4 }
  0x99   :  { %9414 = vst [vmem:[#allocation32_spill] sm:$0xff] %v6519_v10  ;;  %vm56_vm4 = vcmp.eq.s32.totalorder %v6476_v31, %v6519_v10  ;;  %5066 = vmatprep.subr.bf16.mxu1 %v6076_v39  ;;  %vm55_vm5 = vcmp.eq.s32.totalorder %v6473_v45, %v6519_v10  ;;  %v352_v5 = vand.u32 4294901760, %v351_v40  ;;  %v9415_v51 = vand.u32 4294901760, %v6506_v18  ;;  %v9420_v45 = vld [vmem:[#allocation9_spill] sm:$0xff] }
  0x9a   :  { %v4140_v25 = vsel %vm56_vm4, 1.0, %v9128_v30  ;;  %4157 = vmatprep.mubr.msk.f32.mxu1 %vm56_vm4, %v9132_v57  ;;  %v4139_v4 = vsel %vm55_vm5, 1.0, %v9128_v30  ;;  %v9416_v2 = vand.u32 4294901760, %v6512_v60  ;;  %v9418_v49 = vand.u32 4294901760, %v6521_v14 }
  0x9b   :  { %v6542_v12 = vsub.f32 %v4140_v25, %v4140_v25  ;;  %v6544_v37 = vsub.f32 %v4139_v4, %v4139_v4  ;;  %4158 = vmatmul.mubr.msk.f32.gmra.mrb[2].mxu1 %vm55_vm5, %v9132_v57  ;;  %v353_v19 = vsub.f32 %v351_v40, %v352_v5  ;;  %v359_v28 = vsub.f32 %v6506_v18, %v9415_v51 }
  0x9c   :  { %5068 = vmatpush3.bf16.msra.mxu1 %v6122_v11  ;;  %4159 = vmatprep.mubr.msk.f32.mxu1 %vm64_vm2, %v9132_v57  ;;  %v383_v51 = vsub.f32 %v6512_v60, %v9416_v2  ;;  %v389_v2 = vsub.f32 %v6521_v14, %v9418_v49  ;;  %v9423_v49 = vpack.c.bf16 %v5982_v33, %v5974_v29  ;;  %v6602_v33 = vld [vmem:[#allocation2 + $0x160] sm:$0xff] }
  0x9d   :  { %5070 = vmatprep.subr.bf16.mxu1 %v6139_v21  ;;  %v354_v4 = vand.u32 4294901760, %v353_v19  ;;  %v360_v30 = vand.u32 4294901760, %v359_v28  ;;  %v9138_v58 = vand.u32 4294901760, %v6542_v12  ;;  %v9139_v10 = vand.u32 4294901760, %v6544_v37  ;;  %v9417_v19 = vld [vmem:[#allocation8_spill] sm:$0xff] }
  0x9e   :  { %v390_v50 = vand.u32 4294901760, %v389_v2  ;;  %v9429_v29 = vpack.c.bf16 %v6070_v38, %v6065_v13  ;;  %9430 = vst [vmem:[#allocation8_spill] sm:$0xff] %v6602_v33  ;;  %v6616_v13 = vld [vmem:[#allocation2 + $0x1f0] sm:$0xff]  ;;  %v6618_v38 = vld [vmem:[#allocation2 + $0x1f8] sm:$0xff] }
  0x9f   :  { %355 = vmatprep.mubr.f32.mxu0 %v354_v4  ;;  %4160 = vmatmul.mubr.msk.f32.gmra.mrb[4].mxu1 %vm63_vm3, %v9132_v57  ;;  %v368_v25 = vsub.f32 %v6542_v12, %v9138_v58  ;;  %v374_v28 = vsub.f32 %v6544_v37, %v9139_v10  ;;  %v9419_v4 = vpack.c.bf16 %v5955_v22, %v5951_v20  ;;  %v384_v10 = vand.u32 4294901760, %v383_v51  ;;  %v9424_v20 = vld [vmem:[#allocation11_spill] sm:$0xff]  ;;  %v6657_v51 = vld [vmem:[#allocation2 + $0x108] sm:$0xff] }
  0xa0   :  { %5072 = vmatpush3.bf16.msra.mxu1 %v9417_v19  ;;  %361 = vmatmul.mubr.f32.vlgmr.msra.gmra.mrb[0].mxu0 %v360_v30  ;;  %v9421_v58 = vpack.c.bf16 %v5965_v24, %v5960_v23  ;;  %v9422_v30 = vld [vmem:[#allocation10_spill] sm:$0xff]  ;;  %v9425_v22 = vpack.c.bf16 %v6034_v1, %v6029_v0  ;;  %v9427_v23 = vpack.c.bf16 %v6057_v6, %v6052_v36  ;;  %v9428_v24 = vld [vmem:[#allocation13_spill] sm:$0xff]  ;;  %v9145_v36 = vand.u32 4294901760, %v6602_v33 }
  0xa1   :  { %5032 = vmatpush3.bf16.msra.mxu0 %v9419_v4  ;;  %897 = vmatprep.mubr.f32.mxu1 %v352_v5  ;;  %v369_v57 = vand.u32 4294901760, %v368_v25  ;;  %v375_v52 = vand.u32 4294901760, %v374_v28  ;;  %v9426_v5 = vld [vmem:[#allocation12_spill] sm:$0xff]  ;;  %v9432_v0 = vpack.c.bf16 %v6112_v61, %v6094_v15  ;;  %v9433_v1 = vpack.c.bf16 %v6157_v43, %v6152_v42  ;;  %9434 = vst [vmem:[#allocation10_spill] sm:$0xff] %v6616_v13  ;;  %v6627_v43 = vld [vmem:[#allocation2 + $0x170] sm:$0xff] }
  0xa2   :  { %5074 = vmatprep.subr.bf16.mxu1 %v9420_v45  ;;  %5034 = vmatprep.subr.bf16.mxu0 %v9421_v58  ;;  %9435 = vst [vmem:[#allocation11_spill] sm:$0xff] %v6618_v38  ;;  %v9436_v15 = vpack.c.bf16 %v6181_v53, %v6170_v35  ;;  %v9143_v61 = vand.u32 4294901760, %v6616_v13  ;;  %v9142_v42 = vand.u32 4294901760, %v6618_v38  ;;  %9437 = vst [vmem:[#allocation12_spill] sm:$0xff] %v6627_v43  ;;  %v6644_v53 = vld [vmem:[#allocation2 + $0x180] sm:$0xff] }
  0xa3   :  { %370 = vmatprep.mubr.f32.mxu0 %v369_v57  ;;  %v9439_v58 = vpack.c.bf16 %v6201_v41, %v6196_v47  ;;  %v6649_v57 = vld [vmem:[#allocation2 + $0x100] sm:$0xff]  ;;  %v9140_v41 = vand.u32 4294901760, %v6627_v43  ;;  %v9440_v25 = vpack.c.bf16 %v6237_v59, %v6224_v48  ;;  %v9441_v4 = vpack.c.bf16 %v6271_v62, %v6267_v27  ;;  %v6673_v59 = vld [vmem:[#allocation2 + $0x190] sm:$0xff] }
  0xa4   :  { %5076 = vmatpush3.bf16.msra.mxu1 %v9422_v30  ;;  %376 = vmatmul.mubr.f32.gmra.mrb[2].mxu0 %v375_v52  ;;  %v6629_v52 = vld [vmem:[#allocation2 + $0x178] sm:$0xff]  ;;  %v6662_v28 = vsub.f32 %v6616_v13, %v9143_v61  ;;  %v6667_v2 = vsub.f32 %v6618_v38, %v9142_v42  ;;  %v9159_v48 = vand.u32 4294901760, %v6644_v53  ;;  %v9443_v27 = vand.u32 4294901760, %v6542_v12 }
  0xa5   :  { %5036 = vmatpush3.bf16.msra.mxu0 %v9423_v49  ;;  %5078 = vmatprep.subr.bf16.mxu1 %v9424_v20  ;;  %9438 = vst [vmem:[#allocation13_spill] sm:$0xff] %v6629_v52  ;;  %v9141_v47 = vand.u32 4294901760, %v6629_v52  ;;  %v9156_v62 = vand.u32 4294901760, %v6657_v51  ;;  %v9446_v42 = vpack.c.bf16 %v6304_v16, %v6298_v9  ;;  %v9451_v16 = vand.u32 4294901760, %v6512_v60 }
  0xa6   :  { %385 = vmatprep.mubr.f32.mxu0 %v384_v10  ;;  %5038 = vmatprep.subr.bf16.mxu0 %v9425_v22  ;;  %v6604_v10 = vld [vmem:[#allocation2 + $0x168] sm:$0xff]  ;;  %v6721_v61 = vsub.f32 %v6644_v53, %v9159_v48  ;;  %v9463_v48 = vld [vmem:[#allocation15_spill] sm:$0xff] }
  0xa7   :  { %9431 = vst [vmem:[#allocation9_spill] sm:$0xff] %v6604_v10  ;;  %v9144_v6 = vand.u32 4294901760, %v6604_v10 }
  0xa8   :  { %5080 = vmatpush3.bf16.msra.mxu1 %v9426_v5  ;;  %391 = vmatmul.mubr.f32.gmra.mrb[4].mxu0 %v390_v50  ;;  %v6637_v50 = vsub.f32 %v6602_v33, %v9145_v36  ;;  %9447 = vst [vmem:[#allocation34_spill] sm:$0xff] %v6721_v61 }
  0xa9   :  { %5040 = vmatpush3.bf16.msra.mxu0 %v9427_v23  ;;  %772 = vmatprep.mubr.f32.mxu0 %v351_v40  ;;  %v6642_v35 = vsub.f32 %v6604_v10, %v9144_v6  ;;  %v6647_v40 = vld [vmem:[#allocation2 + $0x188] sm:$0xff]  ;;  %v9442_v23 = vand.u32 4294901760, %v6506_v18  ;;  %v6751_v6 = vld [vmem:[#allocation2 + $0x1a0] sm:$0xff] }
  0xaa   :  { %5082 = vmatprep.subr.bf16.mxu1 %v9428_v24  ;;  %5042 = vmatprep.subr.bf16.mxu0 %v9429_v29  ;;  %v9149_v49 = vand.u32 4294901760, %v6637_v50  ;;  %v9158_v29 = vand.u32 4294901760, %v6647_v40 }
  0xab   :  { %v9148_v22 = vand.u32 4294901760, %v6642_v35 }
  0xac   :  { %5084 = vmatpush3.bf16.msra.mxu1 %v6326_v56 }
  0xad   :  { %5044 = vmatpush3.bf16.msra.mxu0 %v9432_v0  ;;  %5086 = vmatprep.subr.bf16.mxu1 %v6334_v26  ;;  %v9157_v0 = vand.u32 4294901760, %v6649_v57 }
  0xae   :  { %5046 = vmatprep.subr.bf16.mxu0 %v9433_v1  ;;  %v6687_v1 = vld [vmem:[#allocation2 + $0x110] sm:$0xff] }
  0xb0   :  { %5088 = vmatpush3.bf16.msra.mxu1 %v6336_v44 }
  0xb1   :  { %5048 = vmatpush3.bf16.msra.mxu0 %v9436_v15  ;;  %5090 = vmatprep.subr.bf16.mxu1 %v6339_v8  ;;  %v6689_v15 = vld [vmem:[#allocation2 + $0x118] sm:$0xff] }
  0xb2   :  { %5050 = vmatprep.subr.bf16.mxu0 %v9439_v58  ;;  %v6694_v58 = vsub.f32 %v6627_v43, %v9140_v41  ;;  %v9147_v41 = vand.u32 4294901760, %v6662_v28 }
  0xb4   :  { %5092 = vmatpush3.bf16.msra.mxu1 %v6343_v54  ;;  %v9152_v36 = vand.u32 4294901760, %v6694_v58 }
  0xb5   :  { %5052 = vmatpush3.bf16.msra.mxu0 %v9440_v25  ;;  %5126 = vmatprep.subr.bf16.mxu1 %v6024_v63  ;;  %v6675_v63 = vld [vmem:[#allocation2 + $0x198] sm:$0xff]  ;;  %v6699_v25 = vsub.f32 %v6629_v52, %v9141_v47  ;;  %v9146_v47 = vand.u32 4294901760, %v6667_v2  ;;  %v9501_v52 = vld [vmem:[#allocation22_spill] sm:$0xff] }
  0xb6   :  { %5054 = vmatprep.subr.bf16.mxu0 %v9441_v4  ;;  %v9445_v4 = vpack.c.bf16 %v6285_v32, %v6282_v55  ;;  %v9448_v55 = vand.u32 4294901760, %v6544_v37  ;;  %v9153_v32 = vand.u32 4294901760, %v6687_v1 }
  0xb7   :  { %901 = vmatmul.mubr.f32.vlgmr.msra.gmra.mrb[6].mxu1 %v9442_v23  ;;  %v9155_v23 = vand.u32 4294901760, %v6673_v59  ;;  %v6736_v9 = vpack.c.bf16 %v9146_v47, %v9147_v41  ;;  %v9151_v47 = vand.u32 4294901760, %v6699_v25 }
  0xb8   :  { %908 = vmatprep.mubr.f32.mxu1 %v9443_v27  ;;  %5128 = vmatpush3.bf16.msra.mxu1 %v6043_v7  ;;  %v6705_v7 = vpack.c.bf16 %v9148_v22, %v9149_v49  ;;  %v9150_v27 = vand.u32 4294901760, %v6675_v63  ;;  %v6770_v22 = vld [vmem:[#allocation2 + $0x1a8] sm:$0xff]  ;;  %v9161_v49 = vand.u32 4294901760, %v6751_v6 }
  0xb9   :  { %5056 = vmatpush3.bf16.msra.mxu0 %v9445_v4  ;;  %5130 = vmatprep.subr.bf16.mxu1 %v6076_v39  ;;  %v6728_v39 = vsub.f32 %v6647_v40, %v9158_v29  ;;  %v9154_v4 = vand.u32 4294901760, %v6689_v15  ;;  %9450 = vst [vmem:[#allocation36_spill] sm:$0xff] %v6736_v9  ;;  %v6812_v29 = vld [vmem:[#allocation2 + $0x1b0] sm:$0xff] }
  0xba   :  { %9444 = vst [vmem:[#allocation33_spill] sm:$0xff] %v6705_v7  ;;  %5058 = vmatprep.subr.bf16.mxu0 %v9446_v42  ;;  %v6744_v42 = vsub.f32 %v6649_v57, %v9157_v0  ;;  %v6767_v41 = vsub.f32 %v6675_v63, %v9150_v27  ;;  %v6792_v27 = vld [vmem:[#allocation2 + $0x120] sm:$0xff]  ;;  %v6868_v7 = vld [vmem:[#allocation2 + $0x130] sm:$0xff] }
  0xbb   :  { %912 = vmatmul.mubr.f32.gmra.mrb[8].mxu1 %v9448_v55  ;;  %9449 = vst [vmem:[#allocation35_spill] sm:$0xff] %v6728_v39  ;;  %v6749_v55 = vsub.f32 %v6657_v51, %v9156_v62  ;;  %v9462_v62 = vld [vmem:[#allocation14_spill] sm:$0xff]  ;;  %v9168_v0 = vand.u32 4294901760, %v6792_v27 }
  0xbc   :  { %919 = vmatprep.mubr.f32.mxu1 %v9451_v16  ;;  %5132 = vmatpush3.bf16.msra.mxu1 %v6122_v11  ;;  %9452 = vst [vmem:[#allocation37_spill] sm:$0xff] %v6744_v42  ;;  %v9454_v16 = vpack.c.bf16 %v6320_v34, %v6315_v17  ;;  %v6762_v11 = vsub.f32 %v6673_v59, %v9155_v23  ;;  %9456 = vst [vmem:[#allocation40_spill] sm:$0xff] %v6767_v41  ;;  %v9160_v34 = vand.u32 4294901760, %v6721_v61 }
  0xbd   :  { %9453 = vst [vmem:[#allocation38_spill] sm:$0xff] %v6749_v55  ;;  %5134 = vmatprep.subr.bf16.mxu1 %v6139_v21  ;;  %v6776_v17 = vpack.c.bf16 %v9151_v47, %v9152_v36  ;;  %v9458_v21 = vand.u32 4294901760, %v6521_v14  ;;  %v9163_v47 = vand.u32 4294901760, %v6744_v42  ;;  %v9164_v36 = vand.u32 4294901760, %v6749_v55 }
  0xbe   :  { %5060 = vmatpush3.bf16.msra.mxu0 %v9454_v16  ;;  %9455 = vst [vmem:[#allocation39_spill] sm:$0xff] %v6762_v11  ;;  %v6784_v16 = vsub.f32 %v6687_v1, %v9153_v32  ;;  %v9461_v32 = vmov 1.0  }
  0xbf   :  { %5094 = vmatprep.subr.bf16.mxu0 %v6383_v46  ;;  %9457 = vst [vmem:[#allocation41_spill] sm:$0xff] %v6776_v17  ;;  %923 = vmatmul.mubr.f32.gmra.mrb[10].mxu1 %v9458_v21  ;;  %v6789_v46 = vsub.f32 %v6689_v15, %v9154_v4  ;;  %v9162_v21 = vand.u32 4294901760, %v6728_v39  ;;  %v9165_v4 = vand.u32 4294901760, %v6762_v11 }
  0xc0   :  { %9459 = vst [vmem:[#allocation42_spill] sm:$0xff] %v6784_v16  ;;  %5136 = vmatpush3.bf16.msra.mxu1 %v9417_v19  ;;  %4167 = vmatprep.mubr.msk.f32.mxu1 %vm48_vm0, %v9461_v32  ;;  %v6807_v19 = vld [vmem:[#allocation2 + $0x128] sm:$0xff] }
  0xc1   :  { %9460 = vst [vmem:[#allocation43_spill] sm:$0xff] %v6789_v46  ;;  %775 = vmatmul.mubr.f32.vlgmr.msra.gmra.mrb[6].mxu0 %v6506_v18  ;;  %5138 = vmatprep.subr.bf16.mxu1 %v9420_v45  ;;  %v6825_v45 = vld [vmem:[#allocation2 + $0x1b8] sm:$0xff]  ;;  %v1381_v18 = vsub.f32 %v6749_v55, %v9164_v36 }
  0xc2   :  { %781 = vmatprep.mubr.f32.mxu0 %v6542_v12  ;;  %5096 = vmatpush3.bf16.msra.mxu0 %v9462_v62  ;;  %v1486_v12 = vsub.f32 %v6721_v61, %v9160_v34  ;;  %v6823_v62 = vsub.f32 %v6751_v6, %v9161_v49  ;;  %v1374_v34 = vsub.f32 %v6744_v42, %v9163_v47  ;;  %v9466_v47 = vand.u32 4294901760, %v6770_v22  ;;  %v9468_v49 = vld [vmem:[#allocation16_spill] sm:$0xff] }
  0xc3   :  { %5098 = vmatprep.subr.bf16.mxu0 %v9463_v48  ;;  %v1493_v48 = vsub.f32 %v6728_v39, %v9162_v21 }
  0xc4   :  { %9464 = vst [vmem:[#allocation14_spill] sm:$0xff] %v6823_v62  ;;  %5140 = vmatpush3.bf16.msra.mxu1 %v9422_v30  ;;  %v9465_v30 = vand.u32 4294901760, %v6767_v41  ;;  %v6850_v23 = vsub.f32 %v6770_v22, %v9466_v47  ;;  %v1487_v17 = vand.u32 4294901760, %v1486_v12  ;;  %v9472_v47 = vand.u32 4294901760, %v6789_v46 }
  0xc5   :  { %784 = vmatmul.mubr.f32.gmra.mrb[8].mxu0 %v6544_v37  ;;  %5142 = vmatprep.subr.bf16.mxu1 %v9424_v20  ;;  %v1500_v37 = vsub.f32 %v6762_v11, %v9165_v4  ;;  %v9470_v4 = vld [vmem:[#allocation17_spill] sm:$0xff]  ;;  %v1375_v12 = vand.u32 4294901760, %v1374_v34  ;;  %v9473_v20 = vand.u32 4294901760, %v6807_v19  ;;  %v9481_v55 = vand.u32 4294901760, %v6823_v62 }
  0xc6   :  { %790 = vmatprep.mubr.f32.mxu0 %v6512_v60  ;;  %v1507_v21 = vsub.f32 %v6767_v41, %v9465_v30  ;;  %9467 = vst [vmem:[#allocation15_spill] sm:$0xff] %v6850_v23  ;;  %5100 = vmatpush3.bf16.msra.mxu0 %v9468_v49  ;;  %v6857_v60 = vsub.f32 %v6792_v27, %v9168_v0  ;;  %v9471_v30 = vand.u32 4294901760, %v6784_v16  ;;  %v6870_v41 = vld [vmem:[#allocation2 + $0x138] sm:$0xff]  ;;  %v1382_v0 = vand.u32 4294901760, %v1381_v18  ;;  %v6890_v18 = vld [vmem:[#allocation2 + $0x1c0] sm:$0xff] }
  0xc7   :  { %5102 = vmatprep.subr.bf16.mxu0 %v9470_v4  ;;  %v1395_v36 = vsub.f32 %v6789_v46, %v9472_v47  ;;  %v1494_v4 = vand.u32 4294901760, %v1493_v48  ;;  %v1501_v47 = vand.u32 4294901760, %v1500_v37  ;;  %v9477_v48 = vld [vmem:[#allocation18_spill] sm:$0xff]  ;;  %v9478_v46 = vand.u32 4294901760, %v6825_v45  ;;  %v6901_v37 = vld [vmem:[#allocation2 + $0x1c8] sm:$0xff] }
  0xc8   :  { %9469 = vst [vmem:[#allocation16_spill] sm:$0xff] %v6857_v60  ;;  %v1388_v9 = vsub.f32 %v6784_v16, %v9471_v30  ;;  %5144 = vmatpush3.bf16.msra.mxu1 %v9426_v5  ;;  %v6877_v30 = vsub.f32 %v6807_v19, %v9473_v20  ;;  %v1508_v49 = vand.u32 4294901760, %v1507_v21  ;;  %v9475_v5 = vand.u32 4294901760, %v6812_v29  ;;  %v9482_v20 = vld [vmem:[#allocation29_spill] sm:$0xff] }
  0xc9   :  { %793 = vmatmul.mubr.f32.gmra.mrb[10].mxu0 %v6521_v14  ;;  %5146 = vmatprep.subr.bf16.mxu1 %v9428_v24  ;;  %v6897_v16 = vsub.f32 %v6825_v45, %v9478_v46  ;;  %v9480_v14 = vld [vmem:[#allocation19_spill] sm:$0xff]  ;;  %v1396_v11 = vand.u32 4294901760, %v1395_v36  ;;  %v6910_v42 = vadd.s32 384, %v9482_v20  ;;  %v5189_v46 = vpack.c.bf16 %v1494_v4, %v1487_v17  ;;  %v6919_v36 = vld [vmem:[#allocation2 + $0x148] sm:$0xff]  ;;  %v6931_v17 = vld [vmem:[#allocation2 + $0x1d0] sm:$0xff] }
  0xca   :  { %9474 = vst [vmem:[#allocation17_spill] sm:$0xff] %v6877_v30  ;;  %4161 = vmatprep.mubr.msk.f32.mxu0 %vm48_vm0, %v9461_v32  ;;  %v6888_v34 = vsub.f32 %v6812_v29, %v9475_v5  ;;  %5104 = vmatpush3.bf16.msra.mxu0 %v9477_v48  ;;  %v1389_v5 = vand.u32 4294901760, %v1388_v9  ;;  %v6907_v48 = vsub.f32 %v6823_v62, %v9481_v55  ;;  %v9483_v55 = vand.u32 4294901760, %v6850_v23  ;;  %v6933_v4 = vld [vmem:[#allocation2 + $0x1d8] sm:$0xff]  ;;  %v9490_v21 = vld [vmem:[#allocation21_spill] sm:$0xff] }
  0xcb   :  { %9479 = vst [vmem:[#allocation18_spill] sm:$0xff] %v6897_v16  ;;  %5106 = vmatprep.subr.bf16.mxu0 %v9480_v14  ;;  %v6913_v24 = vpack.c.bf16 %v1382_v0, %v1375_v12  ;;  %v6917_v14 = vld [vmem:[#allocation2 + $0x140] sm:$0xff]  ;;  %v6922_v9 = vpack.c.bf16 %v1508_v49, %v1501_v47  ;;  %v9485_v39 = vand.u32 4294901760, %v6857_v60  ;;  %v9486_v47 = vand.u32 4294901760, %v6868_v7 }
  0xcc   :  { %9476 = vst [vmem:[#allocation44_spill] sm:$0xff] %v6888_v34  ;;  %5148 = vmatpush3.bf16.msra.mxu1 %v6326_v56  ;;  %v6927_v62 = vsub.f32 %v6850_v23, %v9483_v55  ;;  %v9484_v12 = vld [vmem:[#allocation20_spill] sm:$0xff]  ;;  %v9488_v0 = vand.u32 4294901760, %v6870_v41  ;;  %v1515_v23 = vand.u32 4294901760, %v6907_v48  ;;  %v9492_v61 = vand.u32 4294901760, %v6890_v18  ;;  %v6971_v48 = vld [vmem:[#allocation2 + $0x158] sm:$0xff] }
  0xcd   :  { %5150 = vmatprep.subr.bf16.mxu1 %v6334_v26  ;;  %v6939_v26 = vsub.f32 %v6857_v60, %v9485_v39  ;;  %v6945_v55 = vsub.f32 %v6868_v7, %v9486_v47  ;;  %v9491_v47 = vand.u32 4294901760, %v6877_v30  ;;  %9495 = vst [vmem:[#allocation46_spill] sm:$0xff] %v6971_v48  ;;  %v9496_v49 = vand.u32 4294901760, %v6644_v53 }
  0xce   :  { %5108 = vmatpush3.bf16.msra.mxu0 %v9484_v12  ;;  %v6950_v56 = vsub.f32 %v6870_v41, %v9488_v0  ;;  %v6953_v12 = vpack.c.bf16 %v1396_v11, %v1389_v5  ;;  %v6965_v0 = vsub.f32 %v6890_v18, %v9492_v61  ;;  %v6969_v5 = vld [vmem:[#allocation2 + $0x150] sm:$0xff]  ;;  %v9498_v61 = vand.u32 4294901760, %v6888_v34 }
  0xcf   :  { %9487 = vst [vmem:[#allocation19_spill] sm:$0xff] %v6945_v55  ;;  %5110 = vmatprep.subr.bf16.mxu0 %v9490_v21  ;;  %v1409_v60 = vsub.f32 %v6877_v30, %v9491_v47  ;;  %9494 = vst [vmem:[#allocation45_spill] sm:$0xff] %v6969_v5  ;;  %v9497_v47 = vand.u32 4294901760, %v6647_v40  ;;  %v9499_v21 = vand.u32 4294901760, %v6901_v37  ;;  %vm50_vm6 = vcmp.eq.s32.totalorder %v6910_v42, %v6478_v3 }
  0xd0   :  { %9489 = vst [vmem:[#allocation20_spill] sm:$0xff] %v6950_v56  ;;  %5152 = vmatpush3.bf16.msra.mxu1 %v6336_v44  ;;  %9493 = vst [vmem:[#allocation21_spill] sm:$0xff] %v6965_v0  ;;  %v1522_v44 = vand.u32 4294901760, %v6927_v62  ;;  %v1528_v11 = vsub.f32 %v6888_v34, %v9498_v61  ;;  %v9502_v62 = vand.u32 4294901760, %v6897_v16  ;;  %v6998_v61 = vld [vmem:[#allocation2 + $0x1e8] sm:$0xff]  ;;  %v9504_v34 = vld [vmem:[#allocation23_spill] sm:$0xff] }
  0xd1   :  { %5154 = vmatprep.subr.bf16.mxu1 %v6339_v8  ;;  %v6979_v39 = vpack.c.bf16 %v9497_v47, %v9496_v49  ;;  %v6987_v30 = vsub.f32 %v6901_v37, %v9499_v21  ;;  %v1403_v8 = vand.u32 4294901760, %v6939_v26  ;;  %v6996_v47 = vld [vmem:[#allocation2 + $0x1e0] sm:$0xff]  ;;  %9503 = vst [vmem:[#allocation22_spill] sm:$0xff] %v6998_v61  ;;  %v9505_v21 = vand.u32 4294901760, %v6917_v14 }
  0xd2   :  { %5112 = vmatpush3.bf16.msra.mxu0 %v9501_v52  ;;  %v1535_v53 = vsub.f32 %v6897_v16, %v9502_v62  ;;  %v9507_v26 = vand.u32 4294901760, %v6919_v36  ;;  %v1410_v40 = vand.u32 4294901760, %v1409_v60  ;;  %v9513_v60 = vld [vmem:[#allocation24_spill] sm:$0xff]  ;;  %v9514_v16 = vand.u32 4294901760, %v6945_v55 }
  0xd3   :  { %9500 = vst [vmem:[#allocation47_spill] sm:$0xff] %v6987_v30  ;;  %5114 = vmatprep.subr.bf16.mxu0 %v9504_v34  ;;  %v7004_v52 = vsub.f32 %v6917_v14, %v9505_v21  ;;  %v9509_v34 = vand.u32 4294901760, %v6931_v17  ;;  %v9511_v21 = vand.u32 4294901760, %v6933_v4  ;;  %v9519_v62 = vld [vmem:[#allocation32_spill] sm:$0xff]  ;;  %v9522_v33 = vand.u32 4294901760, %v6987_v30 }
  0xd4   :  { %v7009_v43 = vsub.f32 %v6919_v36, %v9507_v26  ;;  %5156 = vmatpush3.bf16.msra.mxu1 %v6343_v54  ;;  %v1529_v26 = vand.u32 4294901760, %v1528_v11  ;;  %v1416_v10 = vsub.f32 %v6945_v55, %v9514_v16  ;;  %v9516_v11 = vld [vmem:[#allocation25_spill] sm:$0xff]  ;;  %v9518_v16 = vand.u32 4294901760, %v6971_v48 }
  0xd5   :  { %9506 = vst [vmem:[#allocation23_spill] sm:$0xff] %v7004_v52  ;;  %v7018_v38 = vsub.f32 %v6931_v17, %v9509_v34  ;;  %v7023_v13 = vsub.f32 %v6933_v4, %v9511_v21  ;;  %5190 = vmatprep.subr.bf16.mxu1 %v5189_v46  ;;  %v1536_v34 = vand.u32 4294901760, %v1535_v53  ;;  %v9515_v21 = vand.u32 4294901760, %v6950_v56 }
  0xd6   :  { %9508 = vst [vmem:[#allocation48_spill] sm:$0xff] %v7009_v43  ;;  %5116 = vmatpush3.bf16.msra.mxu0 %v9513_v60  ;;  %v9517_v53 = vand.u32 4294901760, %v6969_v5  ;;  %v9520_v54 = vand.u32 4294901760, %v6965_v0  ;;  %vm58_vm8 = vcmp.eq.s32.totalorder %v6910_v42, %v9519_v62 }
  0xd7   :  { %9510 = vst [vmem:[#allocation49_spill] sm:$0xff] %v7018_v38  ;;  %9512 = vst [vmem:[#allocation50_spill] sm:$0xff] %v7023_v13  ;;  %v1423_v46 = vsub.f32 %v6950_v56, %v9515_v21  ;;  %4168 = vmatmul.mubr.msk.f32.vlgmr.msra.gmra.mrb[12].mxu1 %vm47_vm1, %v9461_v32  ;;  %5118 = vmatprep.subr.bf16.mxu0 %v9516_v11  ;;  %v7052_v21 = vsub.f32 %v6971_v48, %v9518_v16  ;;  %v9521_v16 = vmov 0.0   ;;  %v1417_v48 = vand.u32 4294901760, %v1416_v10 }
  0xd8   :  { %v7047_v49 = vsub.f32 %v6969_v5, %v9517_v53  ;;  %4169 = vmatprep.mubr.msk.f32.mxu1 %vm56_vm4, %v9461_v32  ;;  %5192 = vmatpush3.bf16.msra.mxu1 %v6913_v24  ;;  %v5197_v11 = vpack.c.bf16 %v1522_v44, %v1515_v23  ;;  %v1542_v60 = vsub.f32 %v6965_v0, %v9520_v54  ;;  %v4134_v55 = vsel %vm50_vm6, 1.0, %v9521_v16 }
  0xd9   :  { %5194 = vmatprep.subr.bf16.mxu1 %v6922_v9  ;;  %v1549_v24 = vsub.f32 %v6987_v30, %v9522_v33  ;;  %v9523_v23 = vand.u32 4294901760, %v6996_v47  ;;  %v9524_v54 = vand.u32 4294901760, %v6998_v61  ;;  %v9526_v9 = vld [vmem:[#allocation26_spill] sm:$0xff]  ;;  %v5199_v53 = vpack.c.bf16 %v1410_v40, %v1403_v8  ;;  %v9527_v33 = vld [vmem:[#allocation27_spill] sm:$0xff] }
  0xda   :  { %5120 = vmatpush3.bf16.msra.mxu0 %v9526_v9  ;;  %v5201_v0 = vpack.c.bf16 %v1536_v34, %v1529_v26  ;;  %v1424_v5 = vand.u32 4294901760, %v1423_v46  ;;  %v9530_v40 = vld [vmem:[#allocation31_spill] sm:$0xff]  ;;  %v7101_v26 = vsub.f32 %v4134_v55, %v4134_v55  ;;  %v9531_v34 = vand.u32 4294901760, %v7018_v38 }
  0xdb   :  { %v7075_v44 = vsub.f32 %v6996_v47, %v9523_v23  ;;  %v7080_v56 = vsub.f32 %v6998_v61, %v9524_v54  ;;  %4170 = vmatmul.mubr.msk.f32.gmra.mrb[14].mxu1 %vm55_vm5, %v9461_v32  ;;  %5122 = vmatprep.subr.bf16.mxu0 %v9527_v33  ;;  %v9528_v23 = vand.u32 4294901760, %v7004_v52  ;;  %v9529_v54 = vand.u32 4294901760, %v7009_v43 }
  0xdc   :  { %4171 = vmatprep.mubr.msk.f32.mxu1 %vm64_vm2, %v9461_v32  ;;  %5196 = vmatpush3.bf16.msra.mxu1 %v6953_v12  ;;  %v1556_v46 = vsub.f32 %v7018_v38, %v9531_v34  ;;  %v9532_v9 = vand.u32 4294901760, %v7023_v13  ;;  %v9534_v55 = vand.u32 4294901760, %v6649_v57  ;;  %v9535_v12 = vand.u32 4294901760, %v6657_v51 }
  0xdd   :  { %9525 = vst [vmem:[#allocation24_spill] sm:$0xff] %v7080_v56  ;;  %v1430_v30 = vsub.f32 %v7004_v52, %v9528_v23  ;;  %v1437_v61 = vsub.f32 %v7009_v43, %v9529_v54  ;;  %5198 = vmatprep.subr.bf16.mxu1 %v5197_v11  ;;  %v1543_v23 = vand.u32 4294901760, %v1542_v60  ;;  %v1550_v54 = vand.u32 4294901760, %v1549_v24  ;;  %v9533_v43 = vld [vmem:[#allocation28_spill] sm:$0xff] }
  0xde   :  { %v1563_v33 = vsub.f32 %v7023_v13, %v9532_v9  ;;  %v9219_v10 = vand.u32 4294901760, %v7075_v44  ;;  %v9218_v8 = vand.u32 4294901760, %v7080_v56  ;;  %5124 = vmatpush3.bf16.msra.mxu0 %v9533_v43  ;;  %v7116_v52 = vpack.c.bf16 %v9535_v12, %v9534_v55 }
  0xdf   :  { %v9536_v34 = vand.u32 4294901760, %v6673_v59  ;;  %v9537_v38 = vand.u32 4294901760, %v6675_v63  ;;  %4172 = vmatmul.mubr.msk.f32.gmra.mrb[16].mxu1 %vm63_vm3, %v9461_v32  ;;  %5158 = vmatprep.subr.bf16.mxu0 %v6979_v39  ;;  %v5203_v43 = vpack.c.bf16 %v1424_v5, %v1417_v48  ;;  %v1431_v60 = vand.u32 4294901760, %v1430_v30 }
  0xe0   :  { %v9538_v57 = vand.u32 4294901760, %v7047_v49  ;;  %v9539_v11 = vand.u32 4294901760, %v7052_v21  ;;  %5200 = vmatpush3.bf16.msra.mxu1 %v5199_v53  ;;  %4173 = vmatprep.mubr.msk.f32.mxu1 %vm50_vm6, %v9461_v32  ;;  %v1326_v63 = vand.u32 4294901760, %v7101_v26  ;;  %v1557_v24 = vand.u32 4294901760, %v1556_v46 }
  0xe1   :  { %v7122_v9 = vpack.c.bf16 %v9537_v38, %v9536_v34  ;;  %v1438_v38 = vand.u32 4294901760, %v1437_v61  ;;  %v1564_v5 = vand.u32 4294901760, %v1563_v33  ;;  %4162 = vmatmul.mubr.msk.f32.vlgmr.msra.gmra.mrb[12].mxu0 %vm47_vm1, %v9461_v32  ;;  %5202 = vmatprep.subr.bf16.mxu1 %v5201_v0  ;;  %v5205_v30 = vpack.c.bf16 %v1550_v54, %v1543_v23 }
  0xe2   :  { %v1444_v51 = vsub.f32 %v7047_v49, %v9538_v57  ;;  %v1451_v59 = vsub.f32 %v7052_v21, %v9539_v11  ;;  %v1570_v48 = vsub.f32 %v7075_v44, %v9219_v10  ;;  %v1577_v53 = vsub.f32 %v7080_v56, %v9218_v8  ;;  %4163 = vmatprep.mubr.msk.f32.mxu0 %vm56_vm4, %v9461_v32  ;;  %v9596_v8 = vld [vmem:[#allocation42_spill] sm:$0xff]  ;;  %v9597_v10 = vld [vmem:[#allocation43_spill] sm:$0xff] }
  0xe3   :  { %5160 = vmatpush3.bf16.msra.mxu0 %v7116_v52  ;;  %v9540_v61 = vand.u32 4294901760, %v6687_v1  ;;  %v9541_v0 = vand.u32 4294901760, %v6689_v15  ;;  %v9542_v33 = vand.u32 4294901760, %v6751_v6  ;;  %v9543_v23 = vand.u32 4294901760, %v6770_v22 }
  0xe4   :  { %5162 = vmatprep.subr.bf16.mxu0 %v7122_v9  ;;  %v1445_v55 = vand.u32 4294901760, %v1444_v51  ;;  %v1452_v12 = vand.u32 4294901760, %v1451_v59  ;;  %v9544_v34 = vand.u32 4294901760, %v6637_v50  ;;  %5204 = vmatpush3.bf16.msra.mxu1 %v5203_v43  ;;  %v5207_v1 = vpack.c.bf16 %v1438_v38, %v1431_v60 }
  0xe5   :  { %v7159_v46 = vpack.c.bf16 %v9541_v0, %v9540_v61  ;;  %v7166_v54 = vpack.c.bf16 %v9543_v23, %v9542_v33  ;;  %v1327_v15 = vsub.f32 %v7101_v26, %v1326_v63  ;;  %v5209_v11 = vpack.c.bf16 %v1564_v5, %v1557_v24  ;;  %4164 = vmatmul.mubr.msk.f32.gmra.mrb[14].mxu0 %vm55_vm5, %v9461_v32 }
  0xe6   :  { %v1458_v57 = vsub.f32 %v6637_v50, %v9544_v34  ;;  %v9545_v61 = vand.u32 4294901760, %v6642_v35  ;;  %5206 = vmatprep.subr.bf16.mxu1 %v5205_v30  ;;  %v1571_v22 = vand.u32 4294901760, %v1570_v48  ;;  %v1578_v51 = vand.u32 4294901760, %v1577_v53  ;;  %4165 = vmatprep.mubr.msk.f32.mxu0 %vm64_vm2, %v9461_v32 }
  0xe7   :  { %v9546_v43 = vand.u32 4294901760, %v6662_v28  ;;  %v9547_v59 = vand.u32 4294901760, %v6667_v2  ;;  %5164 = vmatpush3.bf16.msra.mxu0 %v7159_v46  ;;  %v9548_v24 = vand.u32 4294901760, %v6792_v27  ;;  %v9549_v5 = vand.u32 4294901760, %v6807_v19 }
  0xe8   :  { %v1465_v6 = vsub.f32 %v6642_v35, %v9545_v61  ;;  %5166 = vmatprep.subr.bf16.mxu0 %v7166_v54  ;;  %v9550_v48 = vand.u32 4294901760, %v6812_v29  ;;  %v9551_v53 = vand.u32 4294901760, %v6825_v45  ;;  %v5211_v33 = vpack.c.bf16 %v1452_v12, %v1445_v55  ;;  %5208 = vmatpush3.bf16.msra.mxu1 %v5207_v1 }
  0xe9   :  { %v1584_v60 = vsub.f32 %v6662_v28, %v9546_v43  ;;  %v1591_v38 = vsub.f32 %v6667_v2, %v9547_v59  ;;  %v7196_v30 = vpack.c.bf16 %v9549_v5, %v9548_v24  ;;  %v1459_v23 = vand.u32 4294901760, %v1458_v57  ;;  %4166 = vmatmul.mubr.msk.f32.gmra.mrb[16].mxu0 %vm63_vm3, %v9461_v32  ;;  %5210 = vmatprep.subr.bf16.mxu1 %v5209_v11 }
  0xea   :  { %v7203_v0 = vpack.c.bf16 %v9551_v53, %v9550_v48  ;;  %v1328_v31 = vand.u32 4294901760, %v1327_v15  ;;  %v1466_v34 = vand.u32 4294901760, %v1465_v6  ;;  %v9552_v61 = vand.u32 4294901760, %v6694_v58  ;;  %v9568_v53 = vld [vmem:[#allocation46_spill] sm:$0xff] }
  0xeb   :  { %v9553_v19 = vand.u32 4294901760, %v6699_v25  ;;  %v5213_v29 = vpack.c.bf16 %v1578_v51, %v1571_v22  ;;  %v1585_v45 = vand.u32 4294901760, %v1584_v60  ;;  %v1592_v55 = vand.u32 4294901760, %v1591_v38  ;;  %5168 = vmatpush3.bf16.msra.mxu0 %v7196_v30 }
  0xec   :  { %v1472_v27 = vsub.f32 %v6694_v58, %v9552_v61  ;;  %v7216_v12 = vadd.s32 256, %v9482_v20  ;;  %1329 = vmatprep.mubr.f32.mxu0 %v1328_v31  ;;  %v9555_v57 = vand.u32 4294901760, %v6868_v7  ;;  %v9556_v1 = vand.u32 4294901760, %v6870_v41  ;;  %5170 = vmatprep.subr.bf16.mxu0 %v7203_v0  ;;  %v9572_v61 = vld [vmem:[#allocation22_spill] sm:$0xff]  ;;  %v9608_v20 = vld [vmem:[#allocation44_spill] sm:$0xff] }
  0xed   :  { %v1479_v43 = vsub.f32 %v6699_v25, %v9553_v19  ;;  %v9557_v6 = vand.u32 4294901760, %v6890_v18  ;;  %v9558_v11 = vand.u32 4294901760, %v6901_v37  ;;  %5212 = vmatpush3.bf16.msra.mxu1 %v5211_v33  ;;  %v5215_v51 = vpack.c.bf16 %v1466_v34, %v1459_v23 }
  0xee   :  { %9554 = vst [vmem:[#allocation25_spill] sm:$0xff] %v7216_v12  ;;  %v7223_v15 = vpack.c.bf16 %v9556_v1, %v9555_v57  ;;  %v1473_v60 = vand.u32 4294901760, %v1472_v27  ;;  %5214 = vmatprep.subr.bf16.mxu1 %v5213_v29  ;;  %v5217_v38 = vpack.c.bf16 %v1592_v55, %v1585_v45  ;;  %vm49_vm7 = vcmp.eq.s32.totalorder %v7216_v12, %v6478_v3  ;;  %v9577_v57 = vld [vmem:[#allocation9_spill] sm:$0xff] }
  0xef   :  { %v7230_v22 = vpack.c.bf16 %v9558_v11, %v9557_v6  ;;  %v1480_v59 = vand.u32 4294901760, %v1479_v43  ;;  %v9560_v41 = vand.u32 4294901760, %v6917_v14  ;;  %v9561_v7 = vand.u32 4294901760, %v6919_v36 }
  0xf0   :  { %5172 = vmatpush3.bf16.msra.mxu0 %v7223_v15  ;;  %v9563_v37 = vand.u32 4294901760, %v6931_v17  ;;  %v9564_v24 = vand.u32 4294901760, %v6933_v4  ;;  %v4133_v14 = vsel %vm49_vm7, 1.0, %v9521_v16  ;;  %v4142_v36 = vsel %vm58_vm8, 1.0, %v9521_v16  ;;  %v9566_v17 = vld [vmem:[#allocation45_spill] sm:$0xff] }
  0xf1   :  { %9559 = vst [vmem:[#allocation26_spill] sm:$0xff] %v7230_v22  ;;  %v7239_v18 = vpack.c.bf16 %v9561_v7, %v9560_v41  ;;  %5174 = vmatprep.subr.bf16.mxu0 %v7230_v22  ;;  %5216 = vmatpush3.bf16.msra.mxu1 %v5215_v51  ;;  %v5219_v48 = vpack.c.bf16 %v1480_v59, %v1473_v60  ;;  %v9567_v4 = vand.u32 4294901760, %v9566_v17  ;;  %v9569_v33 = vand.u32 4294901760, %v9568_v53  ;;  %v9579_v51 = vld [vmem:[#allocation10_spill] sm:$0xff]  ;;  %v9581_v59 = vld [vmem:[#allocation11_spill] sm:$0xff]  ;;  %v9585_v17 = vld [vmem:[#allocation13_spill] sm:$0xff] }
  0xf2   :  { %v7248_v5 = vpack.c.bf16 %v9564_v24, %v9563_v37  ;;  %5218 = vmatprep.subr.bf16.mxu1 %v5217_v38  ;;  %vm57_vm9 = vcmp.eq.s32.totalorder %v7216_v12, %v9519_v62  ;;  %vm66_vm10 = vcmp.eq.s32.totalorder %v6910_v42, %v9530_v40  ;;  %v7270_v31 = vsub.f32 %v4133_v14, %v4133_v14  ;;  %v9583_v14 = vld [vmem:[#allocation12_spill] sm:$0xff] }
  0xf3   :  { %9562 = vst [vmem:[#allocation27_spill] sm:$0xff] %v7239_v18  ;;  %v7265_v23 = vpack.c.bf16 %v9569_v33, %v9567_v4  ;;  %v9571_v34 = vand.u32 4294901760, %v6996_v47  ;;  %v9573_v27 = vand.u32 4294901760, %v9572_v61  ;;  %v7278_v43 = vsub.f32 %v4142_v36, %v4142_v36  ;;  %v9575_v47 = vld [vmem:[#allocation8_spill] sm:$0xff]  ;;  %v9588_v61 = vld [vmem:[#allocation34_spill] sm:$0xff] }
  0xf4   :  { %9565 = vst [vmem:[#allocation28_spill] sm:$0xff] %v7248_v5  ;;  %5176 = vmatpush3.bf16.msra.mxu0 %v7239_v18  ;;  %v4141_v29 = vsel %vm57_vm9, 1.0, %v9521_v16  ;;  %v4150_v45 = vsel %vm66_vm10, 1.0, %v9521_v16  ;;  %vm65_vm11 = vcmp.eq.s32.totalorder %v7216_v12, %v9530_v40  ;;  %v9576_v55 = vand.u32 4294901760, %v9575_v47  ;;  %v9599_v40 = vld [vmem:[#allocation14_spill] sm:$0xff]  ;;  %v7388_v62 = vld [vmem:[#allocation2 + $0x240] sm:$0xff] }
  0xf5   :  { %9570 = vst [vmem:[#allocation45_spill] sm:$0xff] %v7265_v23  ;;  %5178 = vmatprep.subr.bf16.mxu0 %v7248_v5  ;;  %v7276_v19 = vpack.c.bf16 %v9573_v27, %v9571_v34  ;;  %5220 = vmatpush3.bf16.msra.mxu1 %v5219_v48  ;;  %v9578_v1 = vand.u32 4294901760, %v9577_v57  ;;  %v7303_v11 = vsub.f32 %v4141_v29, %v4141_v29  ;;  %v9580_v60 = vand.u32 4294901760, %v9579_v51  ;;  %v9589_v27 = vld [vmem:[#allocation35_spill] sm:$0xff]  ;;  %v9590_v57 = vld [vmem:[#allocation37_spill] sm:$0xff] }
  0xf6   :  { %5254 = vmatprep.subr.bf16.mxu1 %v6979_v39  ;;  %v9582_v38 = vand.u32 4294901760, %v9581_v59  ;;  %v9222_v7 = vand.u32 4294901760, %v7270_v31  ;;  %v7317_v37 = vsub.f32 %v4150_v45, %v4150_v45  ;;  %v4149_v24 = vsel %vm65_vm11, 1.0, %v9521_v16  ;;  %9601 = vst [vmem:[#allocation10_spill] sm:$0xff] %v7388_v62 }
  0xf7   :  { %9574 = vst [vmem:[#allocation46_spill] sm:$0xff] %v7276_v19  ;;  %v7296_v6 = vpack.c.bf16 %v9578_v1, %v9576_v55  ;;  %v9221_v48 = vand.u32 4294901760, %v7278_v43  ;;  %v9584_v36 = vand.u32 4294901760, %v9583_v14  ;;  %v9586_v4 = vand.u32 4294901760, %v9585_v17  ;;  %v9591_v1 = vld [vmem:[#allocation38_spill] sm:$0xff] }
  0xf8   :  { %5180 = vmatpush3.bf16.msra.mxu0 %v7265_v23  ;;  %4174 = vmatmul.mubr.msk.f32.vlgmr.msra.gmra.mrb[18].mxu1 %vm49_vm7, %v9461_v32  ;;  %v7309_v41 = vpack.c.bf16 %v9582_v38, %v9580_v60  ;;  %v7337_v33 = vsub.f32 %v4149_v24, %v4149_v24  ;;  %v1333_v34 = vsub.f32 %v7270_v31, %v9222_v7  ;;  %v9220_v45 = vand.u32 4294901760, %v7303_v11  ;;  %v9592_v38 = vld [vmem:[#allocation39_spill] sm:$0xff]  ;;  %v9593_v24 = vld [vmem:[#allocation40_spill] sm:$0xff]  ;;  %v7368_v17 = vld [vmem:[#allocation2 + $0x230] sm:$0xff] }
  0xf9   :  { %5182 = vmatprep.subr.bf16.mxu0 %v7276_v19  ;;  %4175 = vmatprep.mubr.msk.f32.mxu1 %vm58_vm8, %v9461_v32  ;;  %v7330_v53 = vpack.c.bf16 %v9586_v4, %v9584_v36  ;;  %v5221_v29 = vpack.c.bf16 %v9589_v27, %v9588_v61  ;;  %v1342_v47 = vsub.f32 %v7278_v43, %v9221_v48  ;;  %v9224_v55 = vand.u32 4294901760, %v7317_v37  ;;  %v7370_v4 = vld [vmem:[#allocation2 + $0x238] sm:$0xff]  ;;  %v9603_v7 = vld [vmem:[#allocation16_spill] sm:$0xff] }
  0xfa   :  { %5256 = vmatpush3.bf16.msra.mxu1 %v7116_v52  ;;  %v5223_v51 = vpack.c.bf16 %v9591_v1, %v9590_v57  ;;  %v1334_v60 = vand.u32 4294901760, %v1333_v34  ;;  %v1348_v59 = vsub.f32 %v7303_v11, %v9220_v45  ;;  %v5225_v14 = vpack.c.bf16 %v9593_v24, %v9592_v38  ;;  %9594 = vst [vmem:[#allocation8_spill] sm:$0xff] %v7368_v17 }
  0xfb   :  { %5258 = vmatprep.subr.bf16.mxu1 %v7122_v9  ;;  %9587 = vst [vmem:[#allocation22_spill] sm:$0xff] %v7330_v53  ;;  %9595 = vst [vmem:[#allocation9_spill] sm:$0xff] %v7370_v4  ;;  %v1343_v34 = vand.u32 4294901760, %v1342_v47  ;;  %v5227_v45 = vpack.c.bf16 %v9597_v10, %v9596_v8  ;;  %v9231_v48 = vand.u32 4294901760, %v7368_v17  ;;  %v9606_v12 = vand.u32 4294901760, %v7370_v4 }
  0xfc   :  { %5184 = vmatpush3.bf16.msra.mxu0 %v7296_v6  ;;  %4176 = vmatmul.mubr.msk.f32.gmra.mrb[20].mxu1 %vm57_vm9, %v9461_v32  ;;  %v1349_v36 = vand.u32 4294901760, %v1348_v59  ;;  %v9604_v59 = vld [vmem:[#allocation17_spill] sm:$0xff]  ;;  %vm244_vm3 = vcmask 850944  }
  0xfd   :  { %5186 = vmatprep.subr.bf16.mxu0 %v7309_v41  ;;  %4177 = vmatprep.mubr.msk.f32.mxu1 %vm66_vm10, %v9461_v32  ;;  %v7404_v16 = vsub.f32 %v7370_v4, %v9606_v12  ;;  %v9612_v12 = vld [vmem:[#allocation19_spill] sm:$0xff]  ;;  %v9613_v4 = vld [vmem:[#allocation20_spill] sm:$0xff] }
  0xfe   :  { %5260 = vmatpush3.bf16.msra.mxu1 %v7159_v46 }
  0xff   :  { %5262 = vmatprep.subr.bf16.mxu1 %v7166_v54  ;;  %9607 = vst [vmem:[#allocation13_spill] sm:$0xff] %v7404_v16 }
 0x100   :  { %5188 = vmatpush3.bf16.msra.mxu0 %v7330_v53  ;;  %4178 = vmatmul.mubr.msk.f32.gmra.mrb[22].mxu1 %vm65_vm11, %v9461_v32 }
 0x101   :  { %5222 = vmatprep.subr.bf16.mxu0 %v5221_v29  ;;  %1871 = vmatprep.mubr.f32.mxu1 %v1326_v63  ;;  %v1357_v29 = vsub.f32 %v7317_v37, %v9224_v55  ;;  %v9598_v63 = vand.u32 4294901760, %v7337_v33  ;;  %v9600_v55 = vld [vmem:[#allocation15_spill] sm:$0xff] }
 0x102   :  { %5264 = vmatpush3.bf16.msra.mxu1 %v7196_v30 }
 0x103   :  { %1335 = vmatmul.mubr.f32.vlgmr.msra.gmra.mrb[18].mxu0 %v1334_v60  ;;  %5266 = vmatprep.subr.bf16.mxu1 %v7203_v0  ;;  %v1363_v47 = vsub.f32 %v7337_v33, %v9598_v63  ;;  %v5229_v60 = vpack.c.bf16 %v9600_v55, %v9599_v40  ;;  %v7399_v63 = vsub.f32 %v7368_v17, %v9231_v48  ;;  %v7413_v48 = vld [vmem:[#allocation2 + $0x258] sm:$0xff] }
 0x104   :  { %1344 = vmatprep.mubr.f32.mxu0 %v1343_v34  ;;  %5224 = vmatpush3.bf16.msra.mxu0 %v5223_v51  ;;  %v7390_v34 = vld [vmem:[#allocation2 + $0x248] sm:$0xff]  ;;  %v1358_v51 = vand.u32 4294901760, %v1357_v29  ;;  %v9236_v29 = vand.u32 4294901760, %v7388_v62  ;;  %9611 = vst [vmem:[#allocation35_spill] sm:$0xff] %v7413_v48  ;;  %v5235_v17 = vpack.c.bf16 %v9613_v4, %v9612_v12  ;;  %v9618_v4 = vld [vmem:[#allocation47_spill] sm:$0xff] }
 0x105   :  { %5226 = vmatprep.subr.bf16.mxu0 %v5225_v14  ;;  %9602 = vst [vmem:[#allocation11_spill] sm:$0xff] %v7390_v34  ;;  %v5231_v14 = vpack.c.bf16 %v9604_v59, %v9603_v7  ;;  %9605 = vst [vmem:[#allocation12_spill] sm:$0xff] %v7399_v63  ;;  %v9609_v59 = vld [vmem:[#allocation18_spill] sm:$0xff] }
 0x106   :  { %5268 = vmatpush3.bf16.msra.mxu1 %v7223_v15 }
 0x107   :  { %1350 = vmatmul.mubr.f32.gmra.mrb[20].mxu0 %v1349_v36  ;;  %5270 = vmatprep.subr.bf16.mxu1 %v7230_v22  ;;  %v1364_v22 = vand.u32 4294901760, %v1363_v47  ;;  %v7424_v36 = vsub.f32 %v7388_v62, %v9236_v29  ;;  %v9620_v29 = vand.u32 4294901760, %v7399_v63  ;;  %v9621_v62 = vand.u32 4294901760, %v7404_v16  ;;  %v9626_v47 = vld [vmem:[#allocation23_spill] sm:$0xff]  ;;  %v9628_v16 = vld [vmem:[#allocation49_spill] sm:$0xff]  ;;  %v7485_v63 = vld [vmem:[#allocation2 + $0x270] sm:$0xff] }
 0x108   :  { %1359 = vmatprep.mubr.f32.mxu0 %v1358_v51  ;;  %5228 = vmatpush3.bf16.msra.mxu0 %v5227_v45  ;;  %v5233_v51 = vpack.c.bf16 %v9609_v59, %v9608_v20  ;;  %v7411_v45 = vld [vmem:[#allocation2 + $0x250] sm:$0xff]  ;;  %9636 = vst [vmem:[#allocation18_spill] sm:$0xff] %v7485_v63 }
 0x109   :  { %5230 = vmatprep.subr.bf16.mxu0 %v5229_v60  ;;  %9610 = vst [vmem:[#allocation34_spill] sm:$0xff] %v7411_v45  ;;  %9614 = vst [vmem:[#allocation37_spill] sm:$0xff] %v7424_v36  ;;  %v7436_v60 = vld [vmem:[#allocation2 + $0x2e0] sm:$0xff]  ;;  %v7442_v12 = vpack.c.bf16 %v9621_v62, %v9620_v29  ;;  %v5241_v62 = vpack.c.bf16 %v7023_v13, %v9628_v16  ;;  %v9629_v29 = vand.u32 4294901760, %v7411_v45  ;;  %v9631_v13 = vand.u32 4294901760, %v7424_v36 }
 0x10a   :  { %5272 = vmatpush3.bf16.msra.mxu1 %v7239_v18  ;;  %v9615_v18 = vand.u32 4294901760, %v7390_v34  ;;  %9619 = vst [vmem:[#allocation39_spill] sm:$0xff] %v7436_v60 }
 0x10b   :  { %1365 = vmatmul.mubr.f32.gmra.mrb[22].mxu0 %v1364_v22  ;;  %5274 = vmatprep.subr.bf16.mxu1 %v7248_v5  ;;  %v9617_v5 = vld [vmem:[#allocation21_spill] sm:$0xff]  ;;  %9622 = vst [vmem:[#allocation40_spill] sm:$0xff] %v7442_v12  ;;  %v7460_v12 = vsub.f32 %v7411_v45, %v9629_v29 }
 0x10c   :  { %5232 = vmatpush3.bf16.msra.mxu0 %v5231_v14  ;;  %1746 = vmatprep.mubr.f32.mxu0 %v7101_v26  ;;  %v7429_v22 = vsub.f32 %v7390_v34, %v9615_v18  ;;  %v5237_v14 = vpack.c.bf16 %v9618_v4, %v9617_v5  ;;  %v7445_v18 = vld [vmem:[#allocation2 + $0x2e8] sm:$0xff]  ;;  %v9627_v26 = vld [vmem:[#allocation48_spill] sm:$0xff]  ;;  %v5245_v4 = vpack.c.bf16 %v7080_v56, %v7075_v44 }
 0x10d   :  { %5234 = vmatprep.subr.bf16.mxu0 %v5233_v51  ;;  %9623 = vst [vmem:[#allocation42_spill] sm:$0xff] %v7445_v18  ;;  %v7447_v51 = vld [vmem:[#allocation2 + $0x260] sm:$0xff]  ;;  %v7449_v34 = vld [vmem:[#allocation2 + $0x268] sm:$0xff] }
 0x10e   :  { %9616 = vst [vmem:[#allocation38_spill] sm:$0xff] %v7429_v22  ;;  %5276 = vmatpush3.bf16.msra.mxu1 %v7265_v23  ;;  %9624 = vst [vmem:[#allocation43_spill] sm:$0xff] %v7447_v51  ;;  %v5239_v23 = vpack.c.bf16 %v9627_v26, %v9626_v47  ;;  %v9632_v29 = vand.u32 4294901760, %v7429_v22  ;;  %v5243_v26 = vpack.c.bf16 %v7052_v21, %v7047_v49  ;;  %v9639_v22 = vand.u32 4294901760, %v7445_v18 }
 0x10f   :  { %5278 = vmatprep.subr.bf16.mxu1 %v7276_v19  ;;  %9625 = vst [vmem:[#allocation14_spill] sm:$0xff] %v7449_v34  ;;  %v9630_v19 = vand.u32 4294901760, %v7413_v48 }
 0x110   :  { %5236 = vmatpush3.bf16.msra.mxu0 %v5235_v17  ;;  %v7476_v45 = vpack.c.bf16 %v9632_v29, %v9631_v13  ;;  %v7502_v36 = vsub.f32 %v7445_v18, %v9639_v22  ;;  %v9641_v13 = vand.u32 4294901760, %v7449_v34 }
 0x111   :  { %5238 = vmatprep.subr.bf16.mxu0 %v5237_v14  ;;  %v7465_v17 = vsub.f32 %v7413_v48, %v9630_v19  ;;  %v7479_v19 = vld [vmem:[#allocation2 + $0x2f0] sm:$0xff]  ;;  %v7483_v48 = vld [vmem:[#allocation2 + $0x2f8] sm:$0xff] }
 0x112   :  { %5280 = vmatpush3.bf16.msra.mxu1 %v7296_v6  ;;  %9633 = vst [vmem:[#allocation15_spill] sm:$0xff] %v7476_v45  ;;  %9634 = vst [vmem:[#allocation16_spill] sm:$0xff] %v7479_v19  ;;  %v7487_v14 = vld [vmem:[#allocation2 + $0x278] sm:$0xff]  ;;  %v7512_v29 = vsub.f32 %v7449_v34, %v9641_v13  ;;  %v5249_v13 = vpack.c.bf16 %v6667_v2, %v6662_v28  ;;  %v9649_v28 = vand.u32 4294901760, %v7485_v63 }
 0x113   :  { %5282 = vmatprep.subr.bf16.mxu1 %v7309_v41  ;;  %9635 = vst [vmem:[#allocation44_spill] sm:$0xff] %v7483_v48  ;;  %9637 = vst [vmem:[#allocation21_spill] sm:$0xff] %v7487_v14 }
 0x114   :  { %5240 = vmatpush3.bf16.msra.mxu0 %v5239_v23  ;;  %v9638_v23 = vand.u32 4294901760, %v7436_v60  ;;  %v7560_v2 = vsub.f32 %v7485_v63, %v9649_v28  ;;  %v9653_v28 = vand.u32 4294901760, %v9588_v61  ;;  %v9654_v63 = vand.u32 4294901760, %v9589_v27 }
 0x115   :  { %5242 = vmatprep.subr.bf16.mxu0 %v5241_v62  ;;  %v9640_v62 = vand.u32 4294901760, %v7447_v51  ;;  %v9661_v61 = vand.u32 4294901760, %v7317_v37  ;;  %v9662_v27 = vand.u32 4294901760, %v9590_v57 }
 0x116   :  { %5284 = vmatpush3.bf16.msra.mxu1 %v7330_v53  ;;  %v7497_v45 = vsub.f32 %v7436_v60, %v9638_v23  ;;  %v7527_v23 = vld [vmem:[#allocation2 + $0x288] sm:$0xff]  ;;  %v9643_v60 = vand.u32 4294901760, %v7460_v12  ;;  %v9644_v53 = vand.u32 4294901760, %v7465_v17 }
 0x117   :  { %v7507_v56 = vsub.f32 %v7447_v51, %v9640_v62  ;;  %5318 = vmatprep.subr.bf16.mxu1 %v6979_v39  ;;  %v5247_v62 = vpack.c.bf16 %v6642_v35, %v6637_v50  ;;  %v9642_v51 = vand.u32 4294901760, %v7270_v31  ;;  %v7525_v39 = vld [vmem:[#allocation2 + $0x280] sm:$0xff]  ;;  %v9670_v50 = vand.u32 4294901760, %v9593_v24  ;;  %v7647_v24 = vld [vmem:[#allocation2 + $0x210] sm:$0xff] }
 0x118   :  { %5244 = vmatpush3.bf16.msra.mxu0 %v5243_v26  ;;  %v7533_v22 = vpack.c.bf16 %v9644_v53, %v9643_v60  ;;  %v9646_v26 = vand.u32 4294901760, %v7278_v43  ;;  %v9647_v53 = vand.u32 4294901760, %v7479_v19 }
 0x119   :  { %1875 = vmatmul.mubr.f32.vlgmr.msra.gmra.mrb[24].mxu1 %v9642_v51  ;;  %5246 = vmatprep.subr.bf16.mxu0 %v5245_v4  ;;  %v7543_v4 = vld [vmem:[#allocation2 + $0x200] sm:$0xff]  ;;  %v7545_v51 = vld [vmem:[#allocation2 + $0x208] sm:$0xff] }
 0x11a   :  { %9645 = vst [vmem:[#allocation23_spill] sm:$0xff] %v7533_v22  ;;  %1882 = vmatprep.mubr.f32.mxu1 %v9646_v26  ;;  %5320 = vmatpush3.bf16.msra.mxu1 %v7116_v52  ;;  %v7550_v60 = vsub.f32 %v7479_v19, %v9647_v53  ;;  %v9648_v52 = vand.u32 4294901760, %v7483_v48  ;;  %v5251_v53 = vpack.c.bf16 %v6699_v25, %v6694_v58  ;;  %v7577_v19 = vld [vmem:[#allocation2 + $0x290] sm:$0xff]  ;;  %v9656_v58 = vand.u32 4294901760, %v7502_v36 }
 0x11b   :  { %5322 = vmatprep.subr.bf16.mxu1 %v7122_v9  ;;  %v9650_v9 = vand.u32 4294901760, %v7487_v14  ;;  %v9658_v22 = vand.u32 4294901760, %v7507_v56 }
 0x11c   :  { %v7555_v26 = vsub.f32 %v7483_v48, %v9648_v52  ;;  %5248 = vmatpush3.bf16.msra.mxu0 %v5247_v62  ;;  %v9652_v52 = vand.u32 4294901760, %v7303_v11  ;;  %v5285_v48 = vpack.c.bf16 %v9654_v63, %v9653_v28  ;;  %v9655_v62 = vand.u32 4294901760, %v7497_v45 }
 0x11d   :  { %v7565_v35 = vsub.f32 %v7487_v14, %v9650_v9  ;;  %5250 = vmatprep.subr.bf16.mxu0 %v5249_v13  ;;  %v7579_v9 = vld [vmem:[#allocation2 + $0x298] sm:$0xff]  ;;  %v9663_v63 = vand.u32 4294901760, %v9591_v1  ;;  %v9666_v1 = vand.u32 4294901760, %v7527_v23 }
 0x11e   :  { %1886 = vmatmul.mubr.f32.gmra.mrb[26].mxu1 %v9652_v52  ;;  %v7585_v25 = vpack.c.bf16 %v9656_v58, %v9655_v62  ;;  %v9659_v52 = vand.u32 4294901760, %v7512_v29  ;;  %v9261_v58 = vand.u32 4294901760, %v7550_v60  ;;  %v9668_v62 = vand.u32 4294901760, %v7337_v33 }
 0x11f   :  { %9651 = vst [vmem:[#allocation49_spill] sm:$0xff] %v7565_v35  ;;  %1893 = vmatprep.mubr.f32.mxu1 %v9661_v61  ;;  %5324 = vmatpush3.bf16.msra.mxu1 %v7159_v46  ;;  %v5287_v28 = vpack.c.bf16 %v9663_v63, %v9662_v27  ;;  %v9664_v46 = vand.u32 4294901760, %v7525_v39  ;;  %v7615_v27 = vsub.f32 %v7527_v23, %v9666_v1  ;;  %v9672_v1 = vand.u32 4294901760, %v7565_v35 }
 0x120   :  { %9657 = vst [vmem:[#allocation51_spill] sm:$0xff] %v7585_v25  ;;  %v7591_v13 = vpack.c.bf16 %v9659_v52, %v9658_v22  ;;  %5326 = vmatprep.subr.bf16.mxu1 %v7166_v54  ;;  %v9260_v22 = vand.u32 4294901760, %v7555_v26  ;;  %v9259_v52 = vand.u32 4294901760, %v7560_v2  ;;  %5252 = vmatpush3.bf16.msra.mxu0 %v5251_v53  ;;  %v9262_v54 = vand.u32 4294901760, %v7577_v19 }
 0x121   :  { %v7610_v57 = vsub.f32 %v7525_v39, %v9664_v46  ;;  %9667 = vst [vmem:[#allocation54_spill] sm:$0xff] %v7615_v27  ;;  %5286 = vmatprep.subr.bf16.mxu0 %v5285_v48  ;;  %v9669_v53 = vand.u32 4294901760, %v9592_v38  ;;  %v9674_v48 = vand.u32 4294901760, %v7543_v4 }
 0x122   :  { %9660 = vst [vmem:[#allocation52_spill] sm:$0xff] %v7591_v13  ;;  %1897 = vmatmul.mubr.f32.gmra.mrb[28].mxu1 %v9668_v62  ;;  %v7629_v46 = vpack.c.bf16 %v9260_v22, %v9261_v58  ;;  %v7635_v63 = vpack.c.bf16 %v9672_v1, %v9259_v52  ;;  %v9677_v62 = vand.u32 4294901760, %v9597_v10  ;;  %v9678_v1 = vand.u32 4294901760, %v7545_v51  ;;  %v7664_v22 = vld [vmem:[#allocation2 + $0x2a8] sm:$0xff]  ;;  %v9694_v13 = vld [vmem:[#allocation20_spill] sm:$0xff] }
 0x123   :  { %9665 = vst [vmem:[#allocation53_spill] sm:$0xff] %v7610_v57  ;;  %v5289_v61 = vpack.c.bf16 %v9670_v50, %v9669_v53  ;;  %5328 = vmatpush3.bf16.msra.mxu1 %v7196_v30  ;;  %4185 = vmatprep.mubr.msk.f32.mxu1 %vm50_vm6, %v9461_v32  ;;  %v7645_v38 = vsub.f32 %v7543_v4, %v9674_v48  ;;  %v7649_v50 = vld [vmem:[#allocation2 + $0x218] sm:$0xff]  ;;  %v9676_v30 = vand.u32 4294901760, %v9596_v8  ;;  %v7662_v48 = vld [vmem:[#allocation2 + $0x2a0] sm:$0xff]  ;;  %v9681_v10 = vand.u32 4294901760, %v7579_v9 }
 0x124   :  { %9671 = vst [vmem:[#allocation55_spill] sm:$0xff] %v7629_v46  ;;  %9673 = vst [vmem:[#allocation56_spill] sm:$0xff] %v7635_v63  ;;  %1749 = vmatmul.mubr.f32.vlgmr.msra.gmra.mrb[24].mxu0 %v7270_v31  ;;  %5330 = vmatprep.subr.bf16.mxu1 %v7203_v0  ;;  %v7660_v52 = vsub.f32 %v7545_v51, %v9678_v1  ;;  %v7672_v8 = vsub.f32 %v7577_v19, %v9262_v54  ;;  %v9690_v0 = vand.u32 4294901760, %v9608_v20  ;;  %v9692_v1 = vld [vmem:[#allocation19_spill] sm:$0xff] }
 0x125   :  { %9675 = vst [vmem:[#allocation57_spill] sm:$0xff] %v7645_v38  ;;  %v5291_v53 = vpack.c.bf16 %v9677_v62, %v9676_v30  ;;  %1755 = vmatprep.mubr.f32.mxu0 %v7278_v43  ;;  %5288 = vmatpush3.bf16.msra.mxu0 %v5287_v28  ;;  %v7677_v30 = vsub.f32 %v7579_v9, %v9681_v10  ;;  %v9683_v62 = vand.u32 4294901760, %v9599_v40  ;;  %v9684_v43 = vand.u32 4294901760, %v9600_v55  ;;  %v7689_v10 = vld [vmem:[#allocation2 + $0x220] sm:$0xff]  ;;  %v9685_v40 = vld [vmem:[#allocation29_spill] sm:$0xff]  ;;  %v9686_v55 = vld [vmem:[#allocation26_spill] sm:$0xff] }
 0x126   :  { %9679 = vst [vmem:[#allocation58_spill] sm:$0xff] %v7660_v52  ;;  %9680 = vst [vmem:[#allocation59_spill] sm:$0xff] %v7672_v8  ;;  %5290 = vmatprep.subr.bf16.mxu0 %v5289_v61  ;;  %v7691_v61 = vld [vmem:[#allocation2 + $0x228] sm:$0xff]  ;;  %v7694_v63 = vadd.s32 640, %v9685_v40  ;;  %v9691_v31 = vand.u32 4294901760, %v9609_v59  ;;  %v9693_v46 = vand.u32 4294901760, %v9692_v1 }
 0x127   :  { %9682 = vst [vmem:[#allocation60_spill] sm:$0xff] %v7677_v30  ;;  %v5293_v28 = vpack.c.bf16 %v9684_v43, %v9683_v62  ;;  %5332 = vmatpush3.bf16.msra.mxu1 %v7223_v15  ;;  %v9687_v62 = vand.u32 4294901760, %v9603_v7  ;;  %v9688_v15 = vld [vmem:[#allocation17_spill] sm:$0xff]  ;;  %v9695_v25 = vand.u32 4294901760, %v9694_v13  ;;  %v9267_v34 = vand.u32 4294901760, %v7660_v52 }
 0x128   :  { %1758 = vmatmul.mubr.f32.gmra.mrb[26].mxu0 %v7303_v11  ;;  %5334 = vmatprep.subr.bf16.mxu1 %v9686_v55  ;;  %v9689_v43 = vand.u32 4294901760, %v9688_v15  ;;  %v5297_v58 = vpack.c.bf16 %v9691_v31, %v9690_v0  ;;  %v9696_v11 = vand.u32 4294901760, %v7610_v57  ;;  %v9697_v55 = vand.u32 4294901760, %v7615_v27  ;;  %v7720_v0 = vld [vmem:[#allocation2 + $0x2b0] sm:$0xff]  ;;  %v9702_v15 = vld [vmem:[#allocation27_spill] sm:$0xff] }
 0x129   :  { %v5299_v14 = vpack.c.bf16 %v9695_v25, %v9693_v46  ;;  %1764 = vmatprep.mubr.f32.mxu0 %v7317_v37  ;;  %5292 = vmatpush3.bf16.msra.mxu0 %v5291_v53  ;;  %v7722_v25 = vld [vmem:[#allocation2 + $0x2b8] sm:$0xff]  ;;  %v9698_v37 = vand.u32 4294901760, %v7647_v24  ;;  %v9700_v46 = vand.u32 4294901760, %v7649_v50  ;;  %v9706_v31 = vand.u32 4294901760, %v7645_v38 }
 0x12a   :  { %v5295_v54 = vpack.c.bf16 %v9689_v43, %v9687_v62  ;;  %v2460_v7 = vsub.f32 %v7610_v57, %v9696_v11  ;;  %v2467_v20 = vsub.f32 %v7615_v27, %v9697_v55  ;;  %5294 = vmatprep.subr.bf16.mxu0 %v5293_v28  ;;  %v9703_v43 = vand.u32 4294901760, %v9617_v5  ;;  %v9704_v11 = vld [vmem:[#allocation47_spill] sm:$0xff]  ;;  %v9711_v5 = vld [vmem:[#allocation28_spill] sm:$0xff]  ;;  %v9723_v27 = vld [vmem:[#allocation46_spill] sm:$0xff] }
 0x12b   :  { %v7727_v13 = vsub.f32 %v7647_v24, %v9698_v37  ;;  %v7732_v53 = vsub.f32 %v7649_v50, %v9700_v46  ;;  %5336 = vmatpush3.bf16.msra.mxu1 %v9702_v15  ;;  %v9705_v28 = vand.u32 4294901760, %v9704_v11  ;;  %v2348_v37 = vsub.f32 %v7645_v38, %v9706_v31 }
 0x12c   :  { %v9707_v59 = vand.u32 4294901760, %v7662_v48  ;;  %v9709_v1 = vand.u32 4294901760, %v7664_v22  ;;  %1767 = vmatmul.mubr.f32.gmra.mrb[28].mxu0 %v7337_v33  ;;  %5338 = vmatprep.subr.bf16.mxu1 %v9711_v5  ;;  %v9712_v15 = vand.u32 4294901760, %v9626_v47  ;;  %v2355_v31 = vsub.f32 %v7660_v52, %v9267_v34  ;;  %v7777_v34 = vld [vmem:[#allocation2 + $0x2c8] sm:$0xff] }
 0x12d   :  { %9699 = vst [vmem:[#allocation26_spill] sm:$0xff] %v7727_v13  ;;  %9701 = vst [vmem:[#allocation17_spill] sm:$0xff] %v7732_v53  ;;  %v5301_v55 = vpack.c.bf16 %v9705_v28, %v9703_v43  ;;  %v9713_v43 = vld [vmem:[#allocation48_spill] sm:$0xff]  ;;  %5296 = vmatpush3.bf16.msra.mxu0 %v5295_v54  ;;  %4179 = vmatprep.mubr.msk.f32.mxu0 %vm50_vm6, %v9461_v32  ;;  %v2461_v33 = vand.u32 4294901760, %v2460_v7  ;;  %v9715_v47 = vand.u32 4294901760, %v7672_v8  ;;  %v9717_v7 = vand.u32 4294901760, %v7689_v10 }
 0x12e   :  { %v7747_v46 = vsub.f32 %v7662_v48, %v9707_v59  ;;  %v7752_v62 = vsub.f32 %v7664_v22, %v9709_v1  ;;  %v9714_v11 = vand.u32 4294901760, %v9713_v43  ;;  %v2468_v1 = vand.u32 4294901760, %v2467_v20  ;;  %5298 = vmatprep.subr.bf16.mxu0 %v5297_v58  ;;  %v9721_v54 = vld [vmem:[#allocation50_spill] sm:$0xff] }
 0x12f   :  { %v2474_v5 = vsub.f32 %v7672_v8, %v9715_v47  ;;  %v7784_v20 = vsub.f32 %v7689_v10, %v9717_v7  ;;  %v9718_v47 = vand.u32 4294901760, %v7691_v61  ;;  %vm52_vm12 = vcmp.eq.s32.totalorder %v7694_v63, %v6478_v3 }
 0x130   :  { %9708 = vst [vmem:[#allocation19_spill] sm:$0xff] %v7747_v46  ;;  %9710 = vst [vmem:[#allocation20_spill] sm:$0xff] %v7752_v62  ;;  %v5303_v28 = vpack.c.bf16 %v9714_v11, %v9712_v15  ;;  %v9716_v15 = vand.u32 4294901760, %v7677_v30  ;;  %v7775_v11 = vld [vmem:[#allocation2 + $0x2c0] sm:$0xff]  ;;  %v9720_v58 = vand.u32 4294901760, %v9628_v16  ;;  %v2349_v8 = vand.u32 4294901760, %v2348_v37 }
 0x131   :  { %v7789_v59 = vsub.f32 %v7691_v61, %v9718_v47  ;;  %v9724_v47 = vand.u32 4294901760, %v7720_v0  ;;  %v9726_v18 = vand.u32 4294901760, %v7722_v25  ;;  %v7813_v37 = vld [vmem:[#allocation2 + $0x2d0] sm:$0xff]  ;;  %5300 = vmatpush3.bf16.msra.mxu0 %v5299_v14  ;;  %v2475_v7 = vand.u32 4294901760, %v2474_v5 }
 0x132   :  { %v2481_v43 = vsub.f32 %v7677_v30, %v9716_v15  ;;  %v9719_v15 = vld [vmem:[#allocation45_spill] sm:$0xff]  ;;  %v9722_v30 = vand.u32 4294901760, %v9721_v54  ;;  %v7815_v54 = vld [vmem:[#allocation2 + $0x2d8] sm:$0xff]  ;;  %5302 = vmatprep.subr.bf16.mxu0 %v5301_v55  ;;  %v9730_v14 = vand.u32 4294901760, %v7747_v46  ;;  %v9731_v55 = vand.u32 4294901760, %v7752_v62 }
 0x133   :  { %5340 = vmatpush3.bf16.msra.mxu1 %v9719_v15  ;;  %v7804_v57 = vsub.f32 %v7720_v0, %v9724_v47  ;;  %v7809_v15 = vsub.f32 %v7722_v25, %v9726_v18  ;;  %v9728_v47 = vand.u32 4294901760, %v7727_v13  ;;  %v9729_v18 = vand.u32 4294901760, %v7732_v53 }
 0x134   :  { %v5305_v38 = vpack.c.bf16 %v9722_v30, %v9720_v58  ;;  %5342 = vmatprep.subr.bf16.mxu1 %v9723_v27  ;;  %v5381_v27 = vpack.c.bf16 %v2468_v1, %v2461_v33  ;;  %v2356_v58 = vand.u32 4294901760, %v2355_v31  ;;  %v2482_v52 = vand.u32 4294901760, %v2481_v43  ;;  %v9737_v1 = vld [vmem:[#allocation24_spill] sm:$0xff] }
 0x135   :  { %9725 = vst [vmem:[#allocation27_spill] sm:$0xff] %v7804_v57  ;;  %9727 = vst [vmem:[#allocation47_spill] sm:$0xff] %v7809_v15  ;;  %v2362_v40 = vsub.f32 %v7727_v13, %v9728_v47  ;;  %v2369_v16 = vsub.f32 %v7732_v53, %v9729_v18  ;;  %v2488_v31 = vsub.f32 %v7747_v46, %v9730_v14  ;;  %v9733_v14 = vand.u32 4294901760, %v7777_v34 }
 0x136   :  { %v2495_v33 = vsub.f32 %v7752_v62, %v9731_v55  ;;  %5304 = vmatpush3.bf16.msra.mxu0 %v5303_v28  ;;  %v9734_v55 = vand.u32 4294901760, %v7047_v49  ;;  %v9735_v5 = vand.u32 4294901760, %v7052_v21  ;;  %v9736_v43 = vand.u32 4294901760, %v7075_v44  ;;  %v9741_v21 = vld [vmem:[#allocation22_spill] sm:$0xff] }
 0x137   :  { %5344 = vmatpush3.bf16.msra.mxu1 %v7296_v6  ;;  %v9732_v6 = vand.u32 4294901760, %v7775_v11  ;;  %v7845_v35 = vsub.f32 %v7777_v34, %v9733_v14  ;;  %v9738_v47 = vand.u32 4294901760, %v9737_v1  ;;  %v5383_v62 = vpack.c.bf16 %v2356_v58, %v2349_v8  ;;  %5306 = vmatprep.subr.bf16.mxu0 %v5305_v38 }
 0x138   :  { %5346 = vmatprep.subr.bf16.mxu1 %v7309_v41  ;;  %v5307_v41 = vpack.c.bf16 %v9735_v5, %v9734_v55  ;;  %v5385_v46 = vpack.c.bf16 %v2482_v52, %v2475_v7  ;;  %v2370_v53 = vand.u32 4294901760, %v2369_v16  ;;  %v9739_v13 = vand.u32 4294901760, %v7784_v20 }
 0x139   :  { %v7840_v18 = vsub.f32 %v7775_v11, %v9732_v6  ;;  %v5309_v30 = vpack.c.bf16 %v9738_v47, %v9736_v43  ;;  %v2363_v6 = vand.u32 4294901760, %v2362_v40  ;;  %v9740_v28 = vand.u32 4294901760, %v7789_v59 }
 0x13a   :  { %v2376_v14 = vsub.f32 %v7784_v20, %v9739_v13  ;;  %v2489_v5 = vand.u32 4294901760, %v2488_v31  ;;  %v2496_v44 = vand.u32 4294901760, %v2495_v33  ;;  %v9742_v1 = vand.u32 4294901760, %v7813_v37  ;;  %5308 = vmatpush3.bf16.msra.mxu0 %v5307_v41 }
 0x13b   :  { %v2383_v49 = vsub.f32 %v7789_v59, %v9740_v28  ;;  %5348 = vmatpush3.bf16.msra.mxu1 %v9741_v21  ;;  %v9744_v52 = vand.u32 4294901760, %v7815_v54  ;;  %v9745_v40 = vand.u32 4294901760, %v7804_v57  ;;  %v9746_v7 = vand.u32 4294901760, %v7809_v15  ;;  %5310 = vmatprep.subr.bf16.mxu0 %v5309_v30  ;;  %v9749_v28 = vld [vmem:[#allocation12_spill] sm:$0xff] }
 0x13c   :  { %v7865_v8 = vsub.f32 %v7813_v37, %v9742_v1  ;;  %5382 = vmatprep.subr.bf16.mxu1 %v5381_v27  ;;  %v9747_v33 = vmov 0.0   ;;  %v2377_v47 = vand.u32 4294901760, %v2376_v14  ;;  %v9750_v21 = vand.u32 4294901760, %v9749_v28 }
 0x13d   :  { %v7870_v38 = vsub.f32 %v7815_v54, %v9744_v52  ;;  %v2502_v13 = vsub.f32 %v7804_v57, %v9745_v40  ;;  %v2509_v16 = vsub.f32 %v7809_v15, %v9746_v7  ;;  %v4136_v43 = vsel %vm52_vm12, 1.0, %v9747_v33  ;;  %v9751_v52 = vld [vmem:[#allocation13_spill] sm:$0xff]  ;;  %v9753_v7 = vld [vmem:[#allocation32_spill] sm:$0xff] }
 0x13e   :  { %9743 = vst [vmem:[#allocation28_spill] sm:$0xff] %v7865_v8  ;;  %4186 = vmatmul.mubr.msk.f32.vlgmr.msra.gmra.mrb[30].mxu1 %vm49_vm7, %v9461_v32  ;;  %v2384_v55 = vand.u32 4294901760, %v2383_v49  ;;  %v2390_v1 = vsub.f32 %v9749_v28, %v9750_v21  ;;  %v9752_v40 = vand.u32 4294901760, %v9751_v52  ;;  %v5387_v31 = vpack.c.bf16 %v2370_v53, %v2363_v6  ;;  %v9756_v57 = vld [vmem:[#allocation33_spill] sm:$0xff] }
 0x13f   :  { %4187 = vmatprep.mubr.msk.f32.mxu1 %vm58_vm8, %v9461_v32  ;;  %5384 = vmatpush3.bf16.msra.mxu1 %v5383_v62  ;;  %v5389_v58 = vpack.c.bf16 %v2496_v44, %v2489_v5  ;;  %v9296_v30 = vand.u32 4294901760, %v7865_v8  ;;  %v9299_v14 = vand.u32 4294901760, %v7870_v38  ;;  %v2503_v49 = vand.u32 4294901760, %v2502_v13 }
 0x140   :  { %v2397_v41 = vsub.f32 %v9751_v52, %v9752_v40  ;;  %5386 = vmatprep.subr.bf16.mxu1 %v5385_v46  ;;  %v2510_v15 = vand.u32 4294901760, %v2509_v16  ;;  %v9754_v21 = vand.u32 4294901760, %v7840_v18  ;;  %v9755_v40 = vand.u32 4294901760, %v7845_v35  ;;  %5312 = vmatpush3.bf16.msra.mxu0 %v9756_v57  ;;  %v9759_v46 = vld [vmem:[#allocation36_spill] sm:$0xff] }
 0x141   :  { %v9757_v53 = vand.u32 4294901760, %v7525_v39  ;;  %v9758_v62 = vand.u32 4294901760, %v7527_v23  ;;  %v7913_v5 = vsub.f32 %v4136_v43, %v4136_v43  ;;  %5314 = vmatprep.subr.bf16.mxu0 %v9759_v46  ;;  %v5391_v44 = vpack.c.bf16 %v2384_v55, %v2377_v47  ;;  %v9762_v23 = vld [vmem:[#allocation31_spill] sm:$0xff]  ;;  %v9763_v43 = vld [vmem:[#allocation38_spill] sm:$0xff]  ;;  %v9765_v46 = vld [vmem:[#allocation41_spill] sm:$0xff] }
 0x142   :  { %v2516_v28 = vsub.f32 %v7840_v18, %v9754_v21  ;;  %v2523_v52 = vsub.f32 %v7845_v35, %v9755_v40  ;;  %4188 = vmatmul.mubr.msk.f32.gmra.mrb[32].mxu1 %vm57_vm9, %v9461_v32  ;;  %v2391_v13 = vand.u32 4294901760, %v2390_v1  ;;  %v2398_v16 = vand.u32 4294901760, %v2397_v41  ;;  %v9760_v21 = vld [vmem:[#allocation37_spill] sm:$0xff] }
 0x143   :  { %v7911_v6 = vpack.c.bf16 %v9758_v62, %v9757_v53  ;;  %v9761_v57 = vand.u32 4294901760, %v9760_v21  ;;  %4189 = vmatprep.mubr.msk.f32.mxu1 %vm66_vm10, %v9461_v32  ;;  %5388 = vmatpush3.bf16.msra.mxu1 %v5387_v31  ;;  %v9764_v40 = vand.u32 4294901760, %v9763_v43  ;;  %v2530_v47 = vsub.f32 %v7865_v8, %v9296_v30 }
 0x144   :  { %v2537_v55 = vsub.f32 %v7870_v38, %v9299_v14  ;;  %5390 = vmatprep.subr.bf16.mxu1 %v5389_v58  ;;  %v5393_v1 = vpack.c.bf16 %v2510_v15, %v2503_v49  ;;  %v2517_v41 = vand.u32 4294901760, %v2516_v28  ;;  %v2524_v62 = vand.u32 4294901760, %v2523_v52  ;;  %5316 = vmatpush3.bf16.msra.mxu0 %v9765_v46 }
 0x145   :  { %v2404_v39 = vsub.f32 %v9760_v21, %v9761_v57  ;;  %v2411_v53 = vsub.f32 %v9763_v43, %v9764_v40  ;;  %v9766_v31 = vand.u32 4294901760, %v7543_v4  ;;  %v9767_v57 = vand.u32 4294901760, %v7545_v51  ;;  %5350 = vmatprep.subr.bf16.mxu0 %v7911_v6 }
 0x146   :  { %v9768_v40 = vand.u32 4294901760, %v7577_v19  ;;  %v9769_v30 = vand.u32 4294901760, %v7579_v9  ;;  %4190 = vmatmul.mubr.msk.f32.gmra.mrb[34].mxu1 %vm65_vm11, %v9461_v32  ;;  %v5395_v15 = vpack.c.bf16 %v2398_v16, %v2391_v13  ;;  %v2300_v4 = vand.u32 4294901760, %v7913_v5 }
 0x147   :  { %v7941_v21 = vpack.c.bf16 %v9767_v57, %v9766_v31  ;;  %v9770_v51 = vand.u32 4294901760, %v7460_v12  ;;  %v9771_v19 = vand.u32 4294901760, %v7465_v17  ;;  %5392 = vmatpush3.bf16.msra.mxu1 %v5391_v44  ;;  %4191 = vmatprep.mubr.msk.f32.mxu1 %vm52_vm12, %v9461_v32  ;;  %v2405_v28 = vand.u32 4294901760, %v2404_v39 }
 0x148   :  { %v7947_v8 = vpack.c.bf16 %v9769_v30, %v9768_v40  ;;  %v2412_v52 = vand.u32 4294901760, %v2411_v53  ;;  %v2531_v30 = vand.u32 4294901760, %v2530_v47  ;;  %v2538_v49 = vand.u32 4294901760, %v2537_v55  ;;  %4180 = vmatmul.mubr.msk.f32.vlgmr.msra.gmra.mrb[30].mxu0 %vm49_vm7, %v9461_v32  ;;  %5394 = vmatprep.subr.bf16.mxu1 %v5393_v1 }
 0x149   :  { %v2418_v58 = vsub.f32 %v7460_v12, %v9770_v51  ;;  %v2425_v9 = vsub.f32 %v7465_v17, %v9771_v19  ;;  %v5397_v13 = vpack.c.bf16 %v2524_v62, %v2517_v41  ;;  %v9772_v16 = vand.u32 4294901760, %v7497_v45  ;;  %4181 = vmatprep.mubr.msk.f32.mxu0 %vm58_vm8, %v9461_v32  ;;  %5352 = vmatpush3.bf16.msra.mxu0 %v7941_v21 }
 0x14a   :  { %v9773_v46 = vand.u32 4294901760, %v7502_v36  ;;  %v9774_v39 = vand.u32 4294901760, %v7647_v24  ;;  %v9775_v53 = vand.u32 4294901760, %v7649_v50  ;;  %5354 = vmatprep.subr.bf16.mxu0 %v7947_v8  ;;  %v9776_v55 = vand.u32 4294901760, %v7662_v48 }
 0x14b   :  { %v2544_v44 = vsub.f32 %v7497_v45, %v9772_v16  ;;  %v9777_v1 = vand.u32 4294901760, %v7664_v22  ;;  %v2301_v62 = vsub.f32 %v7913_v5, %v2300_v4  ;;  %v2419_v57 = vand.u32 4294901760, %v2418_v58  ;;  %5396 = vmatpush3.bf16.msra.mxu1 %v5395_v15 }
 0x14c   :  { %v2551_v31 = vsub.f32 %v7502_v36, %v9773_v46  ;;  %v7984_v47 = vpack.c.bf16 %v9775_v53, %v9774_v39  ;;  %v2426_v40 = vand.u32 4294901760, %v2425_v9  ;;  %v5399_v24 = vpack.c.bf16 %v2412_v52, %v2405_v28  ;;  %4182 = vmatmul.mubr.msk.f32.gmra.mrb[32].mxu0 %vm57_vm9, %v9461_v32  ;;  %5398 = vmatprep.subr.bf16.mxu1 %v5397_v13 }
 0x14d   :  { %v7991_v41 = vpack.c.bf16 %v9777_v1, %v9776_v55  ;;  %v5401_v51 = vpack.c.bf16 %v2538_v49, %v2531_v30  ;;  %v9778_v50 = vand.u32 4294901760, %v7507_v56  ;;  %v9779_v16 = vand.u32 4294901760, %v7512_v29  ;;  %4183 = vmatprep.mubr.msk.f32.mxu0 %vm66_vm10, %v9461_v32 }
 0x14e   :  { %v2545_v22 = vand.u32 4294901760, %v2544_v44  ;;  %v2552_v58 = vand.u32 4294901760, %v2551_v31  ;;  %v9780_v15 = vand.u32 4294901760, %v7550_v60  ;;  %v9781_v28 = vand.u32 4294901760, %v7555_v26  ;;  %5356 = vmatpush3.bf16.msra.mxu0 %v7984_v47 }
 0x14f   :  { %v2432_v19 = vsub.f32 %v7507_v56, %v9778_v50  ;;  %v2439_v48 = vsub.f32 %v7512_v29, %v9779_v16  ;;  %v9782_v30 = vand.u32 4294901760, %v7689_v10  ;;  %v9783_v49 = vand.u32 4294901760, %v7691_v61  ;;  %5358 = vmatprep.subr.bf16.mxu0 %v7991_v41  ;;  %5400 = vmatpush3.bf16.msra.mxu1 %v5399_v24  ;;  %v9787_v61 = vld [vmem:[#allocation49_spill] sm:$0xff]  ;;  %v9791_v24 = vld [vmem:[#allocation8_spill] sm:$0xff] }
 0x150   :  { %v2558_v9 = vsub.f32 %v7550_v60, %v9780_v15  ;;  %v2565_v52 = vsub.f32 %v7555_v26, %v9781_v28  ;;  %v2302_v44 = vand.u32 4294901760, %v2301_v62  ;;  %v9784_v46 = vand.u32 4294901760, %v7720_v0  ;;  %4184 = vmatmul.mubr.msk.f32.gmra.mrb[34].mxu0 %vm65_vm11, %v9461_v32  ;;  %5402 = vmatprep.subr.bf16.mxu1 %v5401_v51 }
 0x151   :  { %v8021_v13 = vpack.c.bf16 %v9783_v49, %v9782_v30  ;;  %v9785_v31 = vand.u32 4294901760, %v7722_v25  ;;  %v5403_v53 = vpack.c.bf16 %v2426_v40, %v2419_v57  ;;  %v2433_v42 = vand.u32 4294901760, %v2432_v19  ;;  %v9789_v57 = vld [vmem:[#allocation29_spill] sm:$0xff]  ;;  %v9797_v49 = vld [vmem:[#allocation10_spill] sm:$0xff] }
 0x152   :  { %v2440_v55 = vand.u32 4294901760, %v2439_v48  ;;  %v9786_v1 = vand.u32 4294901760, %v7560_v2  ;;  %v9788_v50 = vand.u32 4294901760, %v9787_v61  ;;  %v5405_v0 = vpack.c.bf16 %v2552_v58, %v2545_v22  ;;  %2303 = vmatprep.mubr.f32.mxu0 %v2302_v44  ;;  %v9793_v48 = vld [vmem:[#allocation9_spill] sm:$0xff] }
 0x153   :  { %v8028_v39 = vpack.c.bf16 %v9785_v31, %v9784_v46  ;;  %v2559_v25 = vand.u32 4294901760, %v2558_v9  ;;  %v2566_v62 = vand.u32 4294901760, %v2565_v52  ;;  %v8041_v40 = vadd.s32 512, %v9789_v57  ;;  %5360 = vmatpush3.bf16.msra.mxu0 %v8021_v13  ;;  %5404 = vmatpush3.bf16.msra.mxu1 %v5403_v53  ;;  %v9799_v46 = vld [vmem:[#allocation11_spill] sm:$0xff] }
 0x154   :  { %v2446_v10 = vsub.f32 %v7560_v2, %v9786_v1  ;;  %v2453_v16 = vsub.f32 %v9787_v61, %v9788_v50  ;;  %v9792_v19 = vand.u32 4294901760, %v9791_v24  ;;  %v9794_v15 = vand.u32 4294901760, %v9793_v48  ;;  %5406 = vmatprep.subr.bf16.mxu1 %v5405_v0  ;;  %v9807_v50 = vld [vmem:[#allocation35_spill] sm:$0xff] }
 0x155   :  { %9790 = vst [vmem:[#allocation48_spill] sm:$0xff] %v8041_v40  ;;  %5362 = vmatprep.subr.bf16.mxu0 %v8028_v39  ;;  %v9795_v27 = vand.u32 4294901760, %v7775_v11  ;;  %v9796_v51 = vand.u32 4294901760, %v7777_v34  ;;  %v5407_v58 = vpack.c.bf16 %v2440_v55, %v2433_v42  ;;  %v5409_v30 = vpack.c.bf16 %v2566_v62, %v2559_v25  ;;  %v9809_v62 = vld [vmem:[#allocation39_spill] sm:$0xff] }
 0x156   :  { %v8048_v28 = vpack.c.bf16 %v9794_v15, %v9792_v19  ;;  %v2447_v9 = vand.u32 4294901760, %v2446_v10  ;;  %v2454_v52 = vand.u32 4294901760, %v2453_v16  ;;  %vm51_vm13 = vcmp.eq.s32.totalorder %v8041_v40, %v6478_v3  ;;  %v9811_v19 = vld [vmem:[#allocation42_spill] sm:$0xff] }
 0x157   :  { %v8055_v22 = vpack.c.bf16 %v9796_v51, %v9795_v27  ;;  %v9798_v44 = vand.u32 4294901760, %v9797_v49  ;;  %v9800_v31 = vand.u32 4294901760, %v9799_v46  ;;  %vm60_vm14 = vcmp.eq.s32.totalorder %v7694_v63, %v9753_v7  ;;  %5408 = vmatpush3.bf16.msra.mxu1 %v5407_v58 }
 0x158   :  { %5364 = vmatpush3.bf16.msra.mxu0 %v8048_v28  ;;  %v9802_v34 = vand.u32 4294901760, %v7813_v37  ;;  %v9803_v53 = vand.u32 4294901760, %v7815_v54  ;;  %v5411_v55 = vpack.c.bf16 %v2454_v52, %v2447_v9  ;;  %v4135_v1 = vsel %vm51_vm13, 1.0, %v9747_v33  ;;  %5410 = vmatprep.subr.bf16.mxu1 %v5409_v30  ;;  %v9805_v37 = vld [vmem:[#allocation34_spill] sm:$0xff]  ;;  %v9813_v9 = vld [vmem:[#allocation43_spill] sm:$0xff] }
 0x159   :  { %v8064_v11 = vpack.c.bf16 %v9800_v31, %v9798_v44  ;;  %5366 = vmatprep.subr.bf16.mxu0 %v8055_v22  ;;  %v4144_v10 = vsel %vm60_vm14, 1.0, %v9747_v33  ;;  %vm59_vm15 = vcmp.eq.s32.totalorder %v8041_v40, %v9753_v7  ;;  %v9806_v54 = vand.u32 4294901760, %v9805_v37  ;;  %v9815_v30 = vld [vmem:[#allocation14_spill] sm:$0xff]  ;;  %v9817_v31 = vld [vmem:[#allocation16_spill] sm:$0xff] }
 0x15a   :  { %v8073_v42 = vpack.c.bf16 %v9803_v53, %v9802_v34  ;;  %v9808_v16 = vand.u32 4294901760, %v9807_v50  ;;  %vm68_vm0 = vcmp.eq.s32.totalorder %v7694_v63, %v9762_v23  ;;  %v8095_v25 = vsub.f32 %v4135_v1, %v4135_v1  ;;  %v9819_v53 = vld [vmem:[#allocation44_spill] sm:$0xff]  ;;  %v233_v63 = vld [vmem:[#allocation2 + $0x390] sm:$0xff] }
 0x15b   :  { %9801 = vst [vmem:[#allocation45_spill] sm:$0xff] %v8064_v11  ;;  %v9810_v24 = vand.u32 4294901760, %v9809_v62  ;;  %v9812_v48 = vand.u32 4294901760, %v9811_v19  ;;  %5412 = vmatpush3.bf16.msra.mxu1 %v5411_v55  ;;  %v8103_v27 = vsub.f32 %v4144_v10, %v4144_v10  ;;  %v4143_v51 = vsel %vm59_vm15, 1.0, %v9747_v33 }
 0x15c   :  { %9804 = vst [vmem:[#allocation50_spill] sm:$0xff] %v8073_v42  ;;  %5368 = vmatpush3.bf16.msra.mxu0 %v8064_v11  ;;  %v8090_v0 = vpack.c.bf16 %v9808_v16, %v9806_v54  ;;  %5446 = vmatprep.subr.bf16.mxu1 %v7911_v6  ;;  %v4152_v58 = vsel %vm68_vm0, 1.0, %v9747_v33  ;;  %vm67_vm1 = vcmp.eq.s32.totalorder %v8041_v40, %v9762_v23  ;;  %v9814_v52 = vand.u32 4294901760, %v9813_v9  ;;  %v9821_v16 = vld [vmem:[#allocation18_spill] sm:$0xff]  ;;  %v9825_v9 = vld [vmem:[#allocation53_spill] sm:$0xff] }
 0x15d   :  { %5370 = vmatprep.subr.bf16.mxu0 %v8073_v42  ;;  %v8101_v15 = vpack.c.bf16 %v9812_v48, %v9810_v24  ;;  %v9816_v49 = vand.u32 4294901760, %v9815_v30  ;;  %v8128_v46 = vsub.f32 %v4143_v51, %v4143_v51  ;;  %v9818_v34 = vand.u32 4294901760, %v9817_v31  ;;  %v9823_v24 = vld [vmem:[#allocation21_spill] sm:$0xff] }
 0x15e   :  { %4192 = vmatmul.mubr.msk.f32.vlgmr.msra.gmra.mrb[36].mxu1 %vm51_vm13, %v9461_v32  ;;  %v9820_v55 = vand.u32 4294901760, %v9819_v53  ;;  %v9301_v10 = vand.u32 4294901760, %v8095_v25  ;;  %v8142_v37 = vsub.f32 %v4152_v58, %v4152_v58  ;;  %v4151_v54 = vsel %vm67_vm1, 1.0, %v9747_v33  ;;  %v9827_v53 = vld [vmem:[#allocation57_spill] sm:$0xff] }
 0x15f   :  { %v8121_v44 = vpack.c.bf16 %v9816_v49, %v9814_v52  ;;  %4193 = vmatprep.mubr.msk.f32.mxu1 %vm60_vm14, %v9461_v32  ;;  %5448 = vmatpush3.bf16.msra.mxu1 %v7941_v21  ;;  %v9300_v50 = vand.u32 4294901760, %v8103_v27  ;;  %v9822_v62 = vand.u32 4294901760, %v9821_v16  ;;  %v9824_v19 = vand.u32 4294901760, %v9823_v24  ;;  %v9826_v52 = vld [vmem:[#allocation54_spill] sm:$0xff]  ;;  %v9829_v24 = vld [vmem:[#allocation59_spill] sm:$0xff] }
 0x160   :  { %5372 = vmatpush3.bf16.msra.mxu0 %v8090_v0  ;;  %v8134_v1 = vpack.c.bf16 %v9820_v55, %v9818_v34  ;;  %5450 = vmatprep.subr.bf16.mxu1 %v7947_v8  ;;  %v8162_v51 = vsub.f32 %v4151_v54, %v4151_v54  ;;  %v2307_v58 = vsub.f32 %v8095_v25, %v9301_v10  ;;  %v9302_v49 = vand.u32 4294901760, %v8128_v46  ;;  %v9828_v55 = vld [vmem:[#allocation58_spill] sm:$0xff] }
 0x161   :  { %5374 = vmatprep.subr.bf16.mxu0 %v8101_v15  ;;  %v8155_v48 = vpack.c.bf16 %v9824_v19, %v9822_v62  ;;  %v5413_v30 = vpack.c.bf16 %v9826_v52, %v9825_v9  ;;  %v2316_v31 = vsub.f32 %v8103_v27, %v9300_v50  ;;  %v9308_v34 = vand.u32 4294901760, %v8142_v37  ;;  %v9830_v19 = vld [vmem:[#allocation60_spill] sm:$0xff] }
 0x162   :  { %4194 = vmatmul.mubr.msk.f32.gmra.mrb[38].mxu1 %vm59_vm15, %v9461_v32  ;;  %v5415_v54 = vpack.c.bf16 %v9828_v55, %v9827_v53  ;;  %v2308_v16 = vand.u32 4294901760, %v2307_v58  ;;  %v2322_v62 = vsub.f32 %v8128_v46, %v9302_v49  ;;  %v5417_v14 = vpack.c.bf16 %v9830_v19, %v9829_v24  ;;  %v9832_v49 = vld [vmem:[#allocation17_spill] sm:$0xff] }
 0x163   :  { %4195 = vmatprep.mubr.msk.f32.mxu1 %vm68_vm0, %v9461_v32  ;;  %5452 = vmatpush3.bf16.msra.mxu1 %v7984_v47  ;;  %v9309_v50 = vand.u32 4294901760, %v8162_v51  ;;  %v2317_v10 = vand.u32 4294901760, %v2316_v31  ;;  %v2331_v58 = vsub.f32 %v8142_v37, %v9308_v34  ;;  %v9834_v31 = vld [vmem:[#allocation20_spill] sm:$0xff] }
 0x164   :  { %5376 = vmatpush3.bf16.msra.mxu0 %v8121_v44  ;;  %5454 = vmatprep.subr.bf16.mxu1 %v7991_v41  ;;  %v2323_v7 = vand.u32 4294901760, %v2322_v62 }
 0x165   :  { %5378 = vmatprep.subr.bf16.mxu0 %v8134_v1  ;;  %v2337_v40 = vsub.f32 %v8162_v51, %v9309_v50  ;;  %v2332_v34 = vand.u32 4294901760, %v2331_v58  ;;  %v9837_v58 = vld [vmem:[#allocation12_spill] sm:$0xff] }
 0x166   :  { %4196 = vmatmul.mubr.msk.f32.gmra.mrb[40].mxu1 %vm67_vm1, %v9461_v32 }
 0x167   :  { %5456 = vmatpush3.bf16.msra.mxu1 %v8021_v13  ;;  %2845 = vmatprep.mubr.f32.mxu1 %v2300_v4  ;;  %v9833_v4 = vld [vmem:[#allocation19_spill] sm:$0xff] }
 0x168   :  { %5380 = vmatpush3.bf16.msra.mxu0 %v8155_v48  ;;  %5458 = vmatprep.subr.bf16.mxu1 %v8028_v39  ;;  %v5421_v33 = vpack.c.bf16 %v9834_v31, %v9833_v4 }
 0x169   :  { %5414 = vmatprep.subr.bf16.mxu0 %v5413_v30  ;;  %v9831_v30 = vld [vmem:[#allocation26_spill] sm:$0xff] }
 0x16a   :  { %v5419_v23 = vpack.c.bf16 %v9832_v49, %v9831_v30 }
 0x16b   :  { %2309 = vmatmul.mubr.f32.vlgmr.msra.gmra.mrb[36].mxu0 %v2308_v16  ;;  %5460 = vmatpush3.bf16.msra.mxu1 %v8048_v28  ;;  %v9836_v16 = vld [vmem:[#allocation47_spill] sm:$0xff] }
 0x16c   :  { %2318 = vmatprep.mubr.f32.mxu0 %v2317_v10  ;;  %5416 = vmatpush3.bf16.msra.mxu0 %v5415_v54  ;;  %v5423_v10 = vpack.c.bf16 %v7789_v59, %v7784_v20  ;;  %v2338_v54 = vand.u32 4294901760, %v2337_v40 }
 0x16d   :  { %5418 = vmatprep.subr.bf16.mxu0 %v5417_v14  ;;  %5462 = vmatprep.subr.bf16.mxu1 %v8055_v22  ;;  %v9835_v14 = vld [vmem:[#allocation27_spill] sm:$0xff] }
 0x16e   :  { %v5425_v62 = vpack.c.bf16 %v9836_v16, %v9835_v14 }
 0x16f   :  { %2324 = vmatmul.mubr.f32.gmra.mrb[38].mxu0 %v2323_v7  ;;  %5464 = vmatpush3.bf16.msra.mxu1 %v8064_v11  ;;  %v4300_v7 = vpop.f32.mrb[0].mxu1  ;;  %v9840_v11 = vld [vmem:[#allocation28_spill] sm:$0xff] }
 0x170   :  { %2333 = vmatprep.mubr.f32.mxu0 %v2332_v34  ;;  %5420 = vmatpush3.bf16.msra.mxu0 %v5419_v23  ;;  %v9838_v34 = vld [vmem:[#allocation13_spill] sm:$0xff]  ;;  %v4301_v50 = vpop.f32.mrb[1].mxu1 }
 0x171   :  { %5422 = vmatprep.subr.bf16.mxu0 %v5421_v33  ;;  %5466 = vmatprep.subr.bf16.mxu1 %v8073_v42  ;;  %v5427_v23 = vpack.c.bf16 %v9838_v34, %v9837_v58  ;;  %v5429_v33 = vpack.c.bf16 %v7845_v35, %v7840_v18  ;;  %v4302_v40 = vadd.f32 %v4301_v50, %v4300_v7  ;;  %v9839_v42 = vld [vmem:[#allocation37_spill] sm:$0xff] }
 0x172   :  { %v5433_v58 = vpack.c.bf16 %v7870_v38, %v9840_v11  ;;  %v5435_v50 = vpack.c.bf16 %v7465_v17, %v7460_v12  ;;  %v9841_v12 = vand.u32 4294901760, %v8095_v25 }
 0x173   :  { %2339 = vmatmul.mubr.f32.gmra.mrb[40].mxu0 %v2338_v54  ;;  %5468 = vmatpush3.bf16.msra.mxu1 %v8090_v0  ;;  %v4303_v54 = vpop.f32.mrb[2].mxu1  ;;  %v4259_v7 = vpop.f32.mrb[0].mxu0 }
 0x174   :  { %5424 = vmatpush3.bf16.msra.mxu0 %v5423_v10  ;;  %2720 = vmatprep.mubr.f32.mxu0 %v7913_v5  ;;  %v5431_v10 = vpack.c.bf16 %v9763_v43, %v9839_v42  ;;  %v4304_v5 = vpop.f32.mrb[3].mxu1  ;;  %v5437_v43 = vpack.c.bf16 %v7502_v36, %v7497_v45  ;;  %v5441_v36 = vpack.c.bf16 %v7555_v26, %v7550_v60  ;;  %v9842_v45 = vand.u32 4294901760, %v8103_v27 }
 0x175   :  { %5426 = vmatprep.subr.bf16.mxu0 %v5425_v62  ;;  %5470 = vmatprep.subr.bf16.mxu1 %v8101_v15  ;;  %v4305_v34 = vadd.f32 %v4304_v5, %v4303_v54  ;;  %v4306_v62 = vpop.f32.mrb[4].mxu1  ;;  %v9844_v60 = vand.u32 4294901760, %v9825_v9  ;;  %v9845_v26 = vand.u32 4294901760, %v9826_v52  ;;  %v9849_v9 = vand.u32 4294901760, %v8162_v51 }
 0x176   :  { %v4307_v42 = vpop.f32.mrb[5].mxu1  ;;  %v9850_v52 = vand.u32 4294901760, %v9829_v24  ;;  %v9855_v24 = vand.u32 4294901760, %v9834_v31  ;;  %v9859_v31 = vand.u32 4294901760, %v9836_v16 }
 0x177   :  { %5472 = vmatpush3.bf16.msra.mxu1 %v8121_v44 }
 0x178   :  { %5428 = vmatpush3.bf16.msra.mxu0 %v5427_v23  ;;  %5474 = vmatprep.subr.bf16.mxu1 %v8134_v1  ;;  %v4260_v23 = vpop.f32.mrb[1].mxu0 }
 0x179   :  { %5430 = vmatprep.subr.bf16.mxu0 %v5429_v33  ;;  %v4308_v33 = vadd.f32 %v4307_v42, %v4306_v62  ;;  %v4261_v54 = vadd.f32 %v4260_v23, %v4259_v7  ;;  %v4262_v17 = vpop.f32.mrb[2].mxu0  ;;  %v9846_v62 = vand.u32 4294901760, %v8142_v37 }
 0x17b   :  { %5476 = vmatpush3.bf16.msra.mxu1 %v8155_v48  ;;  %v8236_v5 = vadd.f32 %v4302_v40, %v4261_v54  ;;  %v9843_v40 = vand.u32 4294901760, %v8128_v46  ;;  %v9862_v54 = vand.u32 4294901760, %v7840_v18 }
 0x17c   :  { %5432 = vmatpush3.bf16.msra.mxu0 %v5431_v10  ;;  %5510 = vmatprep.subr.bf16.mxu1 %v7911_v6  ;;  %v5439_v10 = vpack.c.bf16 %v7512_v29, %v7507_v56  ;;  %v4263_v6 = vpop.f32.mrb[3].mxu0  ;;  %v5443_v56 = vpack.c.bf16 %v9787_v61, %v7560_v2  ;;  %v9847_v61 = vand.u32 4294901760, %v9827_v53  ;;  %v9853_v53 = vand.u32 4294901760, %v9832_v49 }
 0x17d   :  { %5434 = vmatprep.subr.bf16.mxu0 %v5433_v58  ;;  %v4264_v58 = vadd.f32 %v4263_v6, %v4262_v17 }
 0x17e   :  { %2849 = vmatmul.mubr.f32.vlgmr.msra.gmra.mrb[42].mxu1 %v9841_v12 }
 0x17f   :  { %2856 = vmatprep.mubr.f32.mxu1 %v9842_v45  ;;  %5512 = vmatpush3.bf16.msra.mxu1 %v7941_v21  ;;  %v8248_v29 = vadd.f32 %v4305_v34, %v4264_v58  ;;  %v4265_v21 = vpop.f32.mrb[4].mxu0  ;;  %v9848_v34 = vand.u32 4294901760, %v9828_v55 }
 0x180   :  { %5436 = vmatpush3.bf16.msra.mxu0 %v5435_v50  ;;  %5514 = vmatprep.subr.bf16.mxu1 %v7947_v8  ;;  %v5477_v50 = vpack.c.bf16 %v9845_v26, %v9844_v60  ;;  %v4266_v8 = vpop.f32.mrb[5].mxu0 }
 0x181   :  { %5438 = vmatprep.subr.bf16.mxu0 %v5437_v43  ;;  %v4267_v2 = vadd.f32 %v4266_v8, %v4265_v21  ;;  %v5479_v7 = vpack.c.bf16 %v9848_v34, %v9847_v61  ;;  %v9851_v43 = vand.u32 4294901760, %v9830_v19  ;;  %v9867_v21 = vand.u32 4294901760, %v7870_v38  ;;  %v220_v61 = vld [vmem:[#allocation2 + $0x328] sm:$0xff] }
 0x182   :  { %2860 = vmatmul.mubr.f32.gmra.mrb[44].mxu1 %v9843_v40 }
 0x183   :  { %2867 = vmatprep.mubr.f32.mxu1 %v9846_v62  ;;  %5516 = vmatpush3.bf16.msra.mxu1 %v7984_v47  ;;  %v5481_v42 = vpack.c.bf16 %v9851_v43, %v9850_v52  ;;  %v8270_v47 = vadd.f32 %v4308_v33, %v4267_v2  ;;  %v9860_v33 = vld [vmem:[#allocation45_spill] sm:$0xff]  ;;  %v219_v2 = vld [vmem:[#allocation2 + $0x320] sm:$0xff] }
 0x184   :  { %5440 = vmatpush3.bf16.msra.mxu0 %v5439_v10  ;;  %5518 = vmatprep.subr.bf16.mxu1 %v7991_v41  ;;  %v9852_v41 = vand.u32 4294901760, %v9831_v30  ;;  %v215_v30 = vld [vmem:[#allocation2 + $0x300] sm:$0xff] }
 0x185   :  { %5442 = vmatprep.subr.bf16.mxu0 %v5441_v36  ;;  %v9864_v36 = vmov 0.0  }
 0x186   :  { %2871 = vmatmul.mubr.f32.gmra.mrb[46].mxu1 %v9849_v9  ;;  %v5483_v55 = vpack.c.bf16 %v9853_v53, %v9852_v41  ;;  %v3192_v41 = vand.u32 4294901760, %v220_v61 }
 0x187   :  { %5520 = vmatpush3.bf16.msra.mxu1 %v8021_v13  ;;  %4203 = vmatprep.mubr.msk.f32.mxu1 %vm52_vm12, %v9461_v32  ;;  %v9854_v13 = vand.u32 4294901760, %v9833_v4  ;;  %v216_v4 = vld [vmem:[#allocation2 + $0x308] sm:$0xff] }
 0x188   :  { %5444 = vmatpush3.bf16.msra.mxu0 %v5443_v56  ;;  %5522 = vmatprep.subr.bf16.mxu1 %v8028_v39  ;;  %v9856_v39 = vand.u32 4294901760, %v7784_v20  ;;  %v3177_v20 = vand.u32 4294901760, %v215_v30  ;;  %v9865_v56 = vld [vmem:[#allocation40_spill] sm:$0xff] }
 0x189   :  { %5478 = vmatprep.subr.bf16.mxu0 %v5477_v50  ;;  %v5485_v19 = vpack.c.bf16 %v9855_v24, %v9854_v13  ;;  %v9866_v50 = vand.u32 4294901760, %v9840_v11  ;;  %v221_v24 = vld [vmem:[#allocation2 + $0x330] sm:$0xff]  ;;  %v240_v11 = vld [vmem:[#allocation2 + $0x3c8] sm:$0xff] }
 0x18a   :  { %v8316_v12 = vsub.f32 %v215_v30, %v3177_v20 }
 0x18b   :  { %2723 = vmatmul.mubr.f32.vlgmr.msra.gmra.mrb[42].mxu0 %v8095_v25  ;;  %5524 = vmatpush3.bf16.msra.mxu1 %v8048_v28  ;;  %v8290_v25 = vadd.s32 896, %v9789_v57  ;;  %v9858_v28 = vand.u32 4294901760, %v9835_v14  ;;  %v218_v14 = vld [vmem:[#allocation2 + $0x318] sm:$0xff] }
 0x18c   :  { %2729 = vmatprep.mubr.f32.mxu0 %v8103_v27  ;;  %5480 = vmatpush3.bf16.msra.mxu0 %v5479_v7  ;;  %v9857_v27 = vand.u32 4294901760, %v7789_v59  ;;  %v3180_v59 = vand.u32 4294901760, %v216_v4  ;;  %v3186_v18 = vand.u32 4294901760, %v218_v14  ;;  %v9869_v7 = vld [vmem:[#allocation15_spill] sm:$0xff] }
 0x18d   :  { %5482 = vmatprep.subr.bf16.mxu0 %v5481_v42  ;;  %5526 = vmatprep.subr.bf16.mxu1 %v8055_v22  ;;  %v5489_v23 = vpack.c.bf16 %v9859_v31, %v9858_v28  ;;  %vm54_vm2 = vcmp.eq.s32.totalorder %v8290_v25, %v6478_v3  ;;  %v9861_v22 = vld [vmem:[#allocation50_spill] sm:$0xff]  ;;  %v9873_v28 = vld [vmem:[#allocation51_spill] sm:$0xff] }
 0x18e   :  { %v5487_v49 = vpack.c.bf16 %v9857_v27, %v9856_v39  ;;  %v8318_v17 = vsub.f32 %v216_v4, %v3180_v59  ;;  %v8324_v45 = vsel %vm54_vm2, 1.0, %v9864_v36  ;;  %v9871_v39 = vld [vmem:[#allocation23_spill] sm:$0xff] }
 0x18f   :  { %2732 = vmatmul.mubr.f32.gmra.mrb[44].mxu0 %v8128_v46  ;;  %5528 = vmatpush3.bf16.msra.mxu1 %v9860_v33  ;;  %v4382_v46 = vpop.f32.mrb[6].mxu1  ;;  %v246_v60 = vsel %vm244_vm3, %v8324_v45, 0 }
 0x190   :  { %2738 = vmatprep.mubr.f32.mxu0 %v8142_v37  ;;  %5484 = vmatpush3.bf16.msra.mxu0 %v5483_v55  ;;  %v217_v37 = vld [vmem:[#allocation2 + $0x310] sm:$0xff]  ;;  %v4383_v16 = vpop.f32.mrb[7].mxu1  ;;  %v8345_v34 = vsub.f32 %v246_v60, %v246_v60  ;;  %v9323_v55 = vmov 0.0|0.0   ;;  %v9877_v60 = vld [vmem:[#allocation55_spill] sm:$0xff] }
 0x191   :  { %5486 = vmatprep.subr.bf16.mxu0 %v5485_v19  ;;  %5530 = vmatprep.subr.bf16.mxu1 %v9861_v22  ;;  %v4384_v6 = vadd.f32 %v4383_v16, %v4382_v46  ;;  %v3183_v58 = vand.u32 4294901760, %v217_v37  ;;  %v4385_v40 = vpop.f32.mrb[8].mxu1  ;;  %v222_v19 = vld [vmem:[#allocation2 + $0x338] sm:$0xff]  ;;  %v3195_v22 = vand.u32 4294901760, %v221_v24  ;;  %v8381_v16 = vld [vmem:[#allocation2 + $0x350] sm:$0xff] }
 0x192   :  { %v4386_v26 = vpop.f32.mrb[9].mxu1  ;;  %9868 = vst [vmem:[#allocation46_spill] sm:$0xff] %v8345_v34  ;;  %v3271_v13 = vand.u32 4294901760, %v8345_v34 }
 0x193   :  { %2741 = vmatmul.mubr.f32.gmra.mrb[46].mxu0 %v8162_v51  ;;  %v9863_v51 = vand.u32 4294901760, %v7845_v35  ;;  %5532 = vmatpush3.bf16.msra.mxu1 %v8090_v0  ;;  %v5497_v0 = vpack.c.bf16 %v9867_v21, %v9866_v50  ;;  %v8337_v62 = vsub.f32 %v217_v37, %v3183_v58  ;;  %v8341_v8 = vadd.f32 %v4386_v26, %v4385_v40  ;;  %v4388_v38 = vpop.f32.mrb[10].mxu1  ;;  %v9879_v21 = vld [vmem:[#allocation31_spill] sm:$0xff]  ;;  %v8539_v35 = vld [vmem:[#allocation2 + $0x3d0] sm:$0xff] }
 0x194   :  { %5488 = vmatpush3.bf16.msra.mxu0 %v5487_v49  ;;  %4197 = vmatprep.mubr.msk.f32.mxu0 %vm52_vm12, %v9461_v32  ;;  %v4341_v9 = vpop.f32.mrb[6].mxu0  ;;  %v4389_v52 = vpop.f32.mrb[11].mxu1  ;;  %v8360_v49 = vsub.f32 %v220_v61, %v3192_v41  ;;  %v8373_v33 = vpack.c.bf16 %v3186_v18, %v3183_v58  ;;  %v3272_v37 = vsub.f32 %v8345_v34, %v3271_v13 }
 0x195   :  { %5490 = vmatprep.subr.bf16.mxu0 %v5489_v23  ;;  %v5493_v10 = vpack.c.bf16 %v9863_v51, %v9862_v54  ;;  %5534 = vmatprep.subr.bf16.mxu1 %v8101_v15  ;;  %v8339_v15 = vsub.f32 %v218_v14, %v3186_v18  ;;  %v8350_v43 = vadd.f32 %v4389_v52, %v4388_v38  ;;  %v4342_v42 = vpop.f32.mrb[7].mxu0  ;;  %v9874_v23 = vld [vmem:[#allocation32_spill] sm:$0xff]  ;;  %v224_v14 = vld [vmem:[#allocation2 + $0x348] sm:$0xff]  ;;  %v8383_v54 = vld [vmem:[#allocation2 + $0x358] sm:$0xff]  ;;  %v9899_v34 = vand.u32 4294901760, %v8337_v62 }
 0x196   :  { %v4343_v53 = vadd.f32 %v4342_v42, %v4341_v9  ;;  %9875 = vst [vmem:[#allocation22_spill] sm:$0xff] %v8373_v33  ;;  %v8388_v58 = vsub.f32 %v221_v24, %v3195_v22  ;;  %v3273_v38 = vand.u32 4294901760, %v3272_v37  ;;  %v227_v9 = vld [vmem:[#allocation2 + $0x360] sm:$0xff]  ;;  %v228_v52 = vld [vmem:[#allocation2 + $0x368] sm:$0xff]  ;;  %vm62_vm5 = vcmp.eq.s32.totalorder %v8290_v25, %v9874_v23 }
 0x197   :  { %5536 = vmatpush3.bf16.msra.mxu1 %v8121_v44  ;;  %v8353_v44 = vpack.c.bf16 %v3180_v59, %v3177_v20  ;;  %v223_v20 = vld [vmem:[#allocation2 + $0x340] sm:$0xff]  ;;  %vm70_vm7 = vcmp.eq.s32.totalorder %v8290_v25, %v9879_v21 }
 0x198   :  { %5492 = vmatpush3.bf16.msra.mxu0 %v9865_v56  ;;  %5538 = vmatprep.subr.bf16.mxu1 %v8134_v1  ;;  %v3189_v1 = vand.u32 4294901760, %v219_v2  ;;  %v4344_v30 = vpop.f32.mrb[8].mxu0 }
 0x199   :  { %5494 = vmatprep.subr.bf16.mxu0 %v5493_v10  ;;  %9870 = vst [vmem:[#allocation24_spill] sm:$0xff] %v8353_v44  ;;  %v4345_v31 = vpop.f32.mrb[9].mxu0  ;;  %v9876_v10 = vld [vmem:[#allocation52_spill] sm:$0xff] }
 0x19a   :  { %v8358_v27 = vsub.f32 %v219_v2, %v3189_v1  ;;  %v4346_v46 = vadd.f32 %v4345_v31, %v4344_v30  ;;  %v8398_v26 = vpack.c.bf16 %v3192_v41, %v3189_v1  ;;  %v3210_v2 = vand.u32 4294901760, %v8383_v54  ;;  %v9880_v1 = vld [vmem:[#allocation56_spill] sm:$0xff]  ;;  %v229_v31 = vld [vmem:[#allocation2 + $0x370] sm:$0xff] }
 0x19b   :  { %5540 = vmatpush3.bf16.msra.mxu1 %v8155_v48  ;;  %v777_v48 = vadd.f32 %v4343_v53, %v8236_v5  ;;  %v3198_v5 = vand.u32 4294901760, %v222_v19  ;;  %v3216_v30 = vand.u32 4294901760, %v228_v52 }
 0x19c   :  { %5496 = vmatpush3.bf16.msra.mxu0 %v9869_v7  ;;  %5541 = vmatprep.subr.bf16.mxu1 %v9323_v55  ;;  %v786_v56 = vadd.f32 %v4346_v46, %v8248_v29  ;;  %v4347_v40 = vpop.f32.mrb[10].mxu0  ;;  %9878 = vst [vmem:[#allocation25_spill] sm:$0xff] %v8398_v26  ;;  %v3204_v29 = vand.u32 4294901760, %v224_v14 }
 0x19d   :  { %5498 = vmatprep.subr.bf16.mxu0 %v5497_v0  ;;  %v8385_v51 = vadd.f32 %v4384_v6, %v777_v48  ;;  %v8390_v18 = vsub.f32 %v222_v19, %v3198_v5  ;;  %v3201_v6 = vand.u32 4294901760, %v223_v20  ;;  %v4348_v50 = vpop.f32.mrb[11].mxu0  ;;  %v3207_v0 = vand.u32 4294901760, %v8381_v16 }
 0x19e   :  { %4204 = vmatmul.mubr.msk.f32.vlgmr.msra.gmra.mrb[48].mxu1 %vm51_vm13, %v9461_v32  ;;  %v4349_v7 = vadd.f32 %v4348_v50, %v4347_v40  ;;  %v8411_v42 = vadd.f32 %v8341_v8, %v786_v56  ;;  %v8416_v53 = vsub.f32 %v224_v14, %v3204_v29  ;;  %v8422_v19 = vsub.f32 %v8383_v54, %v3210_v2  ;;  %v231_v54 = vld [vmem:[#allocation2 + $0x380] sm:$0xff] }
 0x19f   :  { %4205 = vmatprep.mubr.msk.f32.mxu1 %vm60_vm14, %v9461_v32  ;;  %5543 = vmatpush1.bf16.msra.mxu1 %v8353_v44  ;;  %v8414_v41 = vsub.f32 %v223_v20, %v3201_v6  ;;  %v8419_v24 = vsub.f32 %v8381_v16, %v3207_v0  ;;  %v8430_v8 = vpack.c.bf16 %v3198_v5, %v3195_v22  ;;  %v3213_v48 = vand.u32 4294901760, %v227_v9  ;;  %v230_v22 = vld [vmem:[#allocation2 + $0x378] sm:$0xff] }
 0x1a0   :  { %5500 = vmatpush3.bf16.msra.mxu0 %v9871_v39  ;;  %5544 = vmatprep.subr.bf16.mxu1 %v9323_v55  ;;  %v795_v39 = vadd.f32 %v4349_v7, %v8270_v47  ;;  %v8452_v46 = vsub.f32 %v228_v52, %v3216_v30  ;;  %v8456_v37 = vpack.c.bf16 %v3204_v29, %v3201_v6  ;;  %v3219_v14 = vand.u32 4294901760, %v229_v31  ;;  %v234_v7 = vld [vmem:[#allocation2 + $0x398] sm:$0xff]  ;;  %v237_v47 = vld [vmem:[#allocation2 + $0x3b0] sm:$0xff] }
 0x1a1   :  { %5502 = vmatprep.subr.bf16.mxu0 %v9873_v28  ;;  %9881 = vst [vmem:[#allocation33_spill] sm:$0xff] %v8430_v8  ;;  %v8450_v20 = vsub.f32 %v227_v9, %v3213_v48  ;;  %v3225_v6 = vand.u32 4294901760, %v231_v54  ;;  %v8493_v52 = vpack.c.bf16 %v3216_v30, %v3213_v48  ;;  %v238_v28 = vld [vmem:[#allocation2 + $0x3b8] sm:$0xff] }
 0x1a2   :  { %4206 = vmatmul.mubr.msk.f32.gmra.mrb[50].mxu1 %vm59_vm15, %v9461_v32  ;;  %v8443_v5 = vadd.f32 %v8350_v43, %v795_v39  ;;  %9882 = vst [vmem:[#allocation36_spill] sm:$0xff] %v8456_v37  ;;  %v3222_v43 = vand.u32 4294901760, %v230_v22  ;;  %v8470_v56 = vsub.f32 %v229_v31, %v3219_v14  ;;  %v3234_v39 = vand.u32 4294901760, %v234_v7  ;;  %v236_v31 = vld [vmem:[#allocation2 + $0x3a8] sm:$0xff] }
 0x1a3   :  { %4207 = vmatprep.mubr.msk.f32.mxu1 %vm68_vm0, %v9461_v32  ;;  %5546 = vmatpush1.bf16.msra.mxu1 %v8373_v33  ;;  %9884 = vst [vmem:[#allocation41_spill] sm:$0xff] %v8493_v52 }
 0x1a4   :  { %5504 = vmatpush3.bf16.msra.mxu0 %v9876_v10  ;;  %5547 = vmatprep.subr.bf16.mxu1 %v9323_v55  ;;  %v232_v10 = vld [vmem:[#allocation2 + $0x388] sm:$0xff]  ;;  %v8472_v40 = vsub.f32 %v230_v22, %v3222_v43  ;;  %v8508_v30 = vpack.c.bf16 %v3222_v43, %v3219_v14 }
 0x1a5   :  { %5506 = vmatprep.subr.bf16.mxu0 %v9877_v60  ;;  %v8476_v60 = vpack.c.bf16 %v3210_v2, %v3207_v0  ;;  %v3228_v50 = vand.u32 4294901760, %v232_v10  ;;  %v8488_v2 = vsub.f32 %v231_v54, %v3225_v6  ;;  %v8502_v54 = vsub.f32 %v234_v7, %v3234_v39 }
 0x1a6   :  { %4208 = vmatmul.mubr.msk.f32.gmra.mrb[52].mxu1 %vm67_vm1, %v9461_v32  ;;  %9885 = vst [vmem:[#allocation49_spill] sm:$0xff] %v8508_v30  ;;  %v8515_v7 = vadd.s32 768, %v9789_v57 }
 0x1a7   :  { %5549 = vmatpush1.bf16.msra.mxu1 %v8398_v26  ;;  %3274 = vmatprep.mubr.f32.mxu1 %v3273_v38  ;;  %9883 = vst [vmem:[#allocation38_spill] sm:$0xff] %v8476_v60  ;;  %v8490_v38 = vsub.f32 %v232_v10, %v3228_v50  ;;  %v8521_v14 = vpack.c.bf16 %v3228_v50, %v3225_v6 }
 0x1a8   :  { %5508 = vmatpush3.bf16.msra.mxu0 %v9880_v1  ;;  %5550 = vmatprep.subr.bf16.mxu1 %v9323_v55  ;;  %v3231_v1 = vand.u32 4294901760, %v233_v63  ;;  %9886 = vst [vmem:[#allocation29_spill] sm:$0xff] %v8515_v7  ;;  %vm53_vm4 = vcmp.eq.s32.totalorder %v8515_v7, %v6478_v3  ;;  %vm61_vm6 = vcmp.eq.s32.totalorder %v8515_v7, %v9874_v23  ;;  %v9903_v23 = vand.u32 4294901760, %v8358_v27 }
 0x1a9   :  { %5667 = vmatprep.subr.bf16.mxu0 %v9323_v55  ;;  %9887 = vst [vmem:[#allocation8_spill] sm:$0xff] %v8521_v14  ;;  %v4145_v25 = vsel %vm61_vm6, 1.0, %v9864_v36  ;;  %vm69_vm8 = vcmp.eq.s32.totalorder %v8515_v7, %v9879_v21 }
 0x1aa   :  { %v4464_v0 = vpop.f32.mrb[12].mxu1  ;;  %v8500_v22 = vsub.f32 %v233_v63, %v3231_v1  ;;  %v8532_v6 = vpack.c.bf16 %v3234_v39, %v3231_v1 }
 0x1ab   :  { %4198 = vmatmul.mubr.msk.f32.vlgmr.msra.gmra.mrb[48].mxu0 %vm51_vm13, %v9461_v32  ;;  %5552 = vmatpush1.bf16.msra.mxu1 %v8430_v8  ;;  %v4465_v9 = vpop.f32.mrb[13].mxu1 }
 0x1ac   :  { %4199 = vmatprep.mubr.msk.f32.mxu0 %vm60_vm14, %v9461_v32  ;;  %5669 = vmatpush1.bf16.msra.mxu0 %v8353_v44  ;;  %v4466_v4 = vadd.f32 %v4465_v9, %v4464_v0  ;;  %v235_v9 = vld [vmem:[#allocation2 + $0x3a0] sm:$0xff]  ;;  %v3240_v0 = vand.u32 4294901760, %v236_v31  ;;  %9888 = vst [vmem:[#allocation9_spill] sm:$0xff] %v8532_v6  ;;  %v9898_v44 = vmov 0.0|0.0  }
 0x1ad   :  { %5670 = vmatprep.subr.bf16.mxu0 %v9323_v55  ;;  %5553 = vmatprep.subr.bf16.mxu1 %v9323_v55  ;;  %v3237_v43 = vand.u32 4294901760, %v235_v9 }
 0x1ae   :  { %v8527_v59 = vsub.f32 %v236_v31, %v3240_v0 }
 0x1af   :  { %4200 = vmatmul.mubr.msk.f32.gmra.mrb[50].mxu0 %vm59_vm15, %v9461_v32  ;;  %5555 = vmatpush1.bf16.msra.mxu1 %v8456_v37  ;;  %v8525_v57 = vsub.f32 %v235_v9, %v3237_v43  ;;  %v8553_v31 = vpack.c.bf16 %v3240_v0, %v3237_v43 }
 0x1b0   :  { %4201 = vmatprep.mubr.msk.f32.mxu0 %vm68_vm0, %v9461_v32  ;;  %5672 = vmatpush1.bf16.msra.mxu0 %v8373_v33 }
 0x1b1   :  { %5673 = vmatprep.subr.bf16.mxu0 %v9323_v55  ;;  %5556 = vmatprep.subr.bf16.mxu1 %v9323_v55  ;;  %9889 = vst [vmem:[#allocation10_spill] sm:$0xff] %v8553_v31 }
 0x1b3   :  { %4202 = vmatmul.mubr.msk.f32.gmra.mrb[52].mxu0 %vm67_vm1, %v9461_v32  ;;  %5558 = vmatpush1.bf16.msra.mxu1 %v8476_v60 }
 0x1b4   :  { %5675 = vmatpush1.bf16.msra.mxu0 %v8398_v26  ;;  %3792 = vmatprep.mubr.f32.mxu0 %v3271_v13  ;;  %v4467_v13 = vpop.f32.mrb[14].mxu1  ;;  %v4137_v26 = vsel %vm53_vm4, 1.0, %v9864_v36 }
 0x1b5   :  { %5676 = vmatprep.subr.bf16.mxu0 %v9323_v55  ;;  %5559 = vmatprep.subr.bf16.mxu1 %v9323_v55  ;;  %v4468_v10 = vpop.f32.mrb[15].mxu1 }
 0x1b6   :  { %v8505_v48 = vadd.f32 %v4468_v10, %v4467_v13  ;;  %v4470_v63 = vpop.f32.mrb[16].mxu1  ;;  %v4423_v13 = vpop.f32.mrb[12].mxu0 }
 0x1b7   :  { %5561 = vmatpush1.bf16.msra.mxu1 %v8493_v52  ;;  %v4471_v29 = vpop.f32.mrb[17].mxu1  ;;  %v4424_v16 = vpop.f32.mrb[13].mxu0 }
 0x1b8   :  { %5678 = vmatpush1.bf16.msra.mxu0 %v8430_v8  ;;  %5562 = vmatprep.subr.bf16.mxu1 %v9323_v55  ;;  %v8518_v10 = vadd.f32 %v4471_v29, %v4470_v63  ;;  %v4425_v61 = vadd.f32 %v4424_v16, %v4423_v13  ;;  %v4426_v29 = vpop.f32.mrb[14].mxu0  ;;  %v3243_v63 = vand.u32 4294901760, %v237_v47  ;;  %v3246_v16 = vand.u32 4294901760, %v238_v28  ;;  %v239_v13 = vld [vmem:[#allocation2 + $0x3c0] sm:$0xff] }
 0x1b9   :  { %5679 = vmatprep.subr.bf16.mxu0 %v9323_v55  ;;  %v4427_v9 = vpop.f32.mrb[15].mxu0  ;;  %v3252_v8 = vand.u32 4294901760, %v240_v11 }
 0x1ba   :  { %v1093_v50 = vadd.f32 %v4425_v61, %v8385_v51  ;;  %v4428_v51 = vadd.f32 %v4427_v9, %v4426_v29  ;;  %v8546_v61 = vsub.f32 %v237_v47, %v3243_v63  ;;  %v8548_v1 = vsub.f32 %v238_v28, %v3246_v16 }
 0x1bb   :  { %5564 = vmatpush1.bf16.msra.mxu1 %v8508_v30  ;;  %v3255_v28 = vand.u32 4294901760, %v8539_v35 }
 0x1bc   :  { %5681 = vmatpush1.bf16.msra.mxu0 %v8456_v37  ;;  %5565 = vmatprep.subr.bf16.mxu1 %v9323_v55  ;;  %v8550_v39 = vadd.f32 %v4466_v4, %v1093_v50  ;;  %v3249_v37 = vand.u32 4294901760, %v239_v13  ;;  %v1100_v29 = vadd.f32 %v4428_v51, %v8411_v42  ;;  %v4429_v9 = vpop.f32.mrb[16].mxu0  ;;  %v8568_v50 = vsub.f32 %v240_v11, %v3252_v8 }
 0x1bd   :  { %5682 = vmatprep.subr.bf16.mxu0 %v9323_v55  ;;  %v4430_v0 = vpop.f32.mrb[17].mxu0  ;;  %v8574_v42 = vsel %vm62_vm5, 1.0, %v9864_v36  ;;  %v8580_v4 = vsub.f32 %v8539_v35, %v3255_v28  ;;  %v8627_v35 = vsub.f32 %v4145_v25, %v4145_v25 }
 0x1be   :  { %v8566_v43 = vsub.f32 %v239_v13, %v3249_v37  ;;  %9890 = vst [vmem:[#allocation11_spill] sm:$0xff] %v8574_v42  ;;  %v4431_v51 = vadd.f32 %v4430_v0, %v4429_v9  ;;  %v8586_v11 = vadd.f32 %v8505_v48, %v1100_v29  ;;  %v8593_v9 = vpack.c.bf16 %v3246_v16, %v3243_v63 }
 0x1bf   :  { %5567 = vmatpush1.bf16.msra.mxu1 %v8521_v14  ;;  %v8600_v48 = vsub.f32 %v4137_v26, %v4137_v26  ;;  %v249_v29 = vsel %vm244_vm3, %v8574_v42, 0  ;;  %v9319_v63 = vand.u32 4294901760, %v8318_v17  ;;  %v8612_v16 = vsel %vm70_vm7, 1.0, %v9864_v36 }
 0x1c0   :  { %5684 = vmatpush1.bf16.msra.mxu0 %v8476_v60  ;;  %5568 = vmatprep.subr.bf16.mxu1 %v9323_v55  ;;  %v8541_v60 = vld [vmem:[#allocation2 + $0x3d8] sm:$0xff]  ;;  %9891 = vst [vmem:[#allocation34_spill] sm:$0xff] %v8593_v9  ;;  %9892 = vst [vmem:[#allocation35_spill] sm:$0xff] %v8612_v16  ;;  %v8621_v0 = vpack.c.bf16 %v3252_v8, %v3249_v37  ;;  %v4153_v37 = vsel %vm69_vm8, 1.0, %v9864_v36  ;;  %v3347_v42 = vsub.f32 %v8358_v27, %v9903_v23 }
 0x1c1   :  { %5685 = vmatprep.subr.bf16.mxu0 %v9323_v55  ;;  %v3258_v47 = vand.u32 4294901760, %v8541_v60  ;;  %v3326_v8 = vsub.f32 %v8318_v17, %v9319_v63  ;;  %v8652_v63 = vld [vmem:[#allocation2 + $0x3e0] sm:$0xff]  ;;  %v8658_v33 = vsub.f32 %v4153_v37, %v4153_v37 }
 0x1c2   :  { %9893 = vst [vmem:[#allocation39_spill] sm:$0xff] %v8621_v0  ;;  %9895 = vst [vmem:[#allocation43_spill] sm:$0xff] %v8652_v63 }
 0x1c3   :  { %5570 = vmatpush1.bf16.msra.mxu1 %v8532_v6  ;;  %v8583_v13 = vsub.f32 %v8541_v60, %v3258_v47  ;;  %v8646_v60 = vpack.c.bf16 %v3258_v47, %v3255_v28  ;;  %9897 = vst [vmem:[#allocation14_spill] sm:$0xff] %v8658_v33  ;;  %v3327_v25 = vand.u32 4294901760, %v3326_v8 }
 0x1c4   :  { %5687 = vmatpush1.bf16.msra.mxu0 %v8493_v52  ;;  %5571 = vmatprep.subr.bf16.mxu1 %v9323_v55  ;;  %v1107_v52 = vadd.f32 %v4431_v51, %v8443_v5  ;;  %v9317_v5 = vand.u32 4294901760, %v8316_v12  ;;  %v8623_v51 = vsub.f32 %v249_v29, %v249_v29  ;;  %v9900_v29 = vand.u32 4294901760, %v8339_v15 }
 0x1c5   :  { %5688 = vmatprep.subr.bf16.mxu0 %v9323_v55 }
 0x1c6   :  { %v8615_v26 = vadd.f32 %v8518_v10, %v1107_v52  ;;  %v252_v52 = vsel %vm244_vm3, %v8612_v16, 0  ;;  %v3319_v10 = vsub.f32 %v8316_v12, %v9317_v5  ;;  %v3340_v37 = vsub.f32 %v8339_v15, %v9900_v29 }
 0x1c7   :  { %5573 = vmatpush1.bf16.msra.mxu1 %v8553_v31  ;;  %v9901_v8 = vand.u32 4294901760, %v8623_v51 }
 0x1c8   :  { %5690 = vmatpush1.bf16.msra.mxu0 %v8508_v30  ;;  %5574 = vmatprep.subr.bf16.mxu1 %v9323_v55  ;;  %v3320_v47 = vand.u32 4294901760, %v3319_v10  ;;  %v8674_v10 = vand.u32 4294901760, %v8652_v63  ;;  %v3341_v7 = vand.u32 4294901760, %v3340_v37  ;;  %v9906_v37 = vand.u32 4294901760, %v8658_v33 }
 0x1c9   :  { %5691 = vmatprep.subr.bf16.mxu0 %v9323_v55  ;;  %v3287_v5 = vsub.f32 %v8623_v51, %v9901_v8  ;;  %v9904_v8 = vand.u32 4294901760, %v8360_v49 }
 0x1cb   :  { %5576 = vmatpush1.bf16.msra.mxu1 %v8593_v9  ;;  %v4546_v28 = vpop.f32.mrb[18].mxu1 }
 0x1cc   :  { %5693 = vmatpush1.bf16.msra.mxu0 %v8521_v14  ;;  %5577 = vmatprep.subr.bf16.mxu1 %v9323_v55  ;;  %v9896_v14 = vand.u32 4294901760, %v8600_v48 }
 0x1cd   :  { %5694 = vmatprep.subr.bf16.mxu0 %v9323_v55 }
 0x1ce   :  { %v3278_v30 = vsub.f32 %v8600_v48, %v9896_v14  ;;  %v3333_v14 = vsub.f32 %v8337_v62, %v9899_v34 }
 0x1cf   :  { %5579 = vmatpush1.bf16.msra.mxu1 %v8621_v0 }
 0x1d0   :  { %5696 = vmatpush1.bf16.msra.mxu0 %v8532_v6  ;;  %v8649_v6 = vsub.f32 %v252_v52, %v252_v52  ;;  %5580 = vmatprep.subr.bf16.mxu1 %v9323_v55  ;;  %v3279_v34 = vand.u32 4294901760, %v3278_v30  ;;  %v3354_v52 = vsub.f32 %v8360_v49, %v9904_v8  ;;  %v3334_v30 = vand.u32 4294901760, %v3333_v14 }
 0x1d1   :  { %5697 = vmatprep.subr.bf16.mxu0 %v9323_v55  ;;  %v4547_v55 = vpop.f32.mrb[19].mxu1  ;;  %v9907_v8 = vand.u32 4294901760, %v8388_v58 }
 0x1d2   :  { %9894 = vst [vmem:[#allocation42_spill] sm:$0xff] %v8649_v6  ;;  %v8670_v21 = vadd.f32 %v4547_v55, %v4546_v28  ;;  %v4549_v55 = vpop.f32.mrb[20].mxu1  ;;  %v5584_v28 = vpack.c.bf16 %v3327_v25, %v3320_v47  ;;  %v3288_v47 = vand.u32 4294901760, %v3287_v5  ;;  %v9905_v23 = vand.u32 4294901760, %v8649_v6 }
 0x1d3   :  { %5582 = vmatpush1.bf16.msra.mxu1 %v8646_v60  ;;  %v4550_v3 = vpop.f32.mrb[21].mxu1  ;;  %v3381_v5 = vand.u32 4294901760, %v8416_v53 }
 0x1d4   :  { %5699 = vmatpush1.bf16.msra.mxu0 %v8553_v31  ;;  %3260 = vmatprep.subr.mxu1 %v9864_v36  ;;  %v9902_v31 = vand.u32 4294901760, %v8627_v35  ;;  %v8695_v25 = vadd.f32 %v4550_v3, %v4549_v55  ;;  %v3302_v16 = vsub.f32 %v8649_v6, %v9905_v23  ;;  %v4552_v14 = vpop.f32.mrb[22].mxu1  ;;  %v3308_v3 = vsub.f32 %v8658_v33, %v9906_v37 }
 0x1d5   :  { %5700 = vmatprep.subr.bf16.mxu0 %v9898_v44  ;;  %v3348_v55 = vand.u32 4294901760, %v3347_v42  ;;  %v5587_v23 = vpack.c.bf16 %v3341_v7, %v3334_v30 }
 0x1d6   :  { %v3293_v29 = vsub.f32 %v8627_v35, %v9902_v31  ;;  %v4553_v31 = vpop.f32.mrb[23].mxu1  ;;  %v4505_v63 = vpop.f32.mrb[18].mxu0  ;;  %v3303_v42 = vand.u32 4294901760, %v3302_v16  ;;  %v3309_v30 = vand.u32 4294901760, %v3308_v3 }
 0x1d7   :  { %3262 = vmatpush1.msra.mxu1 %v8674_v10  ;;  %v8715_v37 = vadd.f32 %v4553_v31, %v4552_v14  ;;  %v3382_v31 = vsub.f32 %v8416_v53, %v3381_v5 }
 0x1d8   :  { %5702 = vmatpush1.bf16.msra.mxu0 %v8593_v9  ;;  %3280 = vmatmul.mubr.f32.vlgmr.msra.gmra.mrb[54].mxu1 %v3279_v34  ;;  %v3355_v9 = vand.u32 4294901760, %v3354_v52  ;;  %v3294_v34 = vand.u32 4294901760, %v3293_v29  ;;  %v4506_v52 = vpop.f32.mrb[19].mxu0 }
 0x1d9   :  { %5703 = vmatprep.subr.bf16.mxu0 %v9898_v44  ;;  %5583 = vmatprep.subr.bf16.mxu1 %v9898_v44  ;;  %v4507_v29 = vadd.f32 %v4506_v52, %v4505_v63 }
 0x1da   :  { %3289 = vmatprep.mubr.f32.mxu1 %v3288_v47  ;;  %5585 = vmatpush1.bf16.msra.mxu1 %v5584_v28  ;;  %v9908_v47 = vand.u32 4294901760, %v8390_v18  ;;  %v9909_v28 = vand.u32 4294901760, %v8414_v41  ;;  %v4508_v52 = vpop.f32.mrb[20].mxu0 }
 0x1db   :  { %5586 = vmatprep.subr.bf16.mxu1 %v9898_v44  ;;  %v1337_v63 = vadd.f32 %v4507_v29, %v8550_v39  ;;  %v4509_v3 = vpop.f32.mrb[21].mxu0  ;;  %v3383_v39 = vand.u32 4294901760, %v3382_v31 }
 0x1dc   :  { %5705 = vmatpush1.bf16.msra.mxu0 %v8621_v0  ;;  %v3361_v0 = vsub.f32 %v8388_v58, %v9907_v8  ;;  %v3368_v32 = vsub.f32 %v8390_v18, %v9908_v47  ;;  %3295 = vmatmul.mubr.f32.gmra.mrb[56].mxu1 %v3294_v34  ;;  %v3375_v7 = vsub.f32 %v8414_v41, %v9909_v28  ;;  %v3388_v34 = vand.u32 4294901760, %v8419_v24 }
 0x1dd   :  { %5706 = vmatprep.subr.bf16.mxu0 %v9898_v44  ;;  %3304 = vmatprep.mubr.f32.mxu1 %v3303_v42  ;;  %v5590_v8 = vpack.c.bf16 %v3355_v9, %v3348_v55  ;;  %v9342_v47 = vand.u32 4294901760, %v8422_v19  ;;  %v9910_v9 = vand.u32 4294901760, %v8316_v12  ;;  %v9911_v55 = vand.u32 4294901760, %v8318_v17 }
 0x1de   :  { %5588 = vmatpush1.bf16.msra.mxu1 %v5587_v23  ;;  %v3362_v16 = vand.u32 4294901760, %v3361_v0  ;;  %v3369_v14 = vand.u32 4294901760, %v3368_v32  ;;  %v3376_v42 = vand.u32 4294901760, %v3375_v7  ;;  %v3402_v0 = vand.u32 4294901760, %v8450_v20 }
 0x1df   :  { %5589 = vmatprep.subr.bf16.mxu1 %v9898_v44  ;;  %v5710_v23 = vpack.c.bf16 %v9911_v55, %v9910_v9  ;;  %v4510_v32 = vadd.f32 %v4509_v3, %v4508_v52  ;;  %v3409_v28 = vand.u32 4294901760, %v8452_v46  ;;  %v8740_v29 = vadd.f32 %v8670_v21, %v1337_v63  ;;  %v4511_v3 = vpop.f32.mrb[22].mxu0 }
 0x1e0   :  { %5708 = vmatpush1.bf16.msra.mxu0 %v8646_v60  ;;  %3310 = vmatmul.mubr.f32.gmra.mrb[58].mxu1 %v3309_v30  ;;  %v9912_v30 = vand.u32 4294901760, %v8600_v48  ;;  %v5593_v9 = vpack.c.bf16 %v3369_v14, %v3362_v16  ;;  %v3389_v7 = vsub.f32 %v8419_v24, %v3388_v34  ;;  %v3396_v52 = vsub.f32 %v8422_v19, %v9342_v47 }
 0x1e1   :  { %3780 = vmatprep.subr.mxu0 %v9864_v36  ;;  %4209 = vmatprep.mubr.msk.f32.mxu1 %vm244_vm3, %v8324_v45  ;;  %v1352_v31 = vadd.f32 %v4510_v32, %v8586_v11  ;;  %v9913_v21 = vand.u32 4294901760, %v8623_v51  ;;  %v9914_v16 = vand.u32 4294901760, %v8337_v62  ;;  %v9915_v14 = vand.u32 4294901760, %v8339_v15 }
 0x1e2   :  { %5591 = vmatpush1.bf16.msra.mxu1 %v5590_v8  ;;  %v4512_v8 = vpop.f32.mrb[23].mxu0  ;;  %v3403_v55 = vsub.f32 %v8450_v20, %v3402_v0  ;;  %v5596_v32 = vpack.c.bf16 %v3383_v39, %v3376_v42  ;;  %v3416_v47 = vand.u32 4294901760, %v8470_v56  ;;  %v9917_v42 = vand.u32 4294901760, %v8649_v6 }
 0x1e3   :  { %5592 = vmatprep.subr.bf16.mxu1 %v9898_v44  ;;  %v5713_v63 = vpack.c.bf16 %v9915_v14, %v9914_v16  ;;  %v4513_v11 = vadd.f32 %v4512_v8, %v4511_v3  ;;  %v3390_v16 = vand.u32 4294901760, %v3389_v7  ;;  %v3397_v14 = vand.u32 4294901760, %v3396_v52 }
 0x1e4   :  { %3782 = vmatpush1.msra.mxu0 %v8674_v10  ;;  %v3423_v3 = vand.u32 4294901760, %v8472_v40  ;;  %v9919_v39 = vand.u32 4294901760, %v8360_v49  ;;  %v9344_v52 = vand.u32 4294901760, %v8488_v2 }
 0x1e5   :  { %3796 = vmatmul.mubr.f32.vlgmr.msra.gmra.mrb[54].mxu0 %v9912_v30  ;;  %5709 = vmatprep.subr.bf16.mxu0 %v9898_v44  ;;  %v8767_v30 = vadd.f32 %v8695_v25, %v1352_v31  ;;  %v1367_v8 = vadd.f32 %v4513_v11, %v8615_v26  ;;  %v9918_v25 = vand.u32 4294901760, %v8358_v27  ;;  %v3404_v31 = vand.u32 4294901760, %v3403_v55 }
 0x1e6   :  { %3803 = vmatprep.mubr.f32.mxu0 %v9913_v21  ;;  %5711 = vmatpush1.bf16.msra.mxu0 %v5710_v23  ;;  %v3410_v23 = vsub.f32 %v8452_v46, %v3409_v28  ;;  %v9916_v21 = vand.u32 4294901760, %v8627_v35  ;;  %v9920_v11 = vand.u32 4294901760, %v8658_v33  ;;  %v3424_v55 = vsub.f32 %v8472_v40, %v3423_v3 }
 0x1e7   :  { %5712 = vmatprep.subr.bf16.mxu0 %v9898_v44  ;;  %5594 = vmatpush1.bf16.msra.mxu1 %v5593_v9  ;;  %v5716_v9 = vpack.c.bf16 %v9919_v39, %v9918_v25  ;;  %v8785_v26 = vadd.f32 %v8715_v37, %v1367_v8  ;;  %v9921_v37 = vand.u32 4294901760, %v8388_v58 }
 0x1e8   :  { %5595 = vmatprep.subr.bf16.mxu1 %v9898_v44  ;;  %v3411_v7 = vand.u32 4294901760, %v3410_v23  ;;  %v3425_v39 = vand.u32 4294901760, %v3424_v55 }
 0x1e9   :  { %3807 = vmatmul.mubr.f32.gmra.mrb[56].mxu0 %v9916_v21  ;;  %v9343_v21 = vand.u32 4294901760, %v8490_v38 }
 0x1ea   :  { %3814 = vmatprep.mubr.f32.mxu0 %v9917_v42  ;;  %5714 = vmatpush1.bf16.msra.mxu0 %v5713_v63  ;;  %v5599_v63 = vpack.c.bf16 %v3397_v14, %v3390_v16  ;;  %v3417_v42 = vsub.f32 %v8470_v56, %v3416_v47  ;;  %v5602_v16 = vpack.c.bf16 %v3411_v7, %v3404_v31  ;;  %v9923_v31 = vand.u32 4294901760, %v8414_v41 }
 0x1eb   :  { %5715 = vmatprep.subr.bf16.mxu0 %v9898_v44  ;;  %5597 = vmatpush1.bf16.msra.mxu1 %v5596_v32  ;;  %v9922_v32 = vand.u32 4294901760, %v8390_v18  ;;  %v3431_v14 = vsub.f32 %v8488_v2, %v9344_v52  ;;  %v3438_v8 = vsub.f32 %v8490_v38, %v9343_v21 }
 0x1ec   :  { %5598 = vmatprep.subr.bf16.mxu1 %v9898_v44  ;;  %v3418_v25 = vand.u32 4294901760, %v3417_v42  ;;  %v5722_v7 = vpack.c.bf16 %v3381_v5, %v9923_v31  ;;  %v9347_v42 = vand.u32 4294901760, %v8527_v59 }
 0x1ed   :  { %3818 = vmatmul.mubr.f32.gmra.mrb[58].mxu0 %v9920_v11  ;;  %v5719_v23 = vpack.c.bf16 %v9922_v32, %v9921_v37  ;;  %v9345_v11 = vand.u32 4294901760, %v8502_v54  ;;  %v4628_v37 = vpop.f32.mrb[24].mxu1  ;;  %v3432_v32 = vand.u32 4294901760, %v3431_v14  ;;  %v3439_v21 = vand.u32 4294901760, %v3438_v8 }
 0x1ee   :  { %4215 = vmatprep.mubr.msk.f32.mxu0 %vm244_vm3, %v8324_v45  ;;  %5717 = vmatpush1.bf16.msra.mxu0 %v5716_v9  ;;  %v9346_v9 = vand.u32 4294901760, %v8500_v22  ;;  %v4629_v55 = vpop.f32.mrb[25].mxu1  ;;  %v5605_v52 = vpack.c.bf16 %v3425_v39, %v3418_v25  ;;  %v9924_v14 = vand.u32 4294901760, %v8422_v19 }
 0x1ef   :  { %5718 = vmatprep.subr.bf16.mxu0 %v9898_v44  ;;  %5600 = vmatpush1.bf16.msra.mxu1 %v5599_v63  ;;  %v9348_v63 = vand.u32 4294901760, %v8525_v57  ;;  %v3452_v5 = vsub.f32 %v8502_v54, %v9345_v11  ;;  %v4630_v31 = vadd.f32 %v4629_v55, %v4628_v37  ;;  %v5608_v25 = vpack.c.bf16 %v3439_v21, %v3432_v32 }
 0x1f0   :  { %5601 = vmatprep.subr.bf16.mxu1 %v9898_v44  ;;  %v5725_v8 = vpack.c.bf16 %v9924_v14, %v3388_v34  ;;  %v3466_v37 = vsub.f32 %v8527_v59, %v9347_v42  ;;  %v9349_v34 = vand.u32 4294901760, %v8548_v1  ;;  %v5728_v21 = vpack.c.bf16 %v3409_v28, %v3402_v0 }
 0x1f1   :  { %v3459_v39 = vsub.f32 %v8525_v57, %v9348_v63  ;;  %v3453_v11 = vand.u32 4294901760, %v3452_v5  ;;  %v9351_v5 = vand.u32 4294901760, %v8568_v50 }
 0x1f2   :  { %5720 = vmatpush1.bf16.msra.mxu0 %v5719_v23  ;;  %v3445_v23 = vsub.f32 %v8500_v22, %v9346_v9  ;;  %v9350_v9 = vand.u32 4294901760, %v8546_v61  ;;  %v3467_v42 = vand.u32 4294901760, %v3466_v37  ;;  %v3480_v0 = vsub.f32 %v8548_v1, %v9349_v34 }
 0x1f3   :  { %5721 = vmatprep.subr.bf16.mxu0 %v9898_v44  ;;  %5603 = vmatpush1.bf16.msra.mxu1 %v5602_v16  ;;  %v4631_v16 = vpop.f32.mrb[26].mxu1  ;;  %v3500_v34 = vand.u32 4294901760, %v8580_v4 }
 0x1f4   :  { %5604 = vmatprep.subr.bf16.mxu1 %v9898_v44  ;;  %v4632_v55 = vpop.f32.mrb[27].mxu1 }
 0x1f5   :  { %v4633_v14 = vadd.f32 %v4632_v55, %v4631_v16  ;;  %v4634_v32 = vpop.f32.mrb[28].mxu1 }
 0x1f6   :  { %5723 = vmatpush1.bf16.msra.mxu0 %v5722_v7  ;;  %v3446_v7 = vand.u32 4294901760, %v3445_v23  ;;  %v9352_v23 = vand.u32 4294901760, %v8566_v43  ;;  %v4635_v63 = vpop.f32.mrb[29].mxu1 }
 0x1f7   :  { %5724 = vmatprep.subr.bf16.mxu0 %v9898_v44  ;;  %5606 = vmatpush1.bf16.msra.mxu1 %v5605_v52  ;;  %v3460_v52 = vand.u32 4294901760, %v3459_v39  ;;  %v4587_v28 = vpop.f32.mrb[24].mxu0  ;;  %v4636_v55 = vadd.f32 %v4635_v63, %v4634_v32  ;;  %v3494_v63 = vsub.f32 %v8568_v50, %v9351_v5  ;;  %v3481_v32 = vand.u32 4294901760, %v3480_v0 }
 0x1f8   :  { %5607 = vmatprep.subr.bf16.mxu1 %v9898_v44  ;;  %v5611_v16 = vpack.c.bf16 %v3453_v11, %v3446_v7  ;;  %v4588_v39 = vpop.f32.mrb[25].mxu0  ;;  %v3487_v7 = vsub.f32 %v8566_v43, %v9352_v23 }
 0x1f9   :  { %v4589_v11 = vadd.f32 %v4588_v39, %v4587_v28  ;;  %v5614_v37 = vpack.c.bf16 %v3467_v42, %v3460_v52  ;;  %v9925_v52 = vand.u32 4294901760, %v8488_v2  ;;  %v9926_v28 = vand.u32 4294901760, %v8490_v38 }
 0x1fa   :  { %5726 = vmatpush1.bf16.msra.mxu0 %v5725_v8  ;;  %v3473_v8 = vsub.f32 %v8546_v61, %v9350_v9  ;;  %v3507_v9 = vand.u32 4294901760, %v8583_v13  ;;  %v3488_v5 = vand.u32 4294901760, %v3487_v7  ;;  %v9929_v7 = vand.u32 4294901760, %v8502_v54 }
 0x1fb   :  { %5727 = vmatprep.subr.bf16.mxu0 %v9898_v44  ;;  %5609 = vmatpush1.bf16.msra.mxu1 %v5608_v25  ;;  %v5731_v25 = vpack.c.bf16 %v3423_v3, %v3416_v47  ;;  %v1751_v47 = vadd.f32 %v4589_v11, %v8740_v29  ;;  %v4590_v3 = vpop.f32.mrb[26].mxu0  ;;  %v5734_v39 = vpack.c.bf16 %v9926_v28, %v9925_v52  ;;  %v3495_v11 = vand.u32 4294901760, %v3494_v63 }
 0x1fc   :  { %5610 = vmatprep.subr.bf16.mxu1 %v9898_v44  ;;  %v4591_v42 = vpop.f32.mrb[27].mxu0  ;;  %v3508_v33 = vsub.f32 %v8583_v13, %v3507_v9 }
 0x1fd   :  { %v4592_v0 = vadd.f32 %v4591_v42, %v4590_v3  ;;  %v8878_v23 = vadd.f32 %v4630_v31, %v1751_v47  ;;  %v9928_v3 = vand.u32 4294901760, %v8500_v22  ;;  %v5620_v63 = vpack.c.bf16 %v3495_v11, %v3488_v5 }
 0x1fe   :  { %5729 = vmatpush1.bf16.msra.mxu0 %v5728_v21  ;;  %v3474_v21 = vand.u32 4294901760, %v3473_v8  ;;  %v9933_v5 = vand.u32 4294901760, %v8548_v1 }
 0x1ff   :  { %5730 = vmatprep.subr.bf16.mxu0 %v9898_v44  ;;  %5612 = vmatpush1.bf16.msra.mxu1 %v5611_v16  ;;  %v9927_v16 = vld [vmem:[#allocation43_spill] sm:$0xff]  ;;  %v1760_v6 = vadd.f32 %v4592_v0, %v8767_v30  ;;  %v4593_v52 = vpop.f32.mrb[28].mxu0  ;;  %v5737_v31 = vpack.c.bf16 %v9929_v7, %v9928_v3 }
 0x200   :  { %5613 = vmatprep.subr.bf16.mxu1 %v9898_v44  ;;  %v8875_v8 = vsub.f32 %v9927_v16, %v8674_v10  ;;  %v5617_v29 = vpack.c.bf16 %v3481_v32, %v3474_v21  ;;  %v4594_v28 = vpop.f32.mrb[29].mxu0  ;;  %v3509_v32 = vand.u32 4294901760, %v3508_v33  ;;  %v9931_v16 = vand.u32 4294901760, %v8527_v59 }
 0x201   :  { %v4595_v47 = vadd.f32 %v4594_v28, %v4593_v52 }
 0x202   :  { %5732 = vmatpush1.bf16.msra.mxu0 %v5731_v25  ;;  %v3501_v25 = vsub.f32 %v8580_v4, %v3500_v34  ;;  %v3514_v30 = vand.u32 4294901760, %v8875_v8 }
 0x203   :  { %5733 = vmatprep.subr.bf16.mxu0 %v9898_v44  ;;  %5615 = vmatpush1.bf16.msra.mxu1 %v5614_v37  ;;  %v8889_v37 = vadd.f32 %v4633_v14, %v1760_v6  ;;  %v1769_v42 = vadd.f32 %v4595_v47, %v8785_v26  ;;  %v9932_v26 = vand.u32 4294901760, %v8546_v61 }
 0x204   :  { %5616 = vmatprep.subr.bf16.mxu1 %v9898_v44  ;;  %v3502_v21 = vand.u32 4294901760, %v3501_v25  ;;  %v3515_v33 = vsub.f32 %v8875_v8, %v3514_v30  ;;  %v9935_v25 = vand.u32 4294901760, %v8568_v50 }
 0x205   :  { %v8899_v6 = vadd.f32 %v4636_v55, %v1769_v42  ;;  %v9934_v55 = vand.u32 4294901760, %v8566_v43  ;;  %v9940_v42 = vpack.c.bf16 %v8318_v17, %v8316_v12  ;;  %v9943_v12 = vpack.c.bf16 %v8339_v15, %v8337_v62 }
 0x206   :  { %5735 = vmatpush1.bf16.msra.mxu0 %v5734_v39  ;;  %v9930_v39 = vand.u32 4294901760, %v8525_v57  ;;  %v5623_v14 = vpack.c.bf16 %v3509_v32, %v3502_v21  ;;  %v3516_v11 = vand.u32 4294901760, %v3515_v33  ;;  %v9939_v21 = vld [vmem:[#allocation11_spill] sm:$0xff]  ;;  %v5749_v32 = vpack.c.bf16 %v3507_v9, %v3500_v34 }
 0x207   :  { %5736 = vmatprep.subr.bf16.mxu0 %v9898_v44  ;;  %5618 = vmatpush1.bf16.msra.mxu1 %v5617_v29  ;;  %v5743_v29 = vpack.c.bf16 %v9933_v5, %v9932_v26  ;;  %v5746_v52 = vpack.c.bf16 %v9935_v25, %v9934_v55  ;;  %v9942_v33 = vld [vmem:[#allocation35_spill] sm:$0xff]  ;;  %v9946_v62 = vpack.c.bf16 %v8360_v49, %v8358_v27 }
 0x208   :  { %5619 = vmatprep.subr.bf16.mxu1 %v9898_v44  ;;  %v5740_v0 = vpack.c.bf16 %v9931_v16, %v9930_v39  ;;  %v9948_v49 = vpack.c.bf16 %v8390_v18, %v8388_v58  ;;  %v9950_v18 = vpack.c.bf16 %v8416_v53, %v8414_v41  ;;  %v9952_v41 = vpack.c.bf16 %v8422_v19, %v8419_v24 }
 0x209   :  { %v9956_v24 = vpack.c.bf16 %v8472_v40, %v8470_v56  ;;  %v9960_v40 = vpack.c.bf16 %v8502_v54, %v8500_v22  ;;  %v9963_v54 = vld [vmem:[#allocation8_spill] sm:$0xff] }
 0x20a   :  { %5738 = vmatpush1.bf16.msra.mxu0 %v5737_v31  ;;  %v9936_v31 = vmov 1.0  }
 0x20b   :  { %5739 = vmatprep.subr.bf16.mxu0 %v9898_v44  ;;  %5621 = vmatpush1.bf16.msra.mxu1 %v5620_v63 }
 0x20c   :  { %5622 = vmatprep.subr.bf16.mxu1 %v9898_v44 }
 0x20e   :  { %5741 = vmatpush1.bf16.msra.mxu0 %v5740_v0 }
 0x20f   :  { %5742 = vmatprep.subr.bf16.mxu0 %v9898_v44  ;;  %5624 = vmatpush1.bf16.msra.mxu1 %v5623_v14 }
 0x210   :  { %3511 = vmatprep.subr.mxu1 %v9864_v36 }
 0x211   :  { %v4710_v28 = vpop.f32.mrb[30].mxu1 }
 0x212   :  { %5744 = vmatpush1.bf16.msra.mxu0 %v5743_v29  ;;  %v4711_v3 = vpop.f32.mrb[31].mxu1 }
 0x213   :  { %5745 = vmatprep.subr.bf16.mxu0 %v9898_v44  ;;  %3517 = vmatpush1.msra.mxu1 %v3516_v11  ;;  %v4712_v7 = vadd.f32 %v4711_v3, %v4710_v28  ;;  %v9945_v11 = vld [vmem:[#allocation46_spill] sm:$0xff] }
 0x214   :  { %4210 = vmatmul.mubr.msk.f32.vlgmr.msra.gmra.mrb[54].mxu1 %vm53_vm4, %v9936_v31  ;;  %5625 = vmatprep.subr.bf16.mxu1 %v9898_v44  ;;  %v9949_v3 = vld [vmem:[#allocation22_spill] sm:$0xff] }
 0x215   :  { %4211 = vmatprep.mubr.msk.f32.mxu1 %vm244_vm3, %v9939_v21  ;;  %5627 = vmatpush1.bf16.msra.mxu1 %v9940_v42  ;;  %v4713_v39 = vpop.f32.mrb[32].mxu1 }
 0x216   :  { %5747 = vmatpush1.bf16.msra.mxu0 %v5746_v52  ;;  %v4714_v16 = vpop.f32.mrb[33].mxu1  ;;  %5628 = vmatprep.subr.bf16.mxu1 %v9898_v44 }
 0x217   :  { %5748 = vmatprep.subr.bf16.mxu0 %v9898_v44  ;;  %v4715_v0 = vadd.f32 %v4714_v16, %v4713_v39  ;;  %v9951_v39 = vld [vmem:[#allocation25_spill] sm:$0xff] }
 0x218   :  { %4212 = vmatmul.mubr.msk.f32.gmra.mrb[56].mxu1 %vm61_vm6, %v9936_v31  ;;  %v9953_v16 = vld [vmem:[#allocation33_spill] sm:$0xff] }
 0x219   :  { %4213 = vmatprep.mubr.msk.f32.mxu1 %vm244_vm3, %v9942_v33  ;;  %5630 = vmatpush1.bf16.msra.mxu1 %v9943_v12  ;;  %v4716_v17 = vpop.f32.mrb[34].mxu1  ;;  %v9957_v12 = vld [vmem:[#allocation38_spill] sm:$0xff] }
 0x21a   :  { %5750 = vmatpush1.bf16.msra.mxu0 %v5749_v32  ;;  %v4717_v9 = vpop.f32.mrb[35].mxu1  ;;  %5631 = vmatprep.subr.bf16.mxu1 %v9898_v44 }
 0x21b   :  { %3963 = vmatprep.subr.mxu0 %v9864_v36  ;;  %v4669_v34 = vpop.f32.mrb[30].mxu0  ;;  %v4718_v26 = vadd.f32 %v4717_v9, %v4716_v17 }
 0x21c   :  { %4214 = vmatmul.mubr.msk.f32.gmra.mrb[58].mxu1 %vm69_vm8, %v9936_v31  ;;  %v4670_v29 = vpop.f32.mrb[31].mxu0 }
 0x21d   :  { %3670 = vmatprep.mubr.f32.mxu1 %v9945_v11  ;;  %v4671_v55 = vadd.f32 %v4670_v29, %v4669_v34  ;;  %5633 = vmatpush1.bf16.msra.mxu1 %v9946_v62  ;;  %v9959_v34 = vld [vmem:[#allocation41_spill] sm:$0xff] }
 0x21e   :  { %3967 = vmatpush1.msra.mxu0 %v3514_v30  ;;  %v9947_v30 = vld [vmem:[#allocation24_spill] sm:$0xff]  ;;  %5634 = vmatprep.subr.bf16.mxu1 %v9898_v44  ;;  %v9961_v11 = vld [vmem:[#allocation49_spill] sm:$0xff] }
 0x21f   :  { %4216 = vmatmul.mubr.msk.f32.vlgmr.msra.gmra.mrb[54].mxu0 %vm53_vm4, %v9936_v31  ;;  %5751 = vmatprep.subr.bf16.mxu0 %v9898_v44  ;;  %v2067_v15 = vadd.f32 %v4671_v55, %v8878_v23  ;;  %v4672_v25 = vpop.f32.mrb[32].mxu0 }
 0x220   :  { %4217 = vmatprep.mubr.msk.f32.mxu0 %vm244_vm3, %v9939_v21  ;;  %5753 = vmatpush1.bf16.msra.mxu0 %v9947_v30  ;;  %v4673_v52 = vpop.f32.mrb[33].mxu0 }
 0x221   :  { %5754 = vmatprep.subr.bf16.mxu0 %v9898_v44  ;;  %v4674_v27 = vadd.f32 %v4673_v52, %v4672_v25  ;;  %5636 = vmatpush1.bf16.msra.mxu1 %v9948_v49  ;;  %v2185_v28 = vadd.f32 %v4712_v7, %v2067_v15  ;;  %v9962_v15 = vpack.c.bf16 %v8527_v59, %v8525_v57  ;;  %v9965_v59 = vld [vmem:[#allocation9_spill] sm:$0xff] }
 0x222   :  { %5637 = vmatprep.subr.bf16.mxu1 %v9898_v44 }
 0x223   :  { %4218 = vmatmul.mubr.msk.f32.gmra.mrb[56].mxu0 %vm61_vm6, %v9936_v31  ;;  %v2074_v23 = vadd.f32 %v4674_v27, %v8889_v37  ;;  %v4675_v32 = vpop.f32.mrb[34].mxu0  ;;  %v9964_v27 = vpack.c.bf16 %v8548_v1, %v8546_v61  ;;  %v9967_v1 = vld [vmem:[#allocation10_spill] sm:$0xff] }
 0x224   :  { %4219 = vmatprep.mubr.msk.f32.mxu0 %vm244_vm3, %v9942_v33  ;;  %5756 = vmatpush1.bf16.msra.mxu0 %v9949_v3  ;;  %v4676_v42 = vpop.f32.mrb[35].mxu0 }
 0x225   :  { %5757 = vmatprep.subr.bf16.mxu0 %v9898_v44  ;;  %v4677_v58 = vadd.f32 %v4676_v42, %v4675_v32  ;;  %5639 = vmatpush1.bf16.msra.mxu1 %v9950_v18  ;;  %v2192_v7 = vadd.f32 %v4715_v0, %v2074_v23  ;;  %v9966_v32 = vpack.c.bf16 %v8568_v50, %v8566_v43  ;;  %v9970_v43 = vld [vmem:[#allocation39_spill] sm:$0xff] }
 0x226   :  { %5640 = vmatprep.subr.bf16.mxu1 %v9898_v44 }
 0x227   :  { %4220 = vmatmul.mubr.msk.f32.gmra.mrb[58].mxu0 %vm69_vm8, %v9936_v31  ;;  %v2081_v37 = vadd.f32 %v4677_v58, %v8899_v6  ;;  %v9955_v6 = vld [vmem:[#allocation36_spill] sm:$0xff]  ;;  %v9968_v58 = vpack.c.bf16 %v8583_v13, %v8580_v4  ;;  %v9971_v13 = vld [vmem:[#allocation42_spill] sm:$0xff] }
 0x228   :  { %4221 = vmatprep.mubr.msk.f32.mxu0 %vm244_vm3, %v8324_v45  ;;  %5759 = vmatpush1.bf16.msra.mxu0 %v9951_v39  ;;  %v9954_v45 = vpack.c.bf16 %v8452_v46, %v8450_v20  ;;  %v9958_v20 = vpack.c.bf16 %v8490_v38, %v8488_v2  ;;  %v9972_v39 = vld [vmem:[#allocation14_spill] sm:$0xff] }
 0x229   :  { %5760 = vmatprep.subr.bf16.mxu0 %v9898_v44  ;;  %5642 = vmatpush1.bf16.msra.mxu1 %v9952_v41  ;;  %v2199_v53 = vadd.f32 %v4718_v26, %v2081_v37 }
 0x22a   :  { %5643 = vmatprep.subr.bf16.mxu1 %v9898_v44 }
 0x22c   :  { %5762 = vmatpush1.bf16.msra.mxu0 %v9953_v16 }
 0x22d   :  { %5763 = vmatprep.subr.bf16.mxu0 %v9898_v44  ;;  %5645 = vmatpush1.bf16.msra.mxu1 %v9954_v45 }
 0x22e   :  { %5646 = vmatprep.subr.bf16.mxu1 %v9898_v44 }
 0x230   :  { %5765 = vmatpush1.bf16.msra.mxu0 %v9955_v6 }
 0x231   :  { %5766 = vmatprep.subr.bf16.mxu0 %v9898_v44  ;;  %5648 = vmatpush1.bf16.msra.mxu1 %v9956_v24  ;;  %v4792_v19 = vpop.f32.mrb[36].mxu1 }
 0x232   :  { %v4793_v0 = vpop.f32.mrb[37].mxu1  ;;  %5649 = vmatprep.subr.bf16.mxu1 %v9898_v44 }
 0x233   :  { %v4794_v17 = vadd.f32 %v4793_v0, %v4792_v19 }
 0x234   :  { %5768 = vmatpush1.bf16.msra.mxu0 %v9957_v12 }
 0x235   :  { %5769 = vmatprep.subr.bf16.mxu0 %v9898_v44  ;;  %5651 = vmatpush1.bf16.msra.mxu1 %v9958_v20  ;;  %v4795_v46 = vpop.f32.mrb[38].mxu1 }
 0x236   :  { %v4796_v9 = vpop.f32.mrb[39].mxu1  ;;  %5652 = vmatprep.subr.bf16.mxu1 %v9898_v44 }
 0x237   :  { %v4797_v56 = vadd.f32 %v4796_v9, %v4795_v46 }
 0x238   :  { %5771 = vmatpush1.bf16.msra.mxu0 %v9959_v34 }
 0x239   :  { %5772 = vmatprep.subr.bf16.mxu0 %v9898_v44  ;;  %5654 = vmatpush1.bf16.msra.mxu1 %v9960_v40  ;;  %v4798_v26 = vpop.f32.mrb[40].mxu1 }
 0x23a   :  { %v4799_v29 = vpop.f32.mrb[41].mxu1  ;;  %5655 = vmatprep.subr.bf16.mxu1 %v9898_v44 }
 0x23b   :  { %v4800_v38 = vadd.f32 %v4799_v29, %v4798_v26 }
 0x23c   :  { %5774 = vmatpush1.bf16.msra.mxu0 %v9961_v11 }
 0x23d   :  { %5775 = vmatprep.subr.bf16.mxu0 %v9898_v44  ;;  %5657 = vmatpush1.bf16.msra.mxu1 %v9962_v15 }
 0x23e   :  { %v4751_v2 = vpop.f32.mrb[36].mxu0  ;;  %5658 = vmatprep.subr.bf16.mxu1 %v9898_v44 }
 0x23f   :  { %v4752_v55 = vpop.f32.mrb[37].mxu0 }
 0x240   :  { %v4753_v62 = vadd.f32 %v4752_v55, %v4751_v2  ;;  %5777 = vmatpush1.bf16.msra.mxu0 %v9963_v54 }
 0x241   :  { %5778 = vmatprep.subr.bf16.mxu0 %v9898_v44  ;;  %5660 = vmatpush1.bf16.msra.mxu1 %v9964_v27 }
 0x242   :  { %v2311_v22 = vadd.f32 %v4753_v62, %v2185_v28  ;;  %v4754_v30 = vpop.f32.mrb[38].mxu0  ;;  %5661 = vmatprep.subr.bf16.mxu1 %v9898_v44 }
 0x243   :  { %v4755_v25 = vpop.f32.mrb[39].mxu0 }
 0x244   :  { %v4756_v52 = vadd.f32 %v4755_v25, %v4754_v30  ;;  %v2573_v49 = vadd.f32 %v4794_v17, %v2311_v22  ;;  %5780 = vmatpush1.bf16.msra.mxu0 %v9965_v59 }
 0x245   :  { %5781 = vmatprep.subr.bf16.mxu0 %v9898_v44  ;;  %5663 = vmatpush1.bf16.msra.mxu1 %v9966_v32 }
 0x246   :  { %v2326_v23 = vadd.f32 %v4756_v52, %v2192_v7  ;;  %v4757_v57 = vpop.f32.mrb[40].mxu0  ;;  %5664 = vmatprep.subr.bf16.mxu1 %v9898_v44  ;;  %v9969_v7 = vld [vmem:[#allocation34_spill] sm:$0xff] }
 0x247   :  { %v4758_v3 = vpop.f32.mrb[41].mxu0 }
 0x248   :  { %v4759_v28 = vadd.f32 %v4758_v3, %v4757_v57  ;;  %v2580_v42 = vadd.f32 %v4797_v56, %v2326_v23  ;;  %5783 = vmatpush1.bf16.msra.mxu0 %v9967_v1 }
 0x249   :  { %5784 = vmatprep.subr.bf16.mxu0 %v9898_v44  ;;  %5666 = vmatpush1.bf16.msra.mxu1 %v9968_v58 }
 0x24a   :  { %v2341_v61 = vadd.f32 %v4759_v28, %v2199_v53  ;;  %3658 = vmatprep.subr.mxu1 %v9864_v36 }
 0x24c   :  { %v2587_v18 = vadd.f32 %v4800_v38, %v2341_v61  ;;  %5786 = vmatpush1.bf16.msra.mxu0 %v9969_v7 }
 0x24d   :  { %5787 = vmatprep.subr.bf16.mxu0 %v9898_v44  ;;  %3661 = vmatpush1.msra.mxu1 %v8875_v8 }
 0x24e   :  { %3673 = vmatmul.mubr.f32.vlgmr.msra.gmra.mrb[54].mxu1 %v8600_v48 }
 0x24f   :  { %3679 = vmatprep.mubr.f32.mxu1 %v8623_v51 }
 0x250   :  { %5789 = vmatpush1.bf16.msra.mxu0 %v9970_v43 }
 0x251   :  { %5790 = vmatprep.subr.bf16.mxu0 %v9898_v44  ;;  %v4874_v50 = vpop.f32.mrb[42].mxu1 }
 0x252   :  { %3682 = vmatmul.mubr.f32.gmra.mrb[56].mxu1 %v8627_v35  ;;  %v4875_v4 = vpop.f32.mrb[43].mxu1 }
 0x253   :  { %3688 = vmatprep.mubr.f32.mxu1 %v9971_v13  ;;  %v4876_v37 = vadd.f32 %v4875_v4, %v4874_v50 }
 0x254   :  { %5792 = vmatpush1.bf16.msra.mxu0 %v8646_v60 }
 0x255   :  { %4080 = vmatprep.subr.mxu0 %v9864_v36  ;;  %v4877_v8 = vpop.f32.mrb[44].mxu1 }
 0x256   :  { %3691 = vmatmul.mubr.f32.gmra.mrb[58].mxu1 %v9972_v39  ;;  %v4878_v48 = vpop.f32.mrb[45].mxu1 }
 0x257   :  { %v4879_v51 = vadd.f32 %v4878_v48, %v4877_v8 }
 0x258   :  { %4082 = vmatpush1.msra.mxu0 %v8674_v10 }
 0x259   :  { %4222 = vmatmul.mubr.msk.f32.vlgmr.msra.gmra.mrb[54].mxu0 %vm53_vm4, %v9936_v31  ;;  %v4880_v44 = vpop.f32.mrb[46].mxu1 }
 0x25a   :  { %4223 = vmatprep.mubr.msk.f32.mxu0 %vm244_vm3, %v9939_v21  ;;  %v4881_v35 = vpop.f32.mrb[47].mxu1 }
 0x25b   :  { %v4882_v41 = vadd.f32 %v4881_v35, %v4880_v44 }
 0x25d   :  { %4224 = vmatmul.mubr.msk.f32.gmra.mrb[56].mxu0 %vm61_vm6, %v9936_v31 }
 0x25e   :  { %v4833_v60 = vpop.f32.mrb[42].mxu0  ;;  %4225 = vmatprep.mubr.msk.f32.mxu0 %vm244_vm3, %v9942_v33 }
 0x25f   :  { %v4834_v36 = vpop.f32.mrb[43].mxu0 }
 0x260   :  { %v4835_v10 = vadd.f32 %v4834_v36, %v4833_v60 }
 0x261   :  { %4226 = vmatmul.mubr.msk.f32.gmra.mrb[58].mxu0 %vm69_vm8, %v9936_v31 }
 0x262   :  { %v2725_v53 = vadd.f32 %v4835_v10, %v2573_v49  ;;  %v4836_v63 = vpop.f32.mrb[44].mxu0 }
 0x263   :  { %v4837_v21 = vpop.f32.mrb[45].mxu0 }
 0x264   :  { %v4838_v16 = vadd.f32 %v4837_v21, %v4836_v63  ;;  %v2851_v45 = vadd.f32 %v4876_v37, %v2725_v53 }
 0x266   :  { %v2734_v6 = vadd.f32 %v4838_v16, %v2580_v42  ;;  %v4839_v24 = vpop.f32.mrb[46].mxu0 }
 0x267   :  { %v4840_v19 = vpop.f32.mrb[47].mxu0 }
 0x268   :  { %v4841_v14 = vadd.f32 %v4840_v19, %v4839_v24  ;;  %v2862_v0 = vadd.f32 %v4879_v51, %v2734_v6 }
 0x26a   :  { %v2743_v12 = vadd.f32 %v4841_v14, %v2587_v18 }
 0x26c   :  { %v2873_v17 = vadd.f32 %v4882_v41, %v2743_v12 }
 0x271   :  { %v4956_v20 = vpop.f32.mrb[48].mxu1 }
 0x272   :  { %v4957_v33 = vpop.f32.mrb[49].mxu1 }
 0x273   :  { %v4958_v46 = vadd.f32 %v4957_v33, %v4956_v20 }
 0x275   :  { %v4959_v9 = vpop.f32.mrb[50].mxu1 }
 0x276   :  { %v4960_v34 = vpop.f32.mrb[51].mxu1 }
 0x277   :  { %v4961_v56 = vadd.f32 %v4960_v34, %v4959_v9 }
 0x279   :  { %v4962_v40 = vpop.f32.mrb[52].mxu1 }
 0x27a   :  { %v4963_v26 = vpop.f32.mrb[53].mxu1 }
 0x27b   :  { %v4964_v31 = vadd.f32 %v4963_v26, %v4962_v40 }
 0x27e   :  { %v4915_v47 = vpop.f32.mrb[48].mxu0 }
 0x27f   :  { %v4916_v5 = vpop.f32.mrb[49].mxu0 }
 0x280   :  { %v4917_v29 = vadd.f32 %v4916_v5, %v4915_v47 }
 0x282   :  { %v3041_v11 = vadd.f32 %v4917_v29, %v2851_v45  ;;  %v4918_v2 = vpop.f32.mrb[50].mxu0 }
 0x283   :  { %v4919_v38 = vpop.f32.mrb[51].mxu0 }
 0x284   :  { %v4920_v55 = vadd.f32 %v4919_v38, %v4918_v2  ;;  %v3159_v62 = vadd.f32 %v4958_v46, %v3041_v11 }
 0x286   :  { %v3048_v15 = vadd.f32 %v4920_v55, %v2862_v0  ;;  %v4921_v22 = vpop.f32.mrb[52].mxu0 }
 0x287   :  { %v4922_v54 = vpop.f32.mrb[53].mxu0 }
 0x288   :  { %v4923_v30 = vadd.f32 %v4922_v54, %v4921_v22  ;;  %v3166_v25 = vadd.f32 %v4961_v56, %v3048_v15 }
 0x28a   :  { %v3055_v52 = vadd.f32 %v4923_v30, %v2873_v17 }
 0x28c   :  { %v3173_v27 = vadd.f32 %v4964_v31, %v3055_v52 }
 0x321   :  { %v3674_v49 = vpop.f32.mrb[54].mxu1 }
 0x322   :  { %v5793_v23 = vadd.f32 %v3674_v49, %v3159_v62  ;;  %v3676_v59 = vpop.f32.mrb[55].mxu1 }
 0x325   :  { %v3683_v57 = vpop.f32.mrb[56].mxu1 }
 0x326   :  { %v5795_v3 = vadd.f32 %v3683_v57, %v3166_v25  ;;  %v3685_v28 = vpop.f32.mrb[57].mxu1 }
 0x329   :  { %v3692_v32 = vpop.f32.mrb[58].mxu1 }
 0x32a   :  { %v5797_v42 = vadd.f32 %v3692_v32, %v3173_v27  ;;  %v3694_v61 = vpop.f32.mrb[59].mxu1 }
 0x32c   :  { %v4093_v1 = vpop.f32.mrb[54].mxu0 }
 0x32d   :  { %v5794_v58 = vadd.f32 %v5793_v23, %v4093_v1  ;;  %v4095_v18 = vpop.f32.mrb[55].mxu0 }
 0x32f   :  { %4111 = vst [vmem:[#allocation5] sm:$0xff] %v5794_v58 }
 0x330   :  { %v4100_v7 = vpop.f32.mrb[56].mxu0 }
 0x331   :  { %v5796_v43 = vadd.f32 %v5795_v3, %v4100_v7  ;;  %v4102_v50 = vpop.f32.mrb[57].mxu0 }
 0x333   :  { %4112 = vst [vmem:[#allocation5 + $0x8] sm:$0xff] %v5796_v43 }
 0x334   :  { %v4107_v4 = vpop.f32.mrb[58].mxu0 }
 0x335   :  { %v5798_v13 = vadd.f32 %v5797_v42, %v4107_v4  ;;  %v4109_v37 = vpop.f32.mrb[59].mxu0 }
 0x337   :  { %4113 = vst [vmem:[#allocation5 + $0x10] sm:$0xff] %v5798_v13 }
 0x338   :  { %5866 = shalt.err (!%p5863_p12)
}
 0x339   :  { %s5867_s4 = scalar_lea.hbm %s9080_s2, 384 }
 0x33a   :  { %p5868_p13 = scmp.ne.s32.totalorder %s9080_s2, %s5867_s4  ;;  %p5871_p0 = scmp.lt.u32.totalorder %s5867_s4, %s9080_s2 }
 0x33c   :  { %p5873_p1 = pnand %p5871_p0, %p5868_p13 }
 0x33e   :  { %5876 = shalt.err (!%p5873_p1)
}
 0x33f   :  { %4125 = dma.vmem_to_hbm [thread:$0]  %s4120_s1, 384, %s9080_s2, [#allocation4], %s5882_s19, %s5882_s19, %s5883_s20  }
 0x340   :  { %5879 = dma.done.wait [#allocation4], 384  }
 0x341   :  { %5880 = vsyncadd [#allocation4], 4294966912 }
 0x342   :  { %4129 = vsyncpa [#allocation3], 1 }
 0x343   :  { %4130 = vsyncpa [#allocation4], 1 }

</bundles_post_ra>
